<compile_context>
chip_gen: v6e
topology: v6e:2x2x1
jax: 0.10.0
libtpu: 0.0.40
codegen_flags: <defaults>
</compile_context>

<pallas_src>
import jax
import jax.numpy as jnp
from jax.experimental import pallas as pl
from jax.experimental.pallas import tpu as pltpu

INPUT_SIZE = 1
HIDDEN_SIZE = 128
NUM_LAYERS = 2
DROPOUT = 0.0  # TODO(synk): nn.LSTM inter-layer dropout is training-only/stochastic; modeled as 0.


# ---------------- Fused Pallas kernel ----------------

def _make_fused_lstm_kernel(num_layers, T, B, H):
    """Kernel args: x, (w_ih, w_hh, b) * L, fc_w, fc_b, h0, c0  ->  pred, h_n, c_n."""

    def kernel(*refs):
        idx = 0
        x_ref = refs[idx]; idx += 1
        layer_refs = []
        for _ in range(num_layers):
            layer_refs.append((refs[idx], refs[idx + 1], refs[idx + 2]))
            idx += 3
        fcw_ref = refs[idx]; idx += 1      # (1, H)
        fcb_ref = refs[idx]; idx += 1      # (1, 1)
        h0_ref = refs[idx]; idx += 1       # (L, B, H)
        c0_ref = refs[idx]; idx += 1       # (L, B, H)
        pred_ref = refs[idx]; idx += 1     # (T, B)
        hn_ref = refs[idx]; idx += 1       # (L, B, H)
        cn_ref = refs[idx]; idx += 1       # (L, B, H)

        def lstm_cell(gates, c_prev):
            # PyTorch gate order [i, f, g, o]; slices are 128-lane aligned (H=128).
            i_g = jax.nn.sigmoid(gates[:, 0 * H:1 * H])
            f_g = jax.nn.sigmoid(gates[:, 1 * H:2 * H])
            g_g = jnp.tanh(gates[:, 2 * H:3 * H])
            o_g = jax.nn.sigmoid(gates[:, 3 * H:4 * H])
            c_new = f_g * c_prev + i_g * g_g
            h_new = o_g * jnp.tanh(c_new)
            return h_new, c_new

        x = x_ref[...]                                     # (T, B)
        prev_out = None                                    # (T*B, H) output of previous layer

        for l in range(num_layers):
            wih_ref, whh_ref, b_ref = layer_refs[l]

            # --- hoisted input projection + bias for ALL timesteps of this layer ---
            if l == 0:
                # input_size == 1: x @ W_ih is an outer product -> VPU broadcast multiply.
                proj = (x[:, :, None] * wih_ref[...][None, :, :]
                        + b_ref[...][None, :, :])                       # (T, B, 4H)
            else:
                proj2d = (jnp.dot(prev_out, wih_ref[...],
                                  preferred_element_type=jnp.float32)
                          + b_ref[...])                                  # (T*B, 4H)
                proj = proj2d.reshape(T, B, 4 * H)                       # (T, B, 4H)

            whh = whh_ref[...]                                           # (H, 4H)
            h = h0_ref[l]                                                # (B, H)
            c = c0_ref[l]                                                # (B, H)

            # --- serial recurrence: only h_prev @ W_hh per step ---
            hs = []
            for t in range(T):                                           # static unroll
                gates = proj[t] + jnp.dot(h, whh,
                                          preferred_element_type=jnp.float32)
                h, c = lstm_cell(gates, c)
                hs.append(h)

            hn_ref[l] = h.astype(hn_ref.dtype)
            cn_ref[l] = c.astype(cn_ref.dtype)
            prev_out = jnp.concatenate(hs, axis=0)                       # (T*B, H)

        # --- FC head (out_features = 1): VPU multiply + lane reduce, no N=1 MXU matmul ---
        out3d = prev_out.reshape(T, B, H)                                # (T, B, H)
        pred = jnp.sum(out3d * fcw_ref[...][None, :, :], axis=-1)        # (T, B)
        pred = pred + fcb_ref[...]                                       # broadcast (1,1)
        pred_ref[...] = pred.astype(pred_ref.dtype)

    return kernel


def lstm_module_forward(params, x, prev_state):
    """Equivalent of LSTM.forward (training-mode shapes): x (T,B) -> pred (T,B,1), (h_n, c_n)."""
    T, B = x.shape
    H = HIDDEN_SIZE
    L = NUM_LAYERS
    h0, c0 = prev_state                                   # each (L, B, H)

    inputs = [x.astype(jnp.float32)]
    for (w_ih, w_hh, bias) in params["lstm"]:
        inputs += [w_ih, w_hh, bias]
    inputs += [params["fc_w"], params["fc_b"], h0, c0]

    out_shape = (jax.ShapeDtypeStruct((T, B), jnp.float32),
                 jax.ShapeDtypeStruct((L, B, H), jnp.float32),
                 jax.ShapeDtypeStruct((L, B, H), jnp.float32))

    # No grid: whole arrays live in VMEM for the single invocation (no double-buffering,
    # no per-step DMA descriptors).
    vmem_spec = lambda: pl.BlockSpec(memory_space=pltpu.MemorySpace.VMEM)
    fused = pl.pallas_call(
        _make_fused_lstm_kernel(L, T, B, H),
        out_shape=out_shape,
        in_specs=[vmem_spec() for _ in inputs],
        out_specs=tuple(vmem_spec() for _ in range(3)),
    )
    pred2d, h_n, c_n = fused(*inputs)
    pred = pred2d[..., None]                               # (T, B, 1)
    return pred, (h_n, c_n)


# ---------------- Parameters & state ----------------

def init_params(key):
    """PyTorch-style uniform(-1/sqrt(H), 1/sqrt(H)) init, deterministic.

    Weights are stored pre-transposed for the kernel: w_ih (d_in, 4H), w_hh (H, 4H),
    bias = b_ih + b_hh as (1, 4H); fc_w as (1, H) (== nn.Linear(H,1).weight layout).
    """
    k = 1.0 / (HIDDEN_SIZE ** 0.5)
    keys = jax.random.split(key, NUM_LAYERS * 4 + 2)
    lstm_params = []
    ki = 0
    for layer in range(NUM_LAYERS):
        d_in = INPUT_SIZE if layer == 0 else HIDDEN_SIZE
        w_ih = jax.random.uniform(keys[ki], (d_in, 4 * HIDDEN_SIZE), jnp.float32, -k, k); ki += 1
        w_hh = jax.random.uniform(keys[ki], (HIDDEN_SIZE, 4 * HIDDEN_SIZE), jnp.float32, -k, k); ki += 1
        b_ih = jax.random.uniform(keys[ki], (1, 4 * HIDDEN_SIZE), jnp.float32, -k, k); ki += 1
        b_hh = jax.random.uniform(keys[ki], (1, 4 * HIDDEN_SIZE), jnp.float32, -k, k); ki += 1
        lstm_params.append((w_ih, w_hh, b_ih + b_hh))
    fc_w = jax.random.uniform(keys[ki], (1, HIDDEN_SIZE), jnp.float32, -k, k); ki += 1
    fc_b = jax.random.uniform(keys[ki], (1, 1), jnp.float32, -k, k)
    return {"lstm": lstm_params, "fc_w": fc_w, "fc_b": fc_b}


def init_state(batch):
    h0 = jnp.zeros((NUM_LAYERS, batch, HIDDEN_SIZE), jnp.float32)
    c0 = jnp.zeros((NUM_LAYERS, batch, HIDDEN_SIZE), jnp.float32)
    return (h0, c0)


if __name__ == "__main__":
    seq_len, batch = 8, 8
    key = jax.random.PRNGKey(0)
    k_param, k_x = jax.random.split(key)
    params = init_params(k_param)
    x = jax.random.normal(k_x, (seq_len, batch), jnp.float32)
    prev_state = init_state(batch)

    pred, (h_n, c_n) = lstm_module_forward(params, x, prev_state)
    jax.block_until_ready((pred, h_n, c_n))

    assert pred.shape == (seq_len, batch, 1)
    assert h_n.shape == (NUM_LAYERS, batch, HIDDEN_SIZE)
    assert c_n.shape == (NUM_LAYERS, batch, HIDDEN_SIZE)
    assert bool(jnp.all(jnp.isfinite(pred)))
    print("KERNEL_OK")
</pallas_src>

<mosaic_0001>
module attributes {stable_mosaic.version = 11 : i64} {
  func.func @kernel(%arg0: memref<8x8xf32, #tpu.memory_space<vmem>>, %arg1: memref<1x512xf32, #tpu.memory_space<vmem>>, %arg2: memref<128x512xf32, #tpu.memory_space<vmem>>, %arg3: memref<1x512xf32, #tpu.memory_space<vmem>>, %arg4: memref<128x512xf32, #tpu.memory_space<vmem>>, %arg5: memref<128x512xf32, #tpu.memory_space<vmem>>, %arg6: memref<1x512xf32, #tpu.memory_space<vmem>>, %arg7: memref<1x128xf32, #tpu.memory_space<vmem>>, %arg8: memref<1x1xf32, #tpu.memory_space<vmem>>, %arg9: memref<2x8x128xf32, #tpu.memory_space<vmem>>, %arg10: memref<2x8x128xf32, #tpu.memory_space<vmem>>, %arg11: memref<8x8xf32, #tpu.memory_space<vmem>>, %arg12: memref<2x8x128xf32, #tpu.memory_space<vmem>>, %arg13: memref<2x8x128xf32, #tpu.memory_space<vmem>>) attributes {dimension_semantics = [], scalar_prefetch = 0 : i64, scratch_operands = 0 : i64, tpu.core_type = #tpu.core_type<tc>} {
    %c0 = arith.constant 0 : index
    %c0_0 = arith.constant 0 : index
    %0 = vector.load %arg0[%c0, %c0_0] : memref<8x8xf32, #tpu.memory_space<vmem>>, vector<8x8xf32>
    %1 = vector.shape_cast %0 : vector<8x8xf32> to vector<8x8x1xf32>
    %c0_1 = arith.constant 0 : index
    %c0_2 = arith.constant 0 : index
    %2 = vector.load %arg1[%c0_1, %c0_2] : memref<1x512xf32, #tpu.memory_space<vmem>>, vector<1x512xf32>
    %3 = vector.shape_cast %2 : vector<1x512xf32> to vector<1x1x512xf32>
    %4 = vector.broadcast %1 : vector<8x8x1xf32> to vector<8x8x512xf32>
    %5 = vector.broadcast %3 : vector<1x1x512xf32> to vector<8x8x512xf32>
    %6 = arith.mulf %4, %5 : vector<8x8x512xf32>
    %c0_3 = arith.constant 0 : index
    %c0_4 = arith.constant 0 : index
    %7 = vector.load %arg3[%c0_3, %c0_4] : memref<1x512xf32, #tpu.memory_space<vmem>>, vector<1x512xf32>
    %8 = vector.shape_cast %7 : vector<1x512xf32> to vector<1x1x512xf32>
    %9 = vector.broadcast %8 : vector<1x1x512xf32> to vector<8x8x512xf32>
    %10 = arith.addf %6, %9 : vector<8x8x512xf32>
    %c0_5 = arith.constant 0 : index
    %c0_6 = arith.constant 0 : index
    %11 = vector.load %arg2[%c0_5, %c0_6] : memref<128x512xf32, #tpu.memory_space<vmem>>, vector<128x512xf32>
    %c0_7 = arith.constant 0 : index
    %c0_8 = arith.constant 0 : index
    %c0_9 = arith.constant 0 : index
    %12 = vector.load %arg9[%c0_7, %c0_8, %c0_9] : memref<2x8x128xf32, #tpu.memory_space<vmem>>, vector<1x8x128xf32>
    %13 = vector.shape_cast %12 : vector<1x8x128xf32> to vector<8x128xf32>
    %c0_10 = arith.constant 0 : index
    %c0_11 = arith.constant 0 : index
    %c0_12 = arith.constant 0 : index
    %14 = vector.load %arg10[%c0_10, %c0_11, %c0_12] : memref<2x8x128xf32, #tpu.memory_space<vmem>>, vector<1x8x128xf32>
    %15 = vector.shape_cast %14 : vector<1x8x128xf32> to vector<8x128xf32>
    %16 = vector.extract_strided_slice %10 {offsets = [0, 0, 0], sizes = [1, 8, 512], strides = [1, 1, 1]} : vector<8x8x512xf32> to vector<1x8x512xf32>
    %17 = vector.shape_cast %16 : vector<1x8x512xf32> to vector<8x512xf32>
    %cst = arith.constant dense<0.000000e+00> : vector<8x512xf32>
    %18 = tpu.matmul %13, %11, %cst {dimension_numbers = #tpu.dot_dimension_numbers<[1], [0], [0], [1], [0, 0, 1, 1], [], []>} : vector<8x128xf32>, vector<128x512xf32>, vector<8x512xf32> -> vector<8x512xf32>
    %19 = arith.addf %17, %18 : vector<8x512xf32>
    %20 = vector.extract_strided_slice %19 {offsets = [0, 0], sizes = [8, 128], strides = [1, 1]} : vector<8x512xf32> to vector<8x128xf32>
    %21 = arith.negf %20 : vector<8x128xf32>
    %22 = math.exp %21 : vector<8x128xf32>
    %cst_13 = arith.constant 1.000000e+00 : f32
    %23 = vector.broadcast %cst_13 : f32 to vector<8x128xf32>
    %24 = arith.addf %23, %22 : vector<8x128xf32>
    %25 = arith.divf %23, %24 : vector<8x128xf32>
    %26 = vector.extract_strided_slice %19 {offsets = [0, 128], sizes = [8, 128], strides = [1, 1]} : vector<8x512xf32> to vector<8x128xf32>
    %27 = arith.negf %26 : vector<8x128xf32>
    %28 = math.exp %27 : vector<8x128xf32>
    %cst_14 = arith.constant 1.000000e+00 : f32
    %29 = vector.broadcast %cst_14 : f32 to vector<8x128xf32>
    %30 = arith.addf %29, %28 : vector<8x128xf32>
    %31 = arith.divf %29, %30 : vector<8x128xf32>
    %32 = vector.extract_strided_slice %19 {offsets = [0, 256], sizes = [8, 128], strides = [1, 1]} : vector<8x512xf32> to vector<8x128xf32>
    %33 = math.tanh %32 : vector<8x128xf32>
    %34 = vector.extract_strided_slice %19 {offsets = [0, 384], sizes = [8, 128], strides = [1, 1]} : vector<8x512xf32> to vector<8x128xf32>
    %35 = arith.negf %34 : vector<8x128xf32>
    %36 = math.exp %35 : vector<8x128xf32>
    %cst_15 = arith.constant 1.000000e+00 : f32
    %37 = vector.broadcast %cst_15 : f32 to vector<8x128xf32>
    %38 = arith.addf %37, %36 : vector<8x128xf32>
    %39 = arith.divf %37, %38 : vector<8x128xf32>
    %40 = arith.mulf %31, %15 : vector<8x128xf32>
    %41 = arith.mulf %25, %33 : vector<8x128xf32>
    %42 = arith.addf %40, %41 : vector<8x128xf32>
    %43 = math.tanh %42 : vector<8x128xf32>
    %44 = arith.mulf %39, %43 : vector<8x128xf32>
    %45 = vector.extract_strided_slice %10 {offsets = [1, 0, 0], sizes = [1, 8, 512], strides = [1, 1, 1]} : vector<8x8x512xf32> to vector<1x8x512xf32>
    %46 = vector.shape_cast %45 : vector<1x8x512xf32> to vector<8x512xf32>
    %cst_16 = arith.constant dense<0.000000e+00> : vector<8x512xf32>
    %47 = tpu.matmul %44, %11, %cst_16 {dimension_numbers = #tpu.dot_dimension_numbers<[1], [0], [0], [1], [0, 0, 1, 1], [], []>} : vector<8x128xf32>, vector<128x512xf32>, vector<8x512xf32> -> vector<8x512xf32>
    %48 = arith.addf %46, %47 : vector<8x512xf32>
    %49 = vector.extract_strided_slice %48 {offsets = [0, 0], sizes = [8, 128], strides = [1, 1]} : vector<8x512xf32> to vector<8x128xf32>
    %50 = arith.negf %49 : vector<8x128xf32>
    %51 = math.exp %50 : vector<8x128xf32>
    %cst_17 = arith.constant 1.000000e+00 : f32
    %52 = vector.broadcast %cst_17 : f32 to vector<8x128xf32>
    %53 = arith.addf %52, %51 : vector<8x128xf32>
    %54 = arith.divf %52, %53 : vector<8x128xf32>
    %55 = vector.extract_strided_slice %48 {offsets = [0, 128], sizes = [8, 128], strides = [1, 1]} : vector<8x512xf32> to vector<8x128xf32>
    %56 = arith.negf %55 : vector<8x128xf32>
    %57 = math.exp %56 : vector<8x128xf32>
    %cst_18 = arith.constant 1.000000e+00 : f32
    %58 = vector.broadcast %cst_18 : f32 to vector<8x128xf32>
    %59 = arith.addf %58, %57 : vector<8x128xf32>
    %60 = arith.divf %58, %59 : vector<8x128xf32>
    %61 = vector.extract_strided_slice %48 {offsets = [0, 256], sizes = [8, 128], strides = [1, 1]} : vector<8x512xf32> to vector<8x128xf32>
    %62 = math.tanh %61 : vector<8x128xf32>
    %63 = vector.extract_strided_slice %48 {offsets = [0, 384], sizes = [8, 128], strides = [1, 1]} : vector<8x512xf32> to vector<8x128xf32>
    %64 = arith.negf %63 : vector<8x128xf32>
    %65 = math.exp %64 : vector<8x128xf32>
    %cst_19 = arith.constant 1.000000e+00 : f32
    %66 = vector.broadcast %cst_19 : f32 to vector<8x128xf32>
    %67 = arith.addf %66, %65 : vector<8x128xf32>
    %68 = arith.divf %66, %67 : vector<8x128xf32>
    %69 = arith.mulf %60, %42 : vector<8x128xf32>
    %70 = arith.mulf %54, %62 : vector<8x128xf32>
    %71 = arith.addf %69, %70 : vector<8x128xf32>
    %72 = math.tanh %71 : vector<8x128xf32>
    %73 = arith.mulf %68, %72 : vector<8x128xf32>
    %74 = vector.extract_strided_slice %10 {offsets = [2, 0, 0], sizes = [1, 8, 512], strides = [1, 1, 1]} : vector<8x8x512xf32> to vector<1x8x512xf32>
    %75 = vector.shape_cast %74 : vector<1x8x512xf32> to vector<8x512xf32>
    %cst_20 = arith.constant dense<0.000000e+00> : vector<8x512xf32>
    %76 = tpu.matmul %73, %11, %cst_20 {dimension_numbers = #tpu.dot_dimension_numbers<[1], [0], [0], [1], [0, 0, 1, 1], [], []>} : vector<8x128xf32>, vector<128x512xf32>, vector<8x512xf32> -> vector<8x512xf32>
    %77 = arith.addf %75, %76 : vector<8x512xf32>
    %78 = vector.extract_strided_slice %77 {offsets = [0, 0], sizes = [8, 128], strides = [1, 1]} : vector<8x512xf32> to vector<8x128xf32>
    %79 = arith.negf %78 : vector<8x128xf32>
    %80 = math.exp %79 : vector<8x128xf32>
    %cst_21 = arith.constant 1.000000e+00 : f32
    %81 = vector.broadcast %cst_21 : f32 to vector<8x128xf32>
    %82 = arith.addf %81, %80 : vector<8x128xf32>
    %83 = arith.divf %81, %82 : vector<8x128xf32>
    %84 = vector.extract_strided_slice %77 {offsets = [0, 128], sizes = [8, 128], strides = [1, 1]} : vector<8x512xf32> to vector<8x128xf32>
    %85 = arith.negf %84 : vector<8x128xf32>
    %86 = math.exp %85 : vector<8x128xf32>
    %cst_22 = arith.constant 1.000000e+00 : f32
    %87 = vector.broadcast %cst_22 : f32 to vector<8x128xf32>
    %88 = arith.addf %87, %86 : vector<8x128xf32>
    %89 = arith.divf %87, %88 : vector<8x128xf32>
    %90 = vector.extract_strided_slice %77 {offsets = [0, 256], sizes = [8, 128], strides = [1, 1]} : vector<8x512xf32> to vector<8x128xf32>
    %91 = math.tanh %90 : vector<8x128xf32>
    %92 = vector.extract_strided_slice %77 {offsets = [0, 384], sizes = [8, 128], strides = [1, 1]} : vector<8x512xf32> to vector<8x128xf32>
    %93 = arith.negf %92 : vector<8x128xf32>
    %94 = math.exp %93 : vector<8x128xf32>
    %cst_23 = arith.constant 1.000000e+00 : f32
    %95 = vector.broadcast %cst_23 : f32 to vector<8x128xf32>
    %96 = arith.addf %95, %94 : vector<8x128xf32>
    %97 = arith.divf %95, %96 : vector<8x128xf32>
    %98 = arith.mulf %89, %71 : vector<8x128xf32>
    %99 = arith.mulf %83, %91 : vector<8x128xf32>
    %100 = arith.addf %98, %99 : vector<8x128xf32>
    %101 = math.tanh %100 : vector<8x128xf32>
    %102 = arith.mulf %97, %101 : vector<8x128xf32>
    %103 = vector.extract_strided_slice %10 {offsets = [3, 0, 0], sizes = [1, 8, 512], strides = [1, 1, 1]} : vector<8x8x512xf32> to vector<1x8x512xf32>
    %104 = vector.shape_cast %103 : vector<1x8x512xf32> to vector<8x512xf32>
    %cst_24 = arith.constant dense<0.000000e+00> : vector<8x512xf32>
    %105 = tpu.matmul %102, %11, %cst_24 {dimension_numbers = #tpu.dot_dimension_numbers<[1], [0], [0], [1], [0, 0, 1, 1], [], []>} : vector<8x128xf32>, vector<128x512xf32>, vector<8x512xf32> -> vector<8x512xf32>
    %106 = arith.addf %104, %105 : vector<8x512xf32>
    %107 = vector.extract_strided_slice %106 {offsets = [0, 0], sizes = [8, 128], strides = [1, 1]} : vector<8x512xf32> to vector<8x128xf32>
    %108 = arith.negf %107 : vector<8x128xf32>
    %109 = math.exp %108 : vector<8x128xf32>
    %cst_25 = arith.constant 1.000000e+00 : f32
    %110 = vector.broadcast %cst_25 : f32 to vector<8x128xf32>
    %111 = arith.addf %110, %109 : vector<8x128xf32>
    %112 = arith.divf %110, %111 : vector<8x128xf32>
    %113 = vector.extract_strided_slice %106 {offsets = [0, 128], sizes = [8, 128], strides = [1, 1]} : vector<8x512xf32> to vector<8x128xf32>
    %114 = arith.negf %113 : vector<8x128xf32>
    %115 = math.exp %114 : vector<8x128xf32>
    %cst_26 = arith.constant 1.000000e+00 : f32
    %116 = vector.broadcast %cst_26 : f32 to vector<8x128xf32>
    %117 = arith.addf %116, %115 : vector<8x128xf32>
    %118 = arith.divf %116, %117 : vector<8x128xf32>
    %119 = vector.extract_strided_slice %106 {offsets = [0, 256], sizes = [8, 128], strides = [1, 1]} : vector<8x512xf32> to vector<8x128xf32>
    %120 = math.tanh %119 : vector<8x128xf32>
    %121 = vector.extract_strided_slice %106 {offsets = [0, 384], sizes = [8, 128], strides = [1, 1]} : vector<8x512xf32> to vector<8x128xf32>
    %122 = arith.negf %121 : vector<8x128xf32>
    %123 = math.exp %122 : vector<8x128xf32>
    %cst_27 = arith.constant 1.000000e+00 : f32
    %124 = vector.broadcast %cst_27 : f32 to vector<8x128xf32>
    %125 = arith.addf %124, %123 : vector<8x128xf32>
    %126 = arith.divf %124, %125 : vector<8x128xf32>
    %127 = arith.mulf %118, %100 : vector<8x128xf32>
    %128 = arith.mulf %112, %120 : vector<8x128xf32>
    %129 = arith.addf %127, %128 : vector<8x128xf32>
    %130 = math.tanh %129 : vector<8x128xf32>
    %131 = arith.mulf %126, %130 : vector<8x128xf32>
    %132 = vector.extract_strided_slice %10 {offsets = [4, 0, 0], sizes = [1, 8, 512], strides = [1, 1, 1]} : vector<8x8x512xf32> to vector<1x8x512xf32>
    %133 = vector.shape_cast %132 : vector<1x8x512xf32> to vector<8x512xf32>
    %cst_28 = arith.constant dense<0.000000e+00> : vector<8x512xf32>
    %134 = tpu.matmul %131, %11, %cst_28 {dimension_numbers = #tpu.dot_dimension_numbers<[1], [0], [0], [1], [0, 0, 1, 1], [], []>} : vector<8x128xf32>, vector<128x512xf32>, vector<8x512xf32> -> vector<8x512xf32>
    %135 = arith.addf %133, %134 : vector<8x512xf32>
    %136 = vector.extract_strided_slice %135 {offsets = [0, 0], sizes = [8, 128], strides = [1, 1]} : vector<8x512xf32> to vector<8x128xf32>
    %137 = arith.negf %136 : vector<8x128xf32>
    %138 = math.exp %137 : vector<8x128xf32>
    %cst_29 = arith.constant 1.000000e+00 : f32
    %139 = vector.broadcast %cst_29 : f32 to vector<8x128xf32>
    %140 = arith.addf %139, %138 : vector<8x128xf32>
    %141 = arith.divf %139, %140 : vector<8x128xf32>
    %142 = vector.extract_strided_slice %135 {offsets = [0, 128], sizes = [8, 128], strides = [1, 1]} : vector<8x512xf32> to vector<8x128xf32>
    %143 = arith.negf %142 : vector<8x128xf32>
    %144 = math.exp %143 : vector<8x128xf32>
    %cst_30 = arith.constant 1.000000e+00 : f32
    %145 = vector.broadcast %cst_30 : f32 to vector<8x128xf32>
    %146 = arith.addf %145, %144 : vector<8x128xf32>
    %147 = arith.divf %145, %146 : vector<8x128xf32>
    %148 = vector.extract_strided_slice %135 {offsets = [0, 256], sizes = [8, 128], strides = [1, 1]} : vector<8x512xf32> to vector<8x128xf32>
    %149 = math.tanh %148 : vector<8x128xf32>
    %150 = vector.extract_strided_slice %135 {offsets = [0, 384], sizes = [8, 128], strides = [1, 1]} : vector<8x512xf32> to vector<8x128xf32>
    %151 = arith.negf %150 : vector<8x128xf32>
    %152 = math.exp %151 : vector<8x128xf32>
    %cst_31 = arith.constant 1.000000e+00 : f32
    %153 = vector.broadcast %cst_31 : f32 to vector<8x128xf32>
    %154 = arith.addf %153, %152 : vector<8x128xf32>
    %155 = arith.divf %153, %154 : vector<8x128xf32>
    %156 = arith.mulf %147, %129 : vector<8x128xf32>
    %157 = arith.mulf %141, %149 : vector<8x128xf32>
    %158 = arith.addf %156, %157 : vector<8x128xf32>
    %159 = math.tanh %158 : vector<8x128xf32>
    %160 = arith.mulf %155, %159 : vector<8x128xf32>
    %161 = vector.extract_strided_slice %10 {offsets = [5, 0, 0], sizes = [1, 8, 512], strides = [1, 1, 1]} : vector<8x8x512xf32> to vector<1x8x512xf32>
    %162 = vector.shape_cast %161 : vector<1x8x512xf32> to vector<8x512xf32>
    %cst_32 = arith.constant dense<0.000000e+00> : vector<8x512xf32>
    %163 = tpu.matmul %160, %11, %cst_32 {dimension_numbers = #tpu.dot_dimension_numbers<[1], [0], [0], [1], [0, 0, 1, 1], [], []>} : vector<8x128xf32>, vector<128x512xf32>, vector<8x512xf32> -> vector<8x512xf32>
    %164 = arith.addf %162, %163 : vector<8x512xf32>
    %165 = vector.extract_strided_slice %164 {offsets = [0, 0], sizes = [8, 128], strides = [1, 1]} : vector<8x512xf32> to vector<8x128xf32>
    %166 = arith.negf %165 : vector<8x128xf32>
    %167 = math.exp %166 : vector<8x128xf32>
    %cst_33 = arith.constant 1.000000e+00 : f32
    %168 = vector.broadcast %cst_33 : f32 to vector<8x128xf32>
    %169 = arith.addf %168, %167 : vector<8x128xf32>
    %170 = arith.divf %168, %169 : vector<8x128xf32>
    %171 = vector.extract_strided_slice %164 {offsets = [0, 128], sizes = [8, 128], strides = [1, 1]} : vector<8x512xf32> to vector<8x128xf32>
    %172 = arith.negf %171 : vector<8x128xf32>
    %173 = math.exp %172 : vector<8x128xf32>
    %cst_34 = arith.constant 1.000000e+00 : f32
    %174 = vector.broadcast %cst_34 : f32 to vector<8x128xf32>
    %175 = arith.addf %174, %173 : vector<8x128xf32>
    %176 = arith.divf %174, %175 : vector<8x128xf32>
    %177 = vector.extract_strided_slice %164 {offsets = [0, 256], sizes = [8, 128], strides = [1, 1]} : vector<8x512xf32> to vector<8x128xf32>
    %178 = math.tanh %177 : vector<8x128xf32>
    %179 = vector.extract_strided_slice %164 {offsets = [0, 384], sizes = [8, 128], strides = [1, 1]} : vector<8x512xf32> to vector<8x128xf32>
    %180 = arith.negf %179 : vector<8x128xf32>
    %181 = math.exp %180 : vector<8x128xf32>
    %cst_35 = arith.constant 1.000000e+00 : f32
    %182 = vector.broadcast %cst_35 : f32 to vector<8x128xf32>
    %183 = arith.addf %182, %181 : vector<8x128xf32>
    %184 = arith.divf %182, %183 : vector<8x128xf32>
    %185 = arith.mulf %176, %158 : vector<8x128xf32>
    %186 = arith.mulf %170, %178 : vector<8x128xf32>
    %187 = arith.addf %185, %186 : vector<8x128xf32>
    %188 = math.tanh %187 : vector<8x128xf32>
    %189 = arith.mulf %184, %188 : vector<8x128xf32>
    %190 = vector.extract_strided_slice %10 {offsets = [6, 0, 0], sizes = [1, 8, 512], strides = [1, 1, 1]} : vector<8x8x512xf32> to vector<1x8x512xf32>
    %191 = vector.shape_cast %190 : vector<1x8x512xf32> to vector<8x512xf32>
    %cst_36 = arith.constant dense<0.000000e+00> : vector<8x512xf32>
    %192 = tpu.matmul %189, %11, %cst_36 {dimension_numbers = #tpu.dot_dimension_numbers<[1], [0], [0], [1], [0, 0, 1, 1], [], []>} : vector<8x128xf32>, vector<128x512xf32>, vector<8x512xf32> -> vector<8x512xf32>
    %193 = arith.addf %191, %192 : vector<8x512xf32>
    %194 = vector.extract_strided_slice %193 {offsets = [0, 0], sizes = [8, 128], strides = [1, 1]} : vector<8x512xf32> to vector<8x128xf32>
    %195 = arith.negf %194 : vector<8x128xf32>
    %196 = math.exp %195 : vector<8x128xf32>
    %cst_37 = arith.constant 1.000000e+00 : f32
    %197 = vector.broadcast %cst_37 : f32 to vector<8x128xf32>
    %198 = arith.addf %197, %196 : vector<8x128xf32>
    %199 = arith.divf %197, %198 : vector<8x128xf32>
    %200 = vector.extract_strided_slice %193 {offsets = [0, 128], sizes = [8, 128], strides = [1, 1]} : vector<8x512xf32> to vector<8x128xf32>
    %201 = arith.negf %200 : vector<8x128xf32>
    %202 = math.exp %201 : vector<8x128xf32>
    %cst_38 = arith.constant 1.000000e+00 : f32
    %203 = vector.broadcast %cst_38 : f32 to vector<8x128xf32>
    %204 = arith.addf %203, %202 : vector<8x128xf32>
    %205 = arith.divf %203, %204 : vector<8x128xf32>
    %206 = vector.extract_strided_slice %193 {offsets = [0, 256], sizes = [8, 128], strides = [1, 1]} : vector<8x512xf32> to vector<8x128xf32>
    %207 = math.tanh %206 : vector<8x128xf32>
    %208 = vector.extract_strided_slice %193 {offsets = [0, 384], sizes = [8, 128], strides = [1, 1]} : vector<8x512xf32> to vector<8x128xf32>
    %209 = arith.negf %208 : vector<8x128xf32>
    %210 = math.exp %209 : vector<8x128xf32>
    %cst_39 = arith.constant 1.000000e+00 : f32
    %211 = vector.broadcast %cst_39 : f32 to vector<8x128xf32>
    %212 = arith.addf %211, %210 : vector<8x128xf32>
    %213 = arith.divf %211, %212 : vector<8x128xf32>
    %214 = arith.mulf %205, %187 : vector<8x128xf32>
    %215 = arith.mulf %199, %207 : vector<8x128xf32>
    %216 = arith.addf %214, %215 : vector<8x128xf32>
    %217 = math.tanh %216 : vector<8x128xf32>
    %218 = arith.mulf %213, %217 : vector<8x128xf32>
    %219 = vector.extract_strided_slice %10 {offsets = [7, 0, 0], sizes = [1, 8, 512], strides = [1, 1, 1]} : vector<8x8x512xf32> to vector<1x8x512xf32>
    %220 = vector.shape_cast %219 : vector<1x8x512xf32> to vector<8x512xf32>
    %cst_40 = arith.constant dense<0.000000e+00> : vector<8x512xf32>
    %221 = tpu.matmul %218, %11, %cst_40 {dimension_numbers = #tpu.dot_dimension_numbers<[1], [0], [0], [1], [0, 0, 1, 1], [], []>} : vector<8x128xf32>, vector<128x512xf32>, vector<8x512xf32> -> vector<8x512xf32>
    %222 = arith.addf %220, %221 : vector<8x512xf32>
    %223 = vector.extract_strided_slice %222 {offsets = [0, 0], sizes = [8, 128], strides = [1, 1]} : vector<8x512xf32> to vector<8x128xf32>
    %224 = arith.negf %223 : vector<8x128xf32>
    %225 = math.exp %224 : vector<8x128xf32>
    %cst_41 = arith.constant 1.000000e+00 : f32
    %226 = vector.broadcast %cst_41 : f32 to vector<8x128xf32>
    %227 = arith.addf %226, %225 : vector<8x128xf32>
    %228 = arith.divf %226, %227 : vector<8x128xf32>
    %229 = vector.extract_strided_slice %222 {offsets = [0, 128], sizes = [8, 128], strides = [1, 1]} : vector<8x512xf32> to vector<8x128xf32>
    %230 = arith.negf %229 : vector<8x128xf32>
    %231 = math.exp %230 : vector<8x128xf32>
    %cst_42 = arith.constant 1.000000e+00 : f32
    %232 = vector.broadcast %cst_42 : f32 to vector<8x128xf32>
    %233 = arith.addf %232, %231 : vector<8x128xf32>
    %234 = arith.divf %232, %233 : vector<8x128xf32>
    %235 = vector.extract_strided_slice %222 {offsets = [0, 256], sizes = [8, 128], strides = [1, 1]} : vector<8x512xf32> to vector<8x128xf32>
    %236 = math.tanh %235 : vector<8x128xf32>
    %237 = vector.extract_strided_slice %222 {offsets = [0, 384], sizes = [8, 128], strides = [1, 1]} : vector<8x512xf32> to vector<8x128xf32>
    %238 = arith.negf %237 : vector<8x128xf32>
    %239 = math.exp %238 : vector<8x128xf32>
    %cst_43 = arith.constant 1.000000e+00 : f32
    %240 = vector.broadcast %cst_43 : f32 to vector<8x128xf32>
    %241 = arith.addf %240, %239 : vector<8x128xf32>
    %242 = arith.divf %240, %241 : vector<8x128xf32>
    %243 = arith.mulf %234, %216 : vector<8x128xf32>
    %244 = arith.mulf %228, %236 : vector<8x128xf32>
    %245 = arith.addf %243, %244 : vector<8x128xf32>
    %246 = math.tanh %245 : vector<8x128xf32>
    %247 = arith.mulf %242, %246 : vector<8x128xf32>
    %c0_44 = arith.constant 0 : index
    %c0_45 = arith.constant 0 : index
    %c0_46 = arith.constant 0 : index
    %248 = vector.load %arg12[%c0_44, %c0_45, %c0_46] : memref<2x8x128xf32, #tpu.memory_space<vmem>>, vector<1x8x128xf32>
    %249 = vector.shape_cast %248 : vector<1x8x128xf32> to vector<8x128xf32>
    %250 = vector.shape_cast %247 : vector<8x128xf32> to vector<1x8x128xf32>
    tpu.vector_store %arg12[%c0_44, %c0_45, %c0_46], %250 {strides = array<i32>} : memref<2x8x128xf32, #tpu.memory_space<vmem>>, vector<1x8x128xf32>,
    %c0_47 = arith.constant 0 : index
    %c0_48 = arith.constant 0 : index
    %c0_49 = arith.constant 0 : index
    %251 = vector.load %arg13[%c0_47, %c0_48, %c0_49] : memref<2x8x128xf32, #tpu.memory_space<vmem>>, vector<1x8x128xf32>
    %252 = vector.shape_cast %251 : vector<1x8x128xf32> to vector<8x128xf32>
    %253 = vector.shape_cast %245 : vector<8x128xf32> to vector<1x8x128xf32>
    tpu.vector_store %arg13[%c0_47, %c0_48, %c0_49], %253 {strides = array<i32>} : memref<2x8x128xf32, #tpu.memory_space<vmem>>, vector<1x8x128xf32>,
    %254 = tpu.concatenate %44, %73, %102, %131, %160, %189, %218, %247 in 0 : vector<8x128xf32>, vector<8x128xf32>, vector<8x128xf32>, vector<8x128xf32>, vector<8x128xf32>, vector<8x128xf32>, vector<8x128xf32>, vector<8x128xf32> -> vector<64x128xf32>
    %c0_50 = arith.constant 0 : index
    %c0_51 = arith.constant 0 : index
    %255 = vector.load %arg4[%c0_50, %c0_51] : memref<128x512xf32, #tpu.memory_space<vmem>>, vector<128x512xf32>
    %cst_52 = arith.constant dense<0.000000e+00> : vector<64x512xf32>
    %256 = tpu.matmul %254, %255, %cst_52 {dimension_numbers = #tpu.dot_dimension_numbers<[1], [0], [0], [1], [0, 0, 1, 1], [], []>} : vector<64x128xf32>, vector<128x512xf32>, vector<64x512xf32> -> vector<64x512xf32>
    %c0_53 = arith.constant 0 : index
    %c0_54 = arith.constant 0 : index
    %257 = vector.load %arg6[%c0_53, %c0_54] : memref<1x512xf32, #tpu.memory_space<vmem>>, vector<1x512xf32>
    %258 = vector.broadcast %257 : vector<1x512xf32> to vector<64x512xf32>
    %259 = arith.addf %256, %258 : vector<64x512xf32>
    %260 = vector.shape_cast %259 : vector<64x512xf32> to vector<8x8x512xf32>
    %c0_55 = arith.constant 0 : index
    %c0_56 = arith.constant 0 : index
    %261 = vector.load %arg5[%c0_55, %c0_56] : memref<128x512xf32, #tpu.memory_space<vmem>>, vector<128x512xf32>
    %c1 = arith.constant 1 : index
    %c0_57 = arith.constant 0 : index
    %c0_58 = arith.constant 0 : index
    %262 = vector.load %arg9[%c1, %c0_57, %c0_58] : memref<2x8x128xf32, #tpu.memory_space<vmem>>, vector<1x8x128xf32>
    %263 = vector.shape_cast %262 : vector<1x8x128xf32> to vector<8x128xf32>
    %c1_59 = arith.constant 1 : index
    %c0_60 = arith.constant 0 : index
    %c0_61 = arith.constant 0 : index
    %264 = vector.load %arg10[%c1_59, %c0_60, %c0_61] : memref<2x8x128xf32, #tpu.memory_space<vmem>>, vector<1x8x128xf32>
    %265 = vector.shape_cast %264 : vector<1x8x128xf32> to vector<8x128xf32>
    %266 = vector.extract_strided_slice %260 {offsets = [0, 0, 0], sizes = [1, 8, 512], strides = [1, 1, 1]} : vector<8x8x512xf32> to vector<1x8x512xf32>
    %267 = vector.shape_cast %266 : vector<1x8x512xf32> to vector<8x512xf32>
    %cst_62 = arith.constant dense<0.000000e+00> : vector<8x512xf32>
    %268 = tpu.matmul %263, %261, %cst_62 {dimension_numbers = #tpu.dot_dimension_numbers<[1], [0], [0], [1], [0, 0, 1, 1], [], []>} : vector<8x128xf32>, vector<128x512xf32>, vector<8x512xf32> -> vector<8x512xf32>
    %269 = arith.addf %267, %268 : vector<8x512xf32>
    %270 = vector.extract_strided_slice %269 {offsets = [0, 0], sizes = [8, 128], strides = [1, 1]} : vector<8x512xf32> to vector<8x128xf32>
    %271 = arith.negf %270 : vector<8x128xf32>
    %272 = math.exp %271 : vector<8x128xf32>
    %cst_63 = arith.constant 1.000000e+00 : f32
    %273 = vector.broadcast %cst_63 : f32 to vector<8x128xf32>
    %274 = arith.addf %273, %272 : vector<8x128xf32>
    %275 = arith.divf %273, %274 : vector<8x128xf32>
    %276 = vector.extract_strided_slice %269 {offsets = [0, 128], sizes = [8, 128], strides = [1, 1]} : vector<8x512xf32> to vector<8x128xf32>
    %277 = arith.negf %276 : vector<8x128xf32>
    %278 = math.exp %277 : vector<8x128xf32>
    %cst_64 = arith.constant 1.000000e+00 : f32
    %279 = vector.broadcast %cst_64 : f32 to vector<8x128xf32>
    %280 = arith.addf %279, %278 : vector<8x128xf32>
    %281 = arith.divf %279, %280 : vector<8x128xf32>
    %282 = vector.extract_strided_slice %269 {offsets = [0, 256], sizes = [8, 128], strides = [1, 1]} : vector<8x512xf32> to vector<8x128xf32>
    %283 = math.tanh %282 : vector<8x128xf32>
    %284 = vector.extract_strided_slice %269 {offsets = [0, 384], sizes = [8, 128], strides = [1, 1]} : vector<8x512xf32> to vector<8x128xf32>
    %285 = arith.negf %284 : vector<8x128xf32>
    %286 = math.exp %285 : vector<8x128xf32>
    %cst_65 = arith.constant 1.000000e+00 : f32
    %287 = vector.broadcast %cst_65 : f32 to vector<8x128xf32>
    %288 = arith.addf %287, %286 : vector<8x128xf32>
    %289 = arith.divf %287, %288 : vector<8x128xf32>
    %290 = arith.mulf %281, %265 : vector<8x128xf32>
    %291 = arith.mulf %275, %283 : vector<8x128xf32>
    %292 = arith.addf %290, %291 : vector<8x128xf32>
    %293 = math.tanh %292 : vector<8x128xf32>
    %294 = arith.mulf %289, %293 : vector<8x128xf32>
    %295 = vector.extract_strided_slice %260 {offsets = [1, 0, 0], sizes = [1, 8, 512], strides = [1, 1, 1]} : vector<8x8x512xf32> to vector<1x8x512xf32>
    %296 = vector.shape_cast %295 : vector<1x8x512xf32> to vector<8x512xf32>
    %cst_66 = arith.constant dense<0.000000e+00> : vector<8x512xf32>
    %297 = tpu.matmul %294, %261, %cst_66 {dimension_numbers = #tpu.dot_dimension_numbers<[1], [0], [0], [1], [0, 0, 1, 1], [], []>} : vector<8x128xf32>, vector<128x512xf32>, vector<8x512xf32> -> vector<8x512xf32>
    %298 = arith.addf %296, %297 : vector<8x512xf32>
    %299 = vector.extract_strided_slice %298 {offsets = [0, 0], sizes = [8, 128], strides = [1, 1]} : vector<8x512xf32> to vector<8x128xf32>
    %300 = arith.negf %299 : vector<8x128xf32>
    %301 = math.exp %300 : vector<8x128xf32>
    %cst_67 = arith.constant 1.000000e+00 : f32
    %302 = vector.broadcast %cst_67 : f32 to vector<8x128xf32>
    %303 = arith.addf %302, %301 : vector<8x128xf32>
    %304 = arith.divf %302, %303 : vector<8x128xf32>
    %305 = vector.extract_strided_slice %298 {offsets = [0, 128], sizes = [8, 128], strides = [1, 1]} : vector<8x512xf32> to vector<8x128xf32>
    %306 = arith.negf %305 : vector<8x128xf32>
    %307 = math.exp %306 : vector<8x128xf32>
    %cst_68 = arith.constant 1.000000e+00 : f32
    %308 = vector.broadcast %cst_68 : f32 to vector<8x128xf32>
    %309 = arith.addf %308, %307 : vector<8x128xf32>
    %310 = arith.divf %308, %309 : vector<8x128xf32>
    %311 = vector.extract_strided_slice %298 {offsets = [0, 256], sizes = [8, 128], strides = [1, 1]} : vector<8x512xf32> to vector<8x128xf32>
    %312 = math.tanh %311 : vector<8x128xf32>
    %313 = vector.extract_strided_slice %298 {offsets = [0, 384], sizes = [8, 128], strides = [1, 1]} : vector<8x512xf32> to vector<8x128xf32>
    %314 = arith.negf %313 : vector<8x128xf32>
    %315 = math.exp %314 : vector<8x128xf32>
    %cst_69 = arith.constant 1.000000e+00 : f32
    %316 = vector.broadcast %cst_69 : f32 to vector<8x128xf32>
    %317 = arith.addf %316, %315 : vector<8x128xf32>
    %318 = arith.divf %316, %317 : vector<8x128xf32>
    %319 = arith.mulf %310, %292 : vector<8x128xf32>
    %320 = arith.mulf %304, %312 : vector<8x128xf32>
    %321 = arith.addf %319, %320 : vector<8x128xf32>
    %322 = math.tanh %321 : vector<8x128xf32>
    %323 = arith.mulf %318, %322 : vector<8x128xf32>
    %324 = vector.extract_strided_slice %260 {offsets = [2, 0, 0], sizes = [1, 8, 512], strides = [1, 1, 1]} : vector<8x8x512xf32> to vector<1x8x512xf32>
    %325 = vector.shape_cast %324 : vector<1x8x512xf32> to vector<8x512xf32>
    %cst_70 = arith.constant dense<0.000000e+00> : vector<8x512xf32>
    %326 = tpu.matmul %323, %261, %cst_70 {dimension_numbers = #tpu.dot_dimension_numbers<[1], [0], [0], [1], [0, 0, 1, 1], [], []>} : vector<8x128xf32>, vector<128x512xf32>, vector<8x512xf32> -> vector<8x512xf32>
    %327 = arith.addf %325, %326 : vector<8x512xf32>
    %328 = vector.extract_strided_slice %327 {offsets = [0, 0], sizes = [8, 128], strides = [1, 1]} : vector<8x512xf32> to vector<8x128xf32>
    %329 = arith.negf %328 : vector<8x128xf32>
    %330 = math.exp %329 : vector<8x128xf32>
    %cst_71 = arith.constant 1.000000e+00 : f32
    %331 = vector.broadcast %cst_71 : f32 to vector<8x128xf32>
    %332 = arith.addf %331, %330 : vector<8x128xf32>
    %333 = arith.divf %331, %332 : vector<8x128xf32>
    %334 = vector.extract_strided_slice %327 {offsets = [0, 128], sizes = [8, 128], strides = [1, 1]} : vector<8x512xf32> to vector<8x128xf32>
    %335 = arith.negf %334 : vector<8x128xf32>
    %336 = math.exp %335 : vector<8x128xf32>
    %cst_72 = arith.constant 1.000000e+00 : f32
    %337 = vector.broadcast %cst_72 : f32 to vector<8x128xf32>
    %338 = arith.addf %337, %336 : vector<8x128xf32>
    %339 = arith.divf %337, %338 : vector<8x128xf32>
    %340 = vector.extract_strided_slice %327 {offsets = [0, 256], sizes = [8, 128], strides = [1, 1]} : vector<8x512xf32> to vector<8x128xf32>
    %341 = math.tanh %340 : vector<8x128xf32>
    %342 = vector.extract_strided_slice %327 {offsets = [0, 384], sizes = [8, 128], strides = [1, 1]} : vector<8x512xf32> to vector<8x128xf32>
    %343 = arith.negf %342 : vector<8x128xf32>
    %344 = math.exp %343 : vector<8x128xf32>
    %cst_73 = arith.constant 1.000000e+00 : f32
    %345 = vector.broadcast %cst_73 : f32 to vector<8x128xf32>
    %346 = arith.addf %345, %344 : vector<8x128xf32>
    %347 = arith.divf %345, %346 : vector<8x128xf32>
    %348 = arith.mulf %339, %321 : vector<8x128xf32>
    %349 = arith.mulf %333, %341 : vector<8x128xf32>
    %350 = arith.addf %348, %349 : vector<8x128xf32>
    %351 = math.tanh %350 : vector<8x128xf32>
    %352 = arith.mulf %347, %351 : vector<8x128xf32>
    %353 = vector.extract_strided_slice %260 {offsets = [3, 0, 0], sizes = [1, 8, 512], strides = [1, 1, 1]} : vector<8x8x512xf32> to vector<1x8x512xf32>
    %354 = vector.shape_cast %353 : vector<1x8x512xf32> to vector<8x512xf32>
    %cst_74 = arith.constant dense<0.000000e+00> : vector<8x512xf32>
    %355 = tpu.matmul %352, %261, %cst_74 {dimension_numbers = #tpu.dot_dimension_numbers<[1], [0], [0], [1], [0, 0, 1, 1], [], []>} : vector<8x128xf32>, vector<128x512xf32>, vector<8x512xf32> -> vector<8x512xf32>
    %356 = arith.addf %354, %355 : vector<8x512xf32>
    %357 = vector.extract_strided_slice %356 {offsets = [0, 0], sizes = [8, 128], strides = [1, 1]} : vector<8x512xf32> to vector<8x128xf32>
    %358 = arith.negf %357 : vector<8x128xf32>
    %359 = math.exp %358 : vector<8x128xf32>
    %cst_75 = arith.constant 1.000000e+00 : f32
    %360 = vector.broadcast %cst_75 : f32 to vector<8x128xf32>
    %361 = arith.addf %360, %359 : vector<8x128xf32>
    %362 = arith.divf %360, %361 : vector<8x128xf32>
    %363 = vector.extract_strided_slice %356 {offsets = [0, 128], sizes = [8, 128], strides = [1, 1]} : vector<8x512xf32> to vector<8x128xf32>
    %364 = arith.negf %363 : vector<8x128xf32>
    %365 = math.exp %364 : vector<8x128xf32>
    %cst_76 = arith.constant 1.000000e+00 : f32
    %366 = vector.broadcast %cst_76 : f32 to vector<8x128xf32>
    %367 = arith.addf %366, %365 : vector<8x128xf32>
    %368 = arith.divf %366, %367 : vector<8x128xf32>
    %369 = vector.extract_strided_slice %356 {offsets = [0, 256], sizes = [8, 128], strides = [1, 1]} : vector<8x512xf32> to vector<8x128xf32>
    %370 = math.tanh %369 : vector<8x128xf32>
    %371 = vector.extract_strided_slice %356 {offsets = [0, 384], sizes = [8, 128], strides = [1, 1]} : vector<8x512xf32> to vector<8x128xf32>
    %372 = arith.negf %371 : vector<8x128xf32>
    %373 = math.exp %372 : vector<8x128xf32>
    %cst_77 = arith.constant 1.000000e+00 : f32
    %374 = vector.broadcast %cst_77 : f32 to vector<8x128xf32>
    %375 = arith.addf %374, %373 : vector<8x128xf32>
    %376 = arith.divf %374, %375 : vector<8x128xf32>
    %377 = arith.mulf %368, %350 : vector<8x128xf32>
    %378 = arith.mulf %362, %370 : vector<8x128xf32>
    %379 = arith.addf %377, %378 : vector<8x128xf32>
    %380 = math.tanh %379 : vector<8x128xf32>
    %381 = arith.mulf %376, %380 : vector<8x128xf32>
    %382 = vector.extract_strided_slice %260 {offsets = [4, 0, 0], sizes = [1, 8, 512], strides = [1, 1, 1]} : vector<8x8x512xf32> to vector<1x8x512xf32>
    %383 = vector.shape_cast %382 : vector<1x8x512xf32> to vector<8x512xf32>
    %cst_78 = arith.constant dense<0.000000e+00> : vector<8x512xf32>
    %384 = tpu.matmul %381, %261, %cst_78 {dimension_numbers = #tpu.dot_dimension_numbers<[1], [0], [0], [1], [0, 0, 1, 1], [], []>} : vector<8x128xf32>, vector<128x512xf32>, vector<8x512xf32> -> vector<8x512xf32>
    %385 = arith.addf %383, %384 : vector<8x512xf32>
    %386 = vector.extract_strided_slice %385 {offsets = [0, 0], sizes = [8, 128], strides = [1, 1]} : vector<8x512xf32> to vector<8x128xf32>
    %387 = arith.negf %386 : vector<8x128xf32>
    %388 = math.exp %387 : vector<8x128xf32>
    %cst_79 = arith.constant 1.000000e+00 : f32
    %389 = vector.broadcast %cst_79 : f32 to vector<8x128xf32>
    %390 = arith.addf %389, %388 : vector<8x128xf32>
    %391 = arith.divf %389, %390 : vector<8x128xf32>
    %392 = vector.extract_strided_slice %385 {offsets = [0, 128], sizes = [8, 128], strides = [1, 1]} : vector<8x512xf32> to vector<8x128xf32>
    %393 = arith.negf %392 : vector<8x128xf32>
    %394 = math.exp %393 : vector<8x128xf32>
    %cst_80 = arith.constant 1.000000e+00 : f32
    %395 = vector.broadcast %cst_80 : f32 to vector<8x128xf32>
    %396 = arith.addf %395, %394 : vector<8x128xf32>
    %397 = arith.divf %395, %396 : vector<8x128xf32>
    %398 = vector.extract_strided_slice %385 {offsets = [0, 256], sizes = [8, 128], strides = [1, 1]} : vector<8x512xf32> to vector<8x128xf32>
    %399 = math.tanh %398 : vector<8x128xf32>
    %400 = vector.extract_strided_slice %385 {offsets = [0, 384], sizes = [8, 128], strides = [1, 1]} : vector<8x512xf32> to vector<8x128xf32>
    %401 = arith.negf %400 : vector<8x128xf32>
    %402 = math.exp %401 : vector<8x128xf32>
    %cst_81 = arith.constant 1.000000e+00 : f32
    %403 = vector.broadcast %cst_81 : f32 to vector<8x128xf32>
    %404 = arith.addf %403, %402 : vector<8x128xf32>
    %405 = arith.divf %403, %404 : vector<8x128xf32>
    %406 = arith.mulf %397, %379 : vector<8x128xf32>
    %407 = arith.mulf %391, %399 : vector<8x128xf32>
    %408 = arith.addf %406, %407 : vector<8x128xf32>
    %409 = math.tanh %408 : vector<8x128xf32>
    %410 = arith.mulf %405, %409 : vector<8x128xf32>
    %411 = vector.extract_strided_slice %260 {offsets = [5, 0, 0], sizes = [1, 8, 512], strides = [1, 1, 1]} : vector<8x8x512xf32> to vector<1x8x512xf32>
    %412 = vector.shape_cast %411 : vector<1x8x512xf32> to vector<8x512xf32>
    %cst_82 = arith.constant dense<0.000000e+00> : vector<8x512xf32>
    %413 = tpu.matmul %410, %261, %cst_82 {dimension_numbers = #tpu.dot_dimension_numbers<[1], [0], [0], [1], [0, 0, 1, 1], [], []>} : vector<8x128xf32>, vector<128x512xf32>, vector<8x512xf32> -> vector<8x512xf32>
    %414 = arith.addf %412, %413 : vector<8x512xf32>
    %415 = vector.extract_strided_slice %414 {offsets = [0, 0], sizes = [8, 128], strides = [1, 1]} : vector<8x512xf32> to vector<8x128xf32>
    %416 = arith.negf %415 : vector<8x128xf32>
    %417 = math.exp %416 : vector<8x128xf32>
    %cst_83 = arith.constant 1.000000e+00 : f32
    %418 = vector.broadcast %cst_83 : f32 to vector<8x128xf32>
    %419 = arith.addf %418, %417 : vector<8x128xf32>
    %420 = arith.divf %418, %419 : vector<8x128xf32>
    %421 = vector.extract_strided_slice %414 {offsets = [0, 128], sizes = [8, 128], strides = [1, 1]} : vector<8x512xf32> to vector<8x128xf32>
    %422 = arith.negf %421 : vector<8x128xf32>
    %423 = math.exp %422 : vector<8x128xf32>
    %cst_84 = arith.constant 1.000000e+00 : f32
    %424 = vector.broadcast %cst_84 : f32 to vector<8x128xf32>
    %425 = arith.addf %424, %423 : vector<8x128xf32>
    %426 = arith.divf %424, %425 : vector<8x128xf32>
    %427 = vector.extract_strided_slice %414 {offsets = [0, 256], sizes = [8, 128], strides = [1, 1]} : vector<8x512xf32> to vector<8x128xf32>
    %428 = math.tanh %427 : vector<8x128xf32>
    %429 = vector.extract_strided_slice %414 {offsets = [0, 384], sizes = [8, 128], strides = [1, 1]} : vector<8x512xf32> to vector<8x128xf32>
    %430 = arith.negf %429 : vector<8x128xf32>
    %431 = math.exp %430 : vector<8x128xf32>
    %cst_85 = arith.constant 1.000000e+00 : f32
    %432 = vector.broadcast %cst_85 : f32 to vector<8x128xf32>
    %433 = arith.addf %432, %431 : vector<8x128xf32>
    %434 = arith.divf %432, %433 : vector<8x128xf32>
    %435 = arith.mulf %426, %408 : vector<8x128xf32>
    %436 = arith.mulf %420, %428 : vector<8x128xf32>
    %437 = arith.addf %435, %436 : vector<8x128xf32>
    %438 = math.tanh %437 : vector<8x128xf32>
    %439 = arith.mulf %434, %438 : vector<8x128xf32>
    %440 = vector.extract_strided_slice %260 {offsets = [6, 0, 0], sizes = [1, 8, 512], strides = [1, 1, 1]} : vector<8x8x512xf32> to vector<1x8x512xf32>
    %441 = vector.shape_cast %440 : vector<1x8x512xf32> to vector<8x512xf32>
    %cst_86 = arith.constant dense<0.000000e+00> : vector<8x512xf32>
    %442 = tpu.matmul %439, %261, %cst_86 {dimension_numbers = #tpu.dot_dimension_numbers<[1], [0], [0], [1], [0, 0, 1, 1], [], []>} : vector<8x128xf32>, vector<128x512xf32>, vector<8x512xf32> -> vector<8x512xf32>
    %443 = arith.addf %441, %442 : vector<8x512xf32>
    %444 = vector.extract_strided_slice %443 {offsets = [0, 0], sizes = [8, 128], strides = [1, 1]} : vector<8x512xf32> to vector<8x128xf32>
    %445 = arith.negf %444 : vector<8x128xf32>
    %446 = math.exp %445 : vector<8x128xf32>
    %cst_87 = arith.constant 1.000000e+00 : f32
    %447 = vector.broadcast %cst_87 : f32 to vector<8x128xf32>
    %448 = arith.addf %447, %446 : vector<8x128xf32>
    %449 = arith.divf %447, %448 : vector<8x128xf32>
    %450 = vector.extract_strided_slice %443 {offsets = [0, 128], sizes = [8, 128], strides = [1, 1]} : vector<8x512xf32> to vector<8x128xf32>
    %451 = arith.negf %450 : vector<8x128xf32>
    %452 = math.exp %451 : vector<8x128xf32>
    %cst_88 = arith.constant 1.000000e+00 : f32
    %453 = vector.broadcast %cst_88 : f32 to vector<8x128xf32>
    %454 = arith.addf %453, %452 : vector<8x128xf32>
    %455 = arith.divf %453, %454 : vector<8x128xf32>
    %456 = vector.extract_strided_slice %443 {offsets = [0, 256], sizes = [8, 128], strides = [1, 1]} : vector<8x512xf32> to vector<8x128xf32>
    %457 = math.tanh %456 : vector<8x128xf32>
    %458 = vector.extract_strided_slice %443 {offsets = [0, 384], sizes = [8, 128], strides = [1, 1]} : vector<8x512xf32> to vector<8x128xf32>
    %459 = arith.negf %458 : vector<8x128xf32>
    %460 = math.exp %459 : vector<8x128xf32>
    %cst_89 = arith.constant 1.000000e+00 : f32
    %461 = vector.broadcast %cst_89 : f32 to vector<8x128xf32>
    %462 = arith.addf %461, %460 : vector<8x128xf32>
    %463 = arith.divf %461, %462 : vector<8x128xf32>
    %464 = arith.mulf %455, %437 : vector<8x128xf32>
    %465 = arith.mulf %449, %457 : vector<8x128xf32>
    %466 = arith.addf %464, %465 : vector<8x128xf32>
    %467 = math.tanh %466 : vector<8x128xf32>
    %468 = arith.mulf %463, %467 : vector<8x128xf32>
    %469 = vector.extract_strided_slice %260 {offsets = [7, 0, 0], sizes = [1, 8, 512], strides = [1, 1, 1]} : vector<8x8x512xf32> to vector<1x8x512xf32>
    %470 = vector.shape_cast %469 : vector<1x8x512xf32> to vector<8x512xf32>
    %cst_90 = arith.constant dense<0.000000e+00> : vector<8x512xf32>
    %471 = tpu.matmul %468, %261, %cst_90 {dimension_numbers = #tpu.dot_dimension_numbers<[1], [0], [0], [1], [0, 0, 1, 1], [], []>} : vector<8x128xf32>, vector<128x512xf32>, vector<8x512xf32> -> vector<8x512xf32>
    %472 = arith.addf %470, %471 : vector<8x512xf32>
    %473 = vector.extract_strided_slice %472 {offsets = [0, 0], sizes = [8, 128], strides = [1, 1]} : vector<8x512xf32> to vector<8x128xf32>
    %474 = arith.negf %473 : vector<8x128xf32>
    %475 = math.exp %474 : vector<8x128xf32>
    %cst_91 = arith.constant 1.000000e+00 : f32
    %476 = vector.broadcast %cst_91 : f32 to vector<8x128xf32>
    %477 = arith.addf %476, %475 : vector<8x128xf32>
    %478 = arith.divf %476, %477 : vector<8x128xf32>
    %479 = vector.extract_strided_slice %472 {offsets = [0, 128], sizes = [8, 128], strides = [1, 1]} : vector<8x512xf32> to vector<8x128xf32>
    %480 = arith.negf %479 : vector<8x128xf32>
    %481 = math.exp %480 : vector<8x128xf32>
    %cst_92 = arith.constant 1.000000e+00 : f32
    %482 = vector.broadcast %cst_92 : f32 to vector<8x128xf32>
    %483 = arith.addf %482, %481 : vector<8x128xf32>
    %484 = arith.divf %482, %483 : vector<8x128xf32>
    %485 = vector.extract_strided_slice %472 {offsets = [0, 256], sizes = [8, 128], strides = [1, 1]} : vector<8x512xf32> to vector<8x128xf32>
    %486 = math.tanh %485 : vector<8x128xf32>
    %487 = vector.extract_strided_slice %472 {offsets = [0, 384], sizes = [8, 128], strides = [1, 1]} : vector<8x512xf32> to vector<8x128xf32>
    %488 = arith.negf %487 : vector<8x128xf32>
    %489 = math.exp %488 : vector<8x128xf32>
    %cst_93 = arith.constant 1.000000e+00 : f32
    %490 = vector.broadcast %cst_93 : f32 to vector<8x128xf32>
    %491 = arith.addf %490, %489 : vector<8x128xf32>
    %492 = arith.divf %490, %491 : vector<8x128xf32>
    %493 = arith.mulf %484, %466 : vector<8x128xf32>
    %494 = arith.mulf %478, %486 : vector<8x128xf32>
    %495 = arith.addf %493, %494 : vector<8x128xf32>
    %496 = math.tanh %495 : vector<8x128xf32>
    %497 = arith.mulf %492, %496 : vector<8x128xf32>
    %c1_94 = arith.constant 1 : index
    %c0_95 = arith.constant 0 : index
    %c0_96 = arith.constant 0 : index
    %498 = vector.load %arg12[%c1_94, %c0_95, %c0_96] : memref<2x8x128xf32, #tpu.memory_space<vmem>>, vector<1x8x128xf32>
    %499 = vector.shape_cast %498 : vector<1x8x128xf32> to vector<8x128xf32>
    %500 = vector.shape_cast %497 : vector<8x128xf32> to vector<1x8x128xf32>
    tpu.vector_store %arg12[%c1_94, %c0_95, %c0_96], %500 {strides = array<i32>} : memref<2x8x128xf32, #tpu.memory_space<vmem>>, vector<1x8x128xf32>,
    %c1_97 = arith.constant 1 : index
    %c0_98 = arith.constant 0 : index
    %c0_99 = arith.constant 0 : index
    %501 = vector.load %arg13[%c1_97, %c0_98, %c0_99] : memref<2x8x128xf32, #tpu.memory_space<vmem>>, vector<1x8x128xf32>
    %502 = vector.shape_cast %501 : vector<1x8x128xf32> to vector<8x128xf32>
    %503 = vector.shape_cast %495 : vector<8x128xf32> to vector<1x8x128xf32>
    tpu.vector_store %arg13[%c1_97, %c0_98, %c0_99], %503 {strides = array<i32>} : memref<2x8x128xf32, #tpu.memory_space<vmem>>, vector<1x8x128xf32>,
    %504 = tpu.concatenate %294, %323, %352, %381, %410, %439, %468, %497 in 0 : vector<8x128xf32>, vector<8x128xf32>, vector<8x128xf32>, vector<8x128xf32>, vector<8x128xf32>, vector<8x128xf32>, vector<8x128xf32>, vector<8x128xf32> -> vector<64x128xf32>
    %505 = vector.shape_cast %504 : vector<64x128xf32> to vector<8x8x128xf32>
    %c0_100 = arith.constant 0 : index
    %c0_101 = arith.constant 0 : index
    %506 = vector.load %arg7[%c0_100, %c0_101] : memref<1x128xf32, #tpu.memory_space<vmem>>, vector<1x128xf32>
    %507 = vector.shape_cast %506 : vector<1x128xf32> to vector<1x1x128xf32>
    %508 = vector.broadcast %507 : vector<1x1x128xf32> to vector<8x8x128xf32>
    %509 = arith.mulf %505, %508 : vector<8x8x128xf32>
    %cst_102 = arith.constant dense<0.000000e+00> : vector<8x8xf32>
    %510 = vector.multi_reduction <add>, %509, %cst_102 [2] : vector<8x8x128xf32> to vector<8x8xf32>
    %c0_103 = arith.constant 0 : index
    %c0_104 = arith.constant 0 : index
    %511 = vector.load %arg8[%c0_103, %c0_104] : memref<1x1xf32, #tpu.memory_space<vmem>>, vector<1x1xf32>
    %512 = vector.broadcast %511 : vector<1x1xf32> to vector<8x8xf32>
    %513 = arith.addf %510, %512 : vector<8x8xf32>
    %c0_105 = arith.constant 0 : index
    %c0_106 = arith.constant 0 : index
    %514 = vector.load %arg11[%c0_105, %c0_106] : memref<8x8xf32, #tpu.memory_space<vmem>>, vector<8x8xf32>
    tpu.vector_store %arg11[%c0_105, %c0_106], %513 {strides = array<i32>} : memref<8x8xf32, #tpu.memory_space<vmem>>, vector<8x8xf32>,
    return
  }
}

</mosaic_0001>

<bundles_post_ra>
// kernel: tpu_custom_call.1
= control target key start
LH: loop header
LB: loop body
LE: loop exit
PB: predicated region body
PF: predicated region fallthrough
CT: control target
= control target key end

     0   :  { %s6457_s0 = inlined_call_operand.hbm [shape: f32[8,8], index: 0, kind: input, shape index: {}]   ;;  %s6458_s1 = inlined_call_operand.hbm [shape: f32[1,512], index: 1, kind: input, shape index: {}]   ;;  %s6459_s2 = inlined_call_operand.hbm [shape: f32[128,512], index: 2, kind: input, shape index: {}]   ;;  %s6460_s3 = inlined_call_operand.hbm [shape: f32[1,512], index: 3, kind: input, shape index: {}]   ;;  %s6461_s4 = inlined_call_operand.hbm [shape: f32[128,512], index: 4, kind: input, shape index: {}]   ;;  %s6462_s5 = inlined_call_operand.hbm [shape: f32[128,512], index: 5, kind: input, shape index: {}]   ;;  %s6463_s6 = inlined_call_operand.hbm [shape: f32[1,512], index: 6, kind: input, shape index: {}]   ;;  %s6464_s7 = inlined_call_operand.hbm [shape: f32[1,128], index: 7, kind: input, shape index: {}]   ;;  %s6465_s8 = inlined_call_operand.<no memory space> [shape: f32[1,1], index: 8, kind: input, shape index: {}]   ;;  %s6466_s9 = inlined_call_operand.vmem [shape: f32[2,8,128], index: 9, kind: input, shape index: {}]   ;;  %s6467_s10 = inlined_call_operand.hbm [shape: f32[2,8,128], index: 10, kind: input, shape index: {}]   ;;  %s6468_s11 = inlined_call_operand.hbm [shape: f32[8,8], index: 11, kind: output, shape index: {0}]   ;;  %s6469_s12 = inlined_call_operand.hbm [shape: f32[2,8,128], index: 12, kind: output, shape index: {1}]   ;;  %s6470_s13 = inlined_call_operand.hbm [shape: f32[2,8,128], index: 13, kind: output, shape index: {2}]  }
   0x1   :  { %v19_v0 = vstv %s6465_s8 }
   0x2   :  { %20 = vst [vmem:[#allocation2] sm:$0x1] %v19_v0 }
   0x3   :  { %21 = vsyncpa [#allocation4], 0 }
   0x4   :  { %22 = vsyncpa [#allocation7], 0 }
   0x5   :  { %23 = vsyncpa [#allocation10], 0 }
   0x6   :  { %24 = vsyncpa [#allocation13], 0 }
   0x7   :  { %25 = vsyncpa [#allocation16], 0 }
   0x8   :  { %26 = vsyncpa [#allocation5], 0 }
   0x9   :  { %27 = vsyncpa [#allocation20], 0  ;;  %s4363_s27 = smov [#allocation6]   ;;  %s4364_s29 = smov [#allocation9]  }
   0xa   :  { %s44_s28 = sshll.u32 %s4363_s27, 4  ;;  %s66_s30 = sshll.u32 %s4364_s29, 4  ;;  %s45_s28 = int_to_ptr.vmem [resolvable:$true] %s44_s28  ;;  %s67_s30 = int_to_ptr.vmem [resolvable:$true] %s66_s30 }
   0xb   :  { %s4117_s14 = scalar_lea.vmem %s45_s28, 64  ;;  %p4122_p1 = scmp.lt.s32.totalorder %s45_s28, %s45_s28 }
   0xc   :  { %p4118_p0 = scmp.ne.s32.totalorder %s45_s28, %s4117_s14  ;;  %p4123_p2 = scmp.lt.s32.totalorder %s4117_s14, %s4117_s14 }
   0xe   :  { %p4124_p3 = por %p4123_p2, %p4122_p1 }
  0x10   :  { %p4125_p4 = pnand %p4124_p3, %p4118_p0 }
  0x12   :  { %4128 = shalt.err (!%p4125_p4)
}
  0x13   :  { %47 = dma.hbm_to_vmem [thread:$0]  %s6458_s1, 64, %s45_s28, [#allocation7]  }
  0x14   :  { %s4137_s16 = scalar_lea.vmem %s67_s30, 64  ;;  %p4142_p6 = scmp.lt.s32.totalorder %s67_s30, %s67_s30 }
  0x15   :  { %p4138_p5 = scmp.ne.s32.totalorder %s67_s30, %s4137_s16  ;;  %p4143_p7 = scmp.lt.s32.totalorder %s4137_s16, %s4137_s16 }
  0x17   :  { %p4144_p8 = por %p4143_p7, %p4142_p6 }
  0x19   :  { %p4145_p9 = pnand %p4144_p8, %p4138_p5 }
  0x1b   :  { %4148 = shalt.err (!%p4145_p9)
}
  0x1c   :  { %69 = dma.hbm_to_vmem [thread:$0]  %s6460_s3, 64, %s67_s30, [#allocation10]  }
  0x1d   :  { %s4365_s19 = smov [#allocation12]   ;;  %s4366_s21 = smov [#allocation15]  }
  0x1e   :  { %s87_s20 = sshll.u32 %s4365_s19, 4  ;;  %s110_s22 = sshll.u32 %s4366_s21, 4  ;;  %s88_s20 = int_to_ptr.vmem [resolvable:$true] %s87_s20  ;;  %s111_s22 = int_to_ptr.vmem [resolvable:$true] %s110_s22 }
  0x1f   :  { %s4157_s23 = scalar_lea.vmem %s88_s20, 8192  ;;  %p4162_p11 = scmp.lt.s32.totalorder %s88_s20, %s88_s20 }
  0x20   :  { %p4158_p10 = scmp.ne.s32.totalorder %s88_s20, %s4157_s23  ;;  %p4163_p12 = scmp.lt.s32.totalorder %s4157_s23, %s4157_s23 }
  0x22   :  { %p4164_p13 = por %p4163_p12, %p4162_p11 }
  0x24   :  { %p4165_p0 = pnand %p4164_p13, %p4158_p10 }
  0x26   :  { %4168 = shalt.err (!%p4165_p0)
}
  0x27   :  { %s4367_s1 = smov 512   ;;  %s4368_s24 = smov 32  }
  0x28   :  { %93 = dma.hbm_to_vmem [thread:$0]  %s6462_s5, 8192, %s88_s20, [#allocation13], %s4367_s1, %s4367_s1, %s4368_s24  }
  0x29   :  { %s4177_s26 = scalar_lea.vmem %s111_s22, 16  ;;  %s4181_s27 = scalar_lea.vmem %s111_s22, 32 }
  0x2a   :  { %p4178_p1 = scmp.ne.s32.totalorder %s111_s22, %s4177_s26  ;;  %p4182_p2 = scmp.lt.s32.totalorder %s111_s22, %s111_s22 }
  0x2b   :  { %p4183_p3 = scmp.lt.s32.totalorder %s4181_s27, %s4177_s26 }
  0x2d   :  { %p4184_p4 = por %p4183_p3, %p4182_p2 }
  0x2f   :  { %p4185_p5 = pnand %p4184_p4, %p4178_p1 }
  0x31   :  { %4188 = shalt.err (!%p4185_p5)
}
  0x32   :  { %113 = dma.hbm_to_vmem [thread:$0]  %s6464_s7, 16, %s111_s22, [#allocation16]  }
  0x33   :  { %s4369_s30 = smov [#allocation3]   ;;  %s4370_s8 = smov [#allocation8]  }
  0x34   :  { %s34_s14 = sshll.u32 %s4369_s30, 4  ;;  %s53_s15 = sshll.u32 %s4370_s8, 4  ;;  %s35_s14 = int_to_ptr.vmem [resolvable:$true] %s34_s14  ;;  %s54_s15 = int_to_ptr.vmem [resolvable:$true] %s53_s15 }
  0x35   :  { %s4197_s16 = scalar_lea.vmem %s35_s14, 128  ;;  %p4202_p7 = scmp.lt.s32.totalorder %s35_s14, %s35_s14 }
  0x36   :  { %p4198_p6 = scmp.ne.s32.totalorder %s35_s14, %s4197_s16  ;;  %p4203_p8 = scmp.lt.s32.totalorder %s4197_s16, %s4197_s16 }
  0x38   :  { %p4204_p9 = por %p4203_p8, %p4202_p7 }
  0x3a   :  { %p4205_p10 = pnand %p4204_p9, %p4198_p6 }
  0x3c   :  { %4208 = shalt.err (!%p4205_p10)
}
  0x3d   :  { %37 = dma.hbm_to_vmem [thread:$0]  %s6457_s0, 128, %s35_s14, [#allocation4]  }
  0x3e   :  { %s4217_s18 = scalar_lea.vmem %s54_s15, 8192  ;;  %p4222_p12 = scmp.lt.s32.totalorder %s54_s15, %s54_s15 }
  0x3f   :  { %p4218_p11 = scmp.ne.s32.totalorder %s54_s15, %s4217_s18  ;;  %p4223_p13 = scmp.lt.s32.totalorder %s4217_s18, %s4217_s18 }
  0x41   :  { %p4224_p0 = por %p4223_p13, %p4222_p12 }
  0x43   :  { %p4225_p1 = pnand %p4224_p0, %p4218_p11 }
  0x45   :  { %4228 = shalt.err (!%p4225_p1)
}
  0x46   :  { %59 = dma.hbm_to_vmem [thread:$0]  %s6459_s2, 8192, %s54_s15, [#allocation7], %s4367_s1, %s4367_s1, %s4368_s24  }
  0x47   :  { %s4371_s20 = smov [#allocation11]   ;;  %s4372_s22 = smov [#allocation14]  }
  0x48   :  { %s75_s21 = sshll.u32 %s4371_s20, 4  ;;  %s100_s23 = sshll.u32 %s4372_s22, 4  ;;  %s76_s21 = int_to_ptr.vmem [resolvable:$true] %s75_s21  ;;  %s101_s23 = int_to_ptr.vmem [resolvable:$true] %s100_s23 }
  0x49   :  { %s4237_s0 = scalar_lea.vmem %s76_s21, 8192  ;;  %p4242_p3 = scmp.lt.s32.totalorder %s76_s21, %s76_s21 }
  0x4a   :  { %p4238_p2 = scmp.ne.s32.totalorder %s76_s21, %s4237_s0  ;;  %p4243_p4 = scmp.lt.s32.totalorder %s4237_s0, %s4237_s0 }
  0x4c   :  { %p4244_p5 = por %p4243_p4, %p4242_p3 }
  0x4e   :  { %p4245_p6 = pnand %p4244_p5, %p4238_p2 }
  0x50   :  { %4248 = shalt.err (!%p4245_p6)
}
  0x51   :  { %81 = dma.hbm_to_vmem [thread:$0]  %s6461_s4, 8192, %s76_s21, [#allocation10], %s4367_s1, %s4367_s1, %s4368_s24  }
  0x52   :  { %s4257_s2 = scalar_lea.vmem %s101_s23, 64  ;;  %p4262_p8 = scmp.lt.s32.totalorder %s101_s23, %s101_s23 }
  0x53   :  { %p4258_p7 = scmp.ne.s32.totalorder %s101_s23, %s4257_s2  ;;  %p4263_p9 = scmp.lt.s32.totalorder %s4257_s2, %s4257_s2 }
  0x55   :  { %p4264_p10 = por %p4263_p9, %p4262_p8 }
  0x57   :  { %p4265_p11 = pnand %p4264_p10, %p4258_p7 }
  0x59   :  { %4268 = shalt.err (!%p4265_p11)
}
  0x5a   :  { %103 = dma.hbm_to_vmem [thread:$0]  %s6463_s6, 64, %s101_s23, [#allocation13]  }
  0x5b   :  { %s4373_s28 = smov [#allocation17]  }
  0x5c   :  { %s123_s29 = sshll.u32 %s4373_s28, 4  ;;  %s124_s29 = int_to_ptr.vmem [resolvable:$true] %s123_s29 }
  0x5d   :  { %s4277_s30 = scalar_lea.vmem %s124_s29, 256  ;;  %p4282_p13 = scmp.lt.s32.totalorder %s124_s29, %s124_s29 }
  0x5e   :  { %p4278_p12 = scmp.ne.s32.totalorder %s124_s29, %s4277_s30  ;;  %p4283_p0 = scmp.lt.s32.totalorder %s4277_s30, %s4277_s30 }
  0x60   :  { %p4284_p1 = por %p4283_p0, %p4282_p13 }
  0x62   :  { %p4285_p2 = pnand %p4284_p1, %p4278_p12 }
  0x64   :  { %4288 = shalt.err (!%p4285_p2)
}
  0x65   :  { %s4374_s4 = smov 128   ;;  %s4375_s1 = smov 8  }
  0x66   :  { %129 = dma.hbm_to_vmem [thread:$0]  %s6467_s10, 256, %s124_s29, [#allocation16], %s4374_s4, %s4374_s4, %s4375_s1  }
  0x67   :  { %4349 = dma.done.wait [#allocation4], 128  }
  0x68   :  { %4350 = vsyncadd [#allocation4], 4294967168 }
  0x69   :  { %4351 = dma.done.wait [#allocation7], 8256  }
  0x6a   :  { %4352 = vsyncadd [#allocation7], 4294959040 }
  0x6b   :  { %4353 = dma.done.wait [#allocation10], 8256  }
  0x6c   :  { %4354 = vsyncadd [#allocation10], 4294959040 }
  0x6d   :  { %4355 = dma.done.wait [#allocation13], 8256  }
  0x6e   :  { %4356 = vsyncadd [#allocation13], 4294959040 }
  0x6f   :  { %4357 = dma.done.wait [#allocation16], 272  }
  0x70   :  { %4358 = vsyncadd [#allocation16], 4294967024  ;;  %v6472_v1 = vmov 0.0   ;;  %v4495_v2 = vld [vmem:[#allocation8 + $0x1e8] sm:$0xff]  ;;  %v4497_v3 = vld [vmem:[#allocation8 + $0x1f8] sm:$0xff]  ;;  %v6471_v44 = vlaneseq }
  0x71   :  { %452 = vmatprep.mubr.f32.mxu0 %v6472_v1  ;;  %523 = vmatprep.mubr.f32.mxu1 %v6472_v1  ;;  %6731 = vst [vmem:[#allocation29_spill] sm:$0xff] %v4495_v2  ;;  %6732 = vst [vmem:[#allocation30_spill] sm:$0xff] %v4497_v3  ;;  %v4499_v4 = vld [vmem:[#allocation8 + $0x1e0] sm:$0xff]  ;;  %v4503_v5 = vld [vmem:[#allocation8 + $0x1f0] sm:$0xff] }
  0x72   :  { %388 = vmatprep.subr.mxu0 %v4495_v2  ;;  %459 = vmatprep.subr.mxu1 %v4497_v3  ;;  %v4505_v6 = vld [vmem:[#allocation8 + $0x1c8] sm:$0xff]  ;;  %v4507_v7 = vld [vmem:[#allocation8 + $0x1d8] sm:$0xff]  ;;  %v4511_v8 = vld [vmem:[#allocation8 + $0x1c0] sm:$0xff]  ;;  %v4640_v53 = vshrl.u32 %v6471_v44, 7 }
  0x73   :  { %389 = vmatpush1.msra.mxu0 %v4499_v4  ;;  %460 = vmatpush1.msra.mxu1 %v4503_v5  ;;  %v4513_v9 = vld [vmem:[#allocation8 + $0x1d0] sm:$0xff]  ;;  %v4515_v10 = vld [vmem:[#allocation8 + $0x1a8] sm:$0xff]  ;;  %v4519_v11 = vld [vmem:[#allocation8 + $0x1b8] sm:$0xff] }
  0x74   :  { %390 = vmatprep.subr.mxu0 %v4505_v6  ;;  %461 = vmatprep.subr.mxu1 %v4507_v7  ;;  %v4521_v12 = vld [vmem:[#allocation8 + $0x1a0] sm:$0xff]  ;;  %v4523_v13 = vld [vmem:[#allocation8 + $0x1b0] sm:$0xff]  ;;  %v4527_v14 = vld [vmem:[#allocation8 + $0x188] sm:$0xff]  ;;  %6741 = vst [vmem:[#allocation39_spill] sm:$0xff] %v4640_v53  ;;  %v4667_v62 = vsub.s32 0, %v4640_v53 }
  0x75   :  { %391 = vmatpush1.msra.mxu0 %v4511_v8  ;;  %462 = vmatpush1.msra.mxu1 %v4513_v9  ;;  %v4529_v15 = vld [vmem:[#allocation8 + $0x198] sm:$0xff]  ;;  %v4533_v16 = vld [vmem:[#allocation8 + $0x180] sm:$0xff]  ;;  %v4535_v17 = vld [vmem:[#allocation8 + $0x190] sm:$0xff] }
  0x76   :  { %392 = vmatprep.subr.mxu0 %v4515_v10  ;;  %463 = vmatprep.subr.mxu1 %v4519_v11  ;;  %v4539_v18 = vld [vmem:[#allocation8 + $0x168] sm:$0xff]  ;;  %v4541_v19 = vld [vmem:[#allocation8 + $0x178] sm:$0xff]  ;;  %v4545_v20 = vld [vmem:[#allocation8 + $0x160] sm:$0xff]  ;;  %6750 = vst [vmem:[#allocation48_spill] sm:$0xff] %v4667_v62 }
  0x77   :  { %393 = vmatpush1.msra.mxu0 %v4521_v12  ;;  %464 = vmatpush1.msra.mxu1 %v4523_v13  ;;  %v4547_v21 = vld [vmem:[#allocation8 + $0x170] sm:$0xff]  ;;  %v4551_v22 = vld [vmem:[#allocation8 + $0x148] sm:$0xff]  ;;  %v4553_v23 = vld [vmem:[#allocation8 + $0x158] sm:$0xff] }
  0x78   :  { %394 = vmatprep.subr.mxu0 %v4527_v14  ;;  %465 = vmatprep.subr.mxu1 %v4529_v15  ;;  %v4557_v24 = vld [vmem:[#allocation8 + $0x140] sm:$0xff]  ;;  %v4559_v25 = vld [vmem:[#allocation8 + $0x150] sm:$0xff]  ;;  %v4563_v26 = vld [vmem:[#allocation8 + $0x128] sm:$0xff] }
  0x79   :  { %395 = vmatpush1.msra.mxu0 %v4533_v16  ;;  %466 = vmatpush1.msra.mxu1 %v4535_v17  ;;  %v4565_v27 = vld [vmem:[#allocation8 + $0x138] sm:$0xff]  ;;  %v4569_v28 = vld [vmem:[#allocation8 + $0x120] sm:$0xff]  ;;  %v4571_v29 = vld [vmem:[#allocation8 + $0x130] sm:$0xff] }
  0x7a   :  { %396 = vmatprep.subr.mxu0 %v4539_v18  ;;  %467 = vmatprep.subr.mxu1 %v4541_v19  ;;  %v4575_v30 = vld [vmem:[#allocation8 + $0x108] sm:$0xff]  ;;  %v4577_v31 = vld [vmem:[#allocation8 + $0x118] sm:$0xff]  ;;  %v4581_v32 = vld [vmem:[#allocation8 + $0x100] sm:$0xff] }
  0x7b   :  { %397 = vmatpush1.msra.mxu0 %v4545_v20  ;;  %468 = vmatpush1.msra.mxu1 %v4547_v21  ;;  %v4583_v33 = vld [vmem:[#allocation8 + $0x110] sm:$0xff]  ;;  %v4587_v34 = vld [vmem:[#allocation8 + $0xe8] sm:$0xff]  ;;  %v4589_v35 = vld [vmem:[#allocation8 + $0xf8] sm:$0xff] }
  0x7c   :  { %398 = vmatprep.subr.mxu0 %v4551_v22  ;;  %469 = vmatprep.subr.mxu1 %v4553_v23  ;;  %v4593_v36 = vld [vmem:[#allocation8 + $0xe0] sm:$0xff]  ;;  %v4595_v37 = vld [vmem:[#allocation8 + $0xf0] sm:$0xff]  ;;  %v4599_v38 = vld [vmem:[#allocation8 + $0xc8] sm:$0xff] }
  0x7d   :  { %399 = vmatpush1.msra.mxu0 %v4557_v24  ;;  %470 = vmatpush1.msra.mxu1 %v4559_v25  ;;  %v4601_v39 = vld [vmem:[#allocation8 + $0xd8] sm:$0xff]  ;;  %v4605_v40 = vld [vmem:[#allocation8 + $0xc0] sm:$0xff]  ;;  %v4607_v41 = vld [vmem:[#allocation8 + $0xd0] sm:$0xff] }
  0x7e   :  { %400 = vmatprep.subr.mxu0 %v4563_v26  ;;  %471 = vmatprep.subr.mxu1 %v4565_v27  ;;  %v4611_v42 = vld [vmem:[#allocation8 + $0xa8] sm:$0xff]  ;;  %v4613_v43 = vld [vmem:[#allocation8 + $0xb8] sm:$0xff]  ;;  %v4617_v45 = vld [vmem:[#allocation8 + $0xa0] sm:$0xff] }
  0x7f   :  { %401 = vmatpush1.msra.mxu0 %v4569_v28  ;;  %472 = vmatpush1.msra.mxu1 %v4571_v29  ;;  %6733 = vst [vmem:[#allocation31_spill] sm:$0xff] %v4617_v45  ;;  %v4619_v46 = vld [vmem:[#allocation8 + $0xb0] sm:$0xff]  ;;  %v4623_v47 = vld [vmem:[#allocation8 + $0x88] sm:$0xff]  ;;  %v4625_v48 = vld [vmem:[#allocation8 + $0x98] sm:$0xff] }
  0x80   :  { %402 = vmatprep.subr.mxu0 %v4575_v30  ;;  %473 = vmatprep.subr.mxu1 %v4577_v31  ;;  %6734 = vst [vmem:[#allocation32_spill] sm:$0xff] %v4619_v46  ;;  %6735 = vst [vmem:[#allocation33_spill] sm:$0xff] %v4623_v47  ;;  %v4629_v49 = vld [vmem:[#allocation8 + $0x80] sm:$0xff]  ;;  %v4631_v50 = vld [vmem:[#allocation8 + $0x90] sm:$0xff] }
  0x81   :  { %403 = vmatpush1.msra.mxu0 %v4581_v32  ;;  %474 = vmatpush1.msra.mxu1 %v4583_v33  ;;  %6736 = vst [vmem:[#allocation34_spill] sm:$0xff] %v4625_v48  ;;  %6737 = vst [vmem:[#allocation35_spill] sm:$0xff] %v4629_v49  ;;  %v4635_v51 = vld [vmem:[#allocation8 + $0x68] sm:$0xff]  ;;  %v4637_v52 = vld [vmem:[#allocation8 + $0x78] sm:$0xff] }
  0x82   :  { %404 = vmatprep.subr.mxu0 %v4587_v34  ;;  %475 = vmatprep.subr.mxu1 %v4589_v35  ;;  %6738 = vst [vmem:[#allocation36_spill] sm:$0xff] %v4631_v50  ;;  %6739 = vst [vmem:[#allocation37_spill] sm:$0xff] %v4635_v51  ;;  %v4644_v54 = vld [vmem:[#allocation8 + $0x60] sm:$0xff]  ;;  %v4646_v55 = vld [vmem:[#allocation8 + $0x70] sm:$0xff] }
  0x83   :  { %405 = vmatpush1.msra.mxu0 %v4593_v36  ;;  %476 = vmatpush1.msra.mxu1 %v4595_v37  ;;  %6740 = vst [vmem:[#allocation38_spill] sm:$0xff] %v4637_v52  ;;  %6742 = vst [vmem:[#allocation40_spill] sm:$0xff] %v4644_v54  ;;  %v4650_v56 = vld [vmem:[#allocation8 + $0x48] sm:$0xff]  ;;  %v4652_v57 = vld [vmem:[#allocation8 + $0x58] sm:$0xff] }
  0x84   :  { %406 = vmatprep.subr.mxu0 %v4599_v38  ;;  %477 = vmatprep.subr.mxu1 %v4601_v39  ;;  %6743 = vst [vmem:[#allocation41_spill] sm:$0xff] %v4646_v55  ;;  %6744 = vst [vmem:[#allocation42_spill] sm:$0xff] %v4650_v56  ;;  %v4656_v58 = vld [vmem:[#allocation8 + $0x40] sm:$0xff]  ;;  %v4658_v59 = vld [vmem:[#allocation8 + $0x50] sm:$0xff] }
  0x85   :  { %407 = vmatpush1.msra.mxu0 %v4605_v40  ;;  %478 = vmatpush1.msra.mxu1 %v4607_v41  ;;  %6745 = vst [vmem:[#allocation43_spill] sm:$0xff] %v4652_v57  ;;  %6746 = vst [vmem:[#allocation44_spill] sm:$0xff] %v4656_v58  ;;  %v4662_v60 = vld [vmem:[#allocation8 + $0x28] sm:$0xff]  ;;  %v4664_v61 = vld [vmem:[#allocation8 + $0x38] sm:$0xff] }
  0x86   :  { %408 = vmatprep.subr.mxu0 %v4611_v42  ;;  %479 = vmatprep.subr.mxu1 %v4613_v43  ;;  %6747 = vst [vmem:[#allocation45_spill] sm:$0xff] %v4658_v59  ;;  %6748 = vst [vmem:[#allocation46_spill] sm:$0xff] %v4662_v60  ;;  %v4671_v63 = vld [vmem:[#allocation8 + $0x20] sm:$0xff]  ;;  %v4673_v0 = vld [vmem:[#allocation8 + $0x30] sm:$0xff] }
  0x87   :  { %409 = vmatpush1.msra.mxu0 %v4617_v45  ;;  %480 = vmatpush1.msra.mxu1 %v4619_v46  ;;  %6749 = vst [vmem:[#allocation47_spill] sm:$0xff] %v4664_v61  ;;  %6751 = vst [vmem:[#allocation49_spill] sm:$0xff] %v4671_v63  ;;  %v4675_v44 = vld [vmem:[#allocation3] sm:$0xff]  ;;  %v4679_v1 = vld [vmem:[#allocation8 + $0x8] sm:$0xff] }
  0x88   :  { %410 = vmatprep.subr.mxu0 %v4623_v47  ;;  %481 = vmatprep.subr.mxu1 %v4625_v48  ;;  %6752 = vst [vmem:[#allocation50_spill] sm:$0xff] %v4673_v0  ;;  %6753 = vst [vmem:[#allocation51_spill] sm:$0xff] %v4675_v44  ;;  %v4685_v53 = vld [vmem:[#allocation8] sm:$0xff] }
  0x89   :  { %411 = vmatpush1.msra.mxu0 %v4629_v49  ;;  %482 = vmatpush1.msra.mxu1 %v4631_v50  ;;  %6754 = vst [vmem:[#allocation52_spill] sm:$0xff] %v4679_v1  ;;  %6756 = vst [vmem:[#allocation54_spill] sm:$0xff] %v4685_v53 }
  0x8a   :  { %412 = vmatprep.subr.mxu0 %v4635_v51  ;;  %483 = vmatprep.subr.mxu1 %v4637_v52 }
  0x8b   :  { %413 = vmatpush1.msra.mxu0 %v4644_v54  ;;  %484 = vmatpush1.msra.mxu1 %v4646_v55  ;;  %v4681_v55 = vld [vmem:[#allocation8 + $0x18] sm:$0xff] }
  0x8c   :  { %414 = vmatprep.subr.mxu0 %v4650_v56  ;;  %485 = vmatprep.subr.mxu1 %v4652_v57  ;;  %6755 = vst [vmem:[#allocation53_spill] sm:$0xff] %v4681_v55  ;;  %v4687_v57 = vld [vmem:[#allocation8 + $0x10] sm:$0xff] }
  0x8d   :  { %415 = vmatpush1.msra.mxu0 %v4656_v58  ;;  %486 = vmatpush1.msra.mxu1 %v4658_v59  ;;  %6757 = vst [vmem:[#allocation55_spill] sm:$0xff] %v4687_v57  ;;  %v386_v59 = vld [vmem:[%s6466_s9] sm:$0xff]  ;;  %v161_v58 = vrot.slane %v4675_v44, %v4667_v62 }
  0x8e   :  { %416 = vmatprep.subr.mxu0 %v4662_v60  ;;  %487 = vmatprep.subr.mxu1 %v4664_v61 }
  0x8f   :  { %417 = vmatpush1.msra.mxu0 %v4671_v63  ;;  %488 = vmatpush1.msra.mxu1 %v4673_v0 }
  0x90   :  { %418 = vmatprep.subr.mxu0 %v4679_v1  ;;  %489 = vmatprep.subr.mxu1 %v4681_v55 }
  0x91   :  { %419 = vmatpush1.msra.mxu0 %v4685_v53  ;;  %490 = vmatpush1.msra.mxu1 %v4687_v57 }
  0x92   :  { %453 = vmatmul.mubr.f32.vlgmr.msra.gmra.mxu0 %v386_v59  ;;  %524 = vmatmul.mubr.f32.vlgmr.msra.gmra.mxu1 %v386_v59  ;;  %v6759_v59 = vld [vmem:[#allocation43_spill] sm:$0xff] }
  0x93   :  { %163 = vbcast.lane.b32.xlu0 %v161_v58, 256  ;;  %558 = vmatprep.subr.mxu0 %v4495_v2  ;;  %v6758_v58 = vld [vmem:[#allocation41_spill] sm:$0xff] }
  0x94   :  { %629 = vmatprep.subr.mxu1 %v4497_v3  ;;  %559 = vmatpush1.msra.mxu0 %v4499_v4 }
  0x95   :  { %630 = vmatpush1.msra.mxu1 %v4503_v5  ;;  %560 = vmatprep.subr.mxu0 %v4505_v6 }
  0x96   :  { %631 = vmatprep.subr.mxu1 %v4507_v7  ;;  %561 = vmatpush1.msra.mxu0 %v4511_v8 }
  0x97   :  { %632 = vmatpush1.msra.mxu1 %v4513_v9  ;;  %562 = vmatprep.subr.mxu0 %v4515_v10 }
  0x98   :  { %633 = vmatprep.subr.mxu1 %v4519_v11  ;;  %563 = vmatpush1.msra.mxu0 %v4521_v12 }
  0x99   :  { %634 = vmatpush1.msra.mxu1 %v4523_v13  ;;  %564 = vmatprep.subr.mxu0 %v4527_v14 }
  0x9a   :  { %635 = vmatprep.subr.mxu1 %v4529_v15  ;;  %565 = vmatpush1.msra.mxu0 %v4533_v16 }
  0x9b   :  { %636 = vmatpush1.msra.mxu1 %v4535_v17  ;;  %566 = vmatprep.subr.mxu0 %v4539_v18 }
  0x9c   :  { %637 = vmatprep.subr.mxu1 %v4541_v19  ;;  %567 = vmatpush1.msra.mxu0 %v4545_v20 }
  0x9d   :  { %638 = vmatpush1.msra.mxu1 %v4547_v21  ;;  %568 = vmatprep.subr.mxu0 %v4551_v22 }
  0x9e   :  { %639 = vmatprep.subr.mxu1 %v4553_v23  ;;  %569 = vmatpush1.msra.mxu0 %v4557_v24 }
  0x9f   :  { %640 = vmatpush1.msra.mxu1 %v4559_v25  ;;  %570 = vmatprep.subr.mxu0 %v4563_v26 }
  0xa0   :  { %641 = vmatprep.subr.mxu1 %v4565_v27  ;;  %571 = vmatpush1.msra.mxu0 %v4569_v28 }
  0xa1   :  { %642 = vmatpush1.msra.mxu1 %v4571_v29  ;;  %572 = vmatprep.subr.mxu0 %v4575_v30 }
  0xa2   :  { %643 = vmatprep.subr.mxu1 %v4577_v31  ;;  %573 = vmatpush1.msra.mxu0 %v4581_v32 }
  0xa3   :  { %644 = vmatpush1.msra.mxu1 %v4583_v33  ;;  %574 = vmatprep.subr.mxu0 %v4587_v34 }
  0xa4   :  { %645 = vmatprep.subr.mxu1 %v4589_v35  ;;  %575 = vmatpush1.msra.mxu0 %v4593_v36 }
  0xa5   :  { %646 = vmatpush1.msra.mxu1 %v4595_v37  ;;  %576 = vmatprep.subr.mxu0 %v4599_v38 }
  0xa6   :  { %647 = vmatprep.subr.mxu1 %v4601_v39  ;;  %577 = vmatpush1.msra.mxu0 %v4605_v40 }
  0xa7   :  { %648 = vmatpush1.msra.mxu1 %v4607_v41  ;;  %578 = vmatprep.subr.mxu0 %v4611_v42 }
  0xa8   :  { %649 = vmatprep.subr.mxu1 %v4613_v43  ;;  %579 = vmatpush1.msra.mxu0 %v4617_v45 }
  0xa9   :  { %650 = vmatpush1.msra.mxu1 %v4619_v46  ;;  %580 = vmatprep.subr.mxu0 %v4623_v47  ;;  %v6760_v46 = vld [vmem:[#allocation44_spill] sm:$0xff]  ;;  %v6761_v47 = vld [vmem:[#allocation45_spill] sm:$0xff] }
  0xaa   :  { %651 = vmatprep.subr.mxu1 %v4625_v48  ;;  %581 = vmatpush1.msra.mxu0 %v4629_v49 }
  0xab   :  { %652 = vmatpush1.msra.mxu1 %v4631_v50  ;;  %582 = vmatprep.subr.mxu0 %v4635_v51 }
  0xac   :  { %653 = vmatprep.subr.mxu1 %v4637_v52  ;;  %583 = vmatpush1.msra.mxu0 %v4644_v54 }
  0xad   :  { %654 = vmatpush1.msra.mxu1 %v6758_v58  ;;  %584 = vmatprep.subr.mxu0 %v4650_v56  ;;  %v6762_v56 = vmov 0.0  }
  0xae   :  { %655 = vmatprep.subr.mxu1 %v6759_v59  ;;  %585 = vmatpush1.msra.mxu0 %v6760_v46 }
  0xaf   :  { %656 = vmatpush1.msra.mxu1 %v6761_v47  ;;  %586 = vmatprep.subr.mxu0 %v4662_v60 }
  0xb0   :  { %657 = vmatprep.subr.mxu1 %v4664_v61  ;;  %587 = vmatpush1.msra.mxu0 %v4671_v63  ;;  %v6763_v61 = vld [vmem:[#allocation39_spill] sm:$0xff] }
  0xb1   :  { %658 = vmatpush1.msra.mxu1 %v4673_v0  ;;  %588 = vmatprep.subr.mxu0 %v4679_v1  ;;  %v4769_v63 = vsub.s32 1, %v6763_v61  ;;  %v268_v0 = vld [vmem:[#allocation9] sm:$0xf]  ;;  %v4796_v54 = vsub.s32 2, %v6763_v61 }
  0xb2   :  { %659 = vmatprep.subr.mxu1 %v4681_v55  ;;  %589 = vmatpush1.msra.mxu0 %v4685_v53  ;;  %v214_v55 = vld [vmem:[#allocation6] sm:$0xf] }
  0xb3   :  { %622 = vmatprep.mubr.f32.mxu0 %v6762_v56  ;;  %660 = vmatpush1.msra.mxu1 %v4687_v57  ;;  %6764 = vst [vmem:[#allocation56_spill] sm:$0xff] %v4769_v63  ;;  %v168_v1 = vrot.slane %v4675_v44, %v4769_v63  ;;  %v4774_v53 = vrot.slane %v214_v55, %v4667_v62  ;;  %6771 = vst [vmem:[#allocation63_spill] sm:$0xff] %v4796_v54 }
  0xb4   :  { %693 = vmatprep.mubr.f32.mxu1 %v6762_v56  ;;  %728 = vmatprep.subr.mxu0 %v4495_v2  ;;  %v4777_v57 = vrot.slane %v214_v55, %v4769_v63  ;;  %v4780_v2 = vrot.slane %v268_v0, %v4667_v62  ;;  %v4784_v56 = vrot.slane %v268_v0, %v4769_v63 }
  0xb5   :  { %799 = vmatprep.subr.mxu1 %v4497_v3  ;;  %170 = vbcast.lane.b32.xlu0 %v168_v1, 256  ;;  %6765 = vst [vmem:[#allocation57_spill] sm:$0xff] %v4774_v53  ;;  %v4788_v1 = vsub.s32 3, %v6763_v61  ;;  %v4807_v61 = vrot.slane %v268_v0, %v4796_v54 }
  0xb6   :  { %6766 = vst [vmem:[#allocation58_spill] sm:$0xff] %v4777_v57  ;;  %6767 = vst [vmem:[#allocation59_spill] sm:$0xff] %v4780_v2 }
  0xb7   :  { %6768 = vst [vmem:[#allocation60_spill] sm:$0xff] %v4784_v56  ;;  %6769 = vst [vmem:[#allocation61_spill] sm:$0xff] %v4788_v1  ;;  %v4793_v59 = vrot.slane %v214_v55, %v4788_v1 }
  0xb9   :  { %6770 = vst [vmem:[#allocation62_spill] sm:$0xff] %v4793_v59 }
 0x105   :  { %v164_v60 = vpop.permute.xlu0 %163 }
 0x106   :  { %v236_v3 = vmul.f32 %v4774_v53, %v164_v60  ;;  %v237_v44 = vmul.f32 %v4777_v57, %v164_v60  ;;  %v4799_v57 = vrot.slane %v268_v0, %v4788_v1  ;;  %v239_v51 = vmul.f32 %v4793_v59, %v164_v60 }
 0x108   :  { %v290_v47 = vadd.f32 %v4780_v2, %v236_v3  ;;  %v291_v46 = vadd.f32 %v4784_v56, %v237_v44  ;;  %6772 = vst [vmem:[#allocation64_spill] sm:$0xff] %v4799_v57  ;;  %v4803_v44 = vrot.slane %v214_v55, %v4796_v54 }
 0x152   :  { %v454_v58 = vpop.f32.mrf.mxu0  ;;  %v525_v3 = vpop.f32.mrf.mxu1 }
 0x153   :  { %v530_v62 = vadd.f32 %v454_v58, %v290_v47  ;;  %v293_v47 = vadd.f32 %v4799_v57, %v239_v51  ;;  %v387_v57 = vld [vmem:[#allocation17] sm:$0xff] }
 0x154   :  { %v456_v53 = vpop.f32.mrf.mxu0  ;;  %v527_v58 = vpop.f32.mrf.mxu1 }
 0x155   :  { %v3652_v63 = vmul.f32 -1.442695, %v530_v62  ;;  %v531_v52 = vadd.f32 %v456_v53, %v291_v46  ;;  %v238_v46 = vmul.f32 %v4803_v44, %v164_v60  ;;  %v533_v53 = vadd.f32 %v527_v58, %v293_v47 }
 0x157   :  { %3723 = vpow2.f32 %v3652_v63  ;;  %v3653_v2 = vmul.f32 -1.442695, %v531_v52  ;;  %v292_v62 = vadd.f32 %v4807_v61, %v238_v46  ;;  %v3654_v1 = vmul.f32 -1.442695, %v533_v53  ;;  %v6778_v46 = vld [vmem:[#allocation38_spill] sm:$0xff]  ;;  %v6779_v53 = vld [vmem:[#allocation40_spill] sm:$0xff] }
 0x159   :  { %3725 = vpow2.f32 %v3653_v2  ;;  %v532_v63 = vadd.f32 %v525_v3, %v292_v62  ;;  %v6780_v62 = vld [vmem:[#allocation41_spill] sm:$0xff] }
 0x15a   :  { %3727 = vpow2.f32 %v3654_v1 }
 0x164   :  { %v3724_v59 = vpop.eup %3723 }
 0x165   :  { %v537_v56 = vadd.f32 1.0, %v3724_v59 }
 0x166   :  { %v3726_v52 = vpop.eup %3725 }
 0x167   :  { %3729 = vrcp.f32 %v537_v56  ;;  %v543_v55 = vadd.f32 1.0, %v3726_v52  ;;  %v3728_v2 = vpop.eup %3727  ;;  %v6776_v56 = vld [vmem:[#allocation36_spill] sm:$0xff]  ;;  %v6782_v52 = vld [vmem:[#allocation43_spill] sm:$0xff] }
 0x168   :  { %3731 = vtanh.f32 %v532_v63  ;;  %v550_v50 = vadd.f32 1.0, %v3728_v2  ;;  %v6781_v63 = vld [vmem:[#allocation42_spill] sm:$0xff]  ;;  %v6784_v2 = vld [vmem:[#allocation45_spill] sm:$0xff] }
 0x169   :  { %3733 = vrcp.f32 %v543_v55  ;;  %v6783_v55 = vld [vmem:[#allocation44_spill] sm:$0xff] }
 0x16a   :  { %3735 = vrcp.f32 %v550_v50  ;;  %v6774_v50 = vld [vmem:[#allocation32_spill] sm:$0xff] }
 0x174   :  { %v3730_v51 = vpop.eup %3729 }
 0x175   :  { %v3732_v0 = vpop.eup %3731 }
 0x176   :  { %v3734_v54 = vpop.eup %3733  ;;  %v554_v60 = vmul.f32 %v3732_v0, %v3730_v51  ;;  %v6785_v51 = vld [vmem:[#allocation46_spill] sm:$0xff]  ;;  %v6786_v0 = vld [vmem:[#allocation47_spill] sm:$0xff] }
 0x177   :  { %v553_v47 = vmul.f32 %v3734_v54, %v387_v57  ;;  %v3736_v59 = vpop.eup %3735  ;;  %v6775_v54 = vld [vmem:[#allocation33_spill] sm:$0xff] }
 0x178   :  { %v6777_v57 = vld [vmem:[#allocation37_spill] sm:$0xff] }
 0x179   :  { %v4811_v58 = vadd.f32 %v554_v60, %v553_v47  ;;  %v6787_v60 = vld [vmem:[#allocation49_spill] sm:$0xff]  ;;  %v6788_v47 = vld [vmem:[#allocation50_spill] sm:$0xff] }
 0x17b   :  { %3737 = vtanh.f32 %v4811_v58 }
 0x188   :  { %v3738_v3 = vpop.eup %3737 }
 0x189   :  { %v4814_v1 = vmul.f32 %v3738_v3, %v3736_v59  ;;  %v6789_v59 = vld [vmem:[#allocation52_spill] sm:$0xff]  ;;  %v6790_v3 = vld [vmem:[#allocation53_spill] sm:$0xff] }
 0x18b   :  { %6773 = vst [vmem:[#allocation65_spill] sm:$0xff] %v4814_v1  ;;  %623 = vmatmul.mubr.f32.vlgmr.msra.gmra.mxu0 %v4814_v1  ;;  %694 = vmatmul.mubr.f32.vlgmr.msra.gmra.mxu1 %v4814_v1  ;;  %v6791_v1 = vld [vmem:[#allocation54_spill] sm:$0xff] }
 0x18c   :  { %729 = vmatpush1.msra.mxu0 %v4499_v4  ;;  %800 = vmatpush1.msra.mxu1 %v4503_v5 }
 0x18d   :  { %730 = vmatprep.subr.mxu0 %v4505_v6  ;;  %801 = vmatprep.subr.mxu1 %v4507_v7 }
 0x18e   :  { %731 = vmatpush1.msra.mxu0 %v4511_v8  ;;  %802 = vmatpush1.msra.mxu1 %v4513_v9 }
 0x18f   :  { %732 = vmatprep.subr.mxu0 %v4515_v10  ;;  %803 = vmatprep.subr.mxu1 %v4519_v11 }
 0x190   :  { %733 = vmatpush1.msra.mxu0 %v4521_v12  ;;  %804 = vmatpush1.msra.mxu1 %v4523_v13 }
 0x191   :  { %734 = vmatprep.subr.mxu0 %v4527_v14  ;;  %805 = vmatprep.subr.mxu1 %v4529_v15 }
 0x192   :  { %735 = vmatpush1.msra.mxu0 %v4533_v16  ;;  %806 = vmatpush1.msra.mxu1 %v4535_v17 }
 0x193   :  { %736 = vmatprep.subr.mxu0 %v4539_v18  ;;  %807 = vmatprep.subr.mxu1 %v4541_v19 }
 0x194   :  { %737 = vmatpush1.msra.mxu0 %v4545_v20  ;;  %808 = vmatpush1.msra.mxu1 %v4547_v21 }
 0x195   :  { %738 = vmatprep.subr.mxu0 %v4551_v22  ;;  %809 = vmatprep.subr.mxu1 %v4553_v23 }
 0x196   :  { %739 = vmatpush1.msra.mxu0 %v4557_v24  ;;  %810 = vmatpush1.msra.mxu1 %v4559_v25 }
 0x197   :  { %740 = vmatprep.subr.mxu0 %v4563_v26  ;;  %811 = vmatprep.subr.mxu1 %v4565_v27 }
 0x198   :  { %741 = vmatpush1.msra.mxu0 %v4569_v28  ;;  %812 = vmatpush1.msra.mxu1 %v4571_v29 }
 0x199   :  { %742 = vmatprep.subr.mxu0 %v4575_v30  ;;  %813 = vmatprep.subr.mxu1 %v4577_v31 }
 0x19a   :  { %743 = vmatpush1.msra.mxu0 %v4581_v32  ;;  %814 = vmatpush1.msra.mxu1 %v4583_v33 }
 0x19b   :  { %744 = vmatprep.subr.mxu0 %v4587_v34  ;;  %815 = vmatprep.subr.mxu1 %v4589_v35 }
 0x19c   :  { %745 = vmatpush1.msra.mxu0 %v4593_v36  ;;  %816 = vmatpush1.msra.mxu1 %v4595_v37 }
 0x19d   :  { %746 = vmatprep.subr.mxu0 %v4599_v38  ;;  %817 = vmatprep.subr.mxu1 %v4601_v39 }
 0x19e   :  { %747 = vmatpush1.msra.mxu0 %v4605_v40  ;;  %818 = vmatpush1.msra.mxu1 %v4607_v41 }
 0x19f   :  { %748 = vmatprep.subr.mxu0 %v4611_v42  ;;  %819 = vmatprep.subr.mxu1 %v4613_v43 }
 0x1a0   :  { %749 = vmatpush1.msra.mxu0 %v4617_v45  ;;  %820 = vmatpush1.msra.mxu1 %v6774_v50 }
 0x1a1   :  { %750 = vmatprep.subr.mxu0 %v6775_v54  ;;  %821 = vmatprep.subr.mxu1 %v4625_v48  ;;  %v6802_v54 = vld [vmem:[#allocation62_spill] sm:$0xff] }
 0x1a2   :  { %751 = vmatpush1.msra.mxu0 %v4629_v49  ;;  %822 = vmatpush1.msra.mxu1 %v6776_v56 }
 0x1a3   :  { %752 = vmatprep.subr.mxu0 %v6777_v57  ;;  %823 = vmatprep.subr.mxu1 %v6778_v46  ;;  %v6801_v57 = vld [vmem:[#allocation60_spill] sm:$0xff] }
 0x1a4   :  { %753 = vmatpush1.msra.mxu0 %v6779_v53  ;;  %824 = vmatpush1.msra.mxu1 %v6780_v62 }
 0x1a5   :  { %754 = vmatprep.subr.mxu0 %v6781_v63  ;;  %825 = vmatprep.subr.mxu1 %v6782_v52  ;;  %v6792_v63 = vmov 0.0   ;;  %v6793_v52 = vld [vmem:[#allocation55_spill] sm:$0xff] }
 0x1a6   :  { %755 = vmatpush1.msra.mxu0 %v6783_v55  ;;  %826 = vmatpush1.msra.mxu1 %v6784_v2  ;;  %v6794_v2 = vld [vmem:[#allocation29_spill] sm:$0xff] }
 0x1a7   :  { %756 = vmatprep.subr.mxu0 %v6785_v51  ;;  %827 = vmatprep.subr.mxu1 %v6786_v0  ;;  %v6795_v51 = vld [vmem:[#allocation30_spill] sm:$0xff]  ;;  %v6796_v0 = vld [vmem:[#allocation63_spill] sm:$0xff] }
 0x1a8   :  { %757 = vmatpush1.msra.mxu0 %v6787_v60  ;;  %828 = vmatpush1.msra.mxu1 %v6788_v47  ;;  %v6797_v60 = vld [vmem:[#allocation51_spill] sm:$0xff]  ;;  %v171_v47 = vpop.permute.xlu0 %170 }
 0x1a9   :  { %758 = vmatprep.subr.mxu0 %v6789_v59  ;;  %829 = vmatprep.subr.mxu1 %v6790_v3  ;;  %v175_v55 = vrot.slane %v6797_v60, %v6796_v0  ;;  %v6798_v59 = vld [vmem:[#allocation57_spill] sm:$0xff]  ;;  %v6799_v3 = vld [vmem:[#allocation58_spill] sm:$0xff] }
 0x1aa   :  { %759 = vmatpush1.msra.mxu0 %v6791_v1  ;;  %792 = vmatprep.mubr.f32.mxu0 %v6792_v63  ;;  %v240_v62 = vmul.f32 %v6798_v59, %v171_v47  ;;  %v241_v53 = vmul.f32 %v6799_v3, %v171_v47  ;;  %v6800_v1 = vld [vmem:[#allocation59_spill] sm:$0xff]  ;;  %v242_v3 = vmul.f32 %v4803_v44, %v171_v47 }
 0x1ab   :  { %830 = vmatpush1.msra.mxu1 %v6793_v52  ;;  %863 = vmatprep.mubr.f32.mxu1 %v6792_v63 }
 0x1ac   :  { %898 = vmatprep.subr.mxu0 %v6794_v2  ;;  %969 = vmatprep.subr.mxu1 %v6795_v51  ;;  %v294_v46 = vadd.f32 %v6800_v1, %v240_v62  ;;  %v295_v56 = vadd.f32 %v6801_v57, %v241_v53  ;;  %v243_v51 = vmul.f32 %v6802_v54, %v171_v47 }
 0x1ad   :  { %177 = vbcast.lane.b32.xlu1 %v175_v55, 256  ;;  %v6803_v55 = vld [vmem:[#allocation64_spill] sm:$0xff]  ;;  %v296_v62 = vadd.f32 %v4807_v61, %v242_v3  ;;  %v6807_v3 = vld [vmem:[#allocation33_spill] sm:$0xff] }
 0x1ae   :  { %v297_v60 = vadd.f32 %v6803_v55, %v243_v51 }
 0x24b   :  { %v624_v52 = vpop.f32.mrf.mxu0  ;;  %v695_v50 = vpop.f32.mrf.mxu1 }
 0x24c   :  { %v700_v49 = vadd.f32 %v624_v52, %v294_v46  ;;  %v702_v46 = vadd.f32 %v695_v50, %v296_v62  ;;  %v6809_v62 = vld [vmem:[#allocation35_spill] sm:$0xff] }
 0x24d   :  { %v626_v63 = vpop.f32.mrf.mxu0  ;;  %v697_v59 = vpop.f32.mrf.mxu1 }
 0x24e   :  { %v3655_v48 = vmul.f32 -1.442695, %v700_v49  ;;  %v701_v2 = vadd.f32 %v626_v63, %v295_v56  ;;  %v703_v45 = vadd.f32 %v697_v59, %v297_v60  ;;  %v6806_v59 = vld [vmem:[#allocation32_spill] sm:$0xff] }
 0x250   :  { %3739 = vpow2.f32 %v3655_v48  ;;  %v3656_v0 = vmul.f32 -1.442695, %v701_v2  ;;  %v3657_v53 = vmul.f32 -1.442695, %v703_v45 }
 0x252   :  { %3741 = vpow2.f32 %v3656_v0 }
 0x253   :  { %3743 = vpow2.f32 %v3657_v53  ;;  %v6810_v53 = vld [vmem:[#allocation36_spill] sm:$0xff] }
 0x25d   :  { %v3740_v57 = vpop.eup %3739 }
 0x25e   :  { %v707_v52 = vadd.f32 1.0, %v3740_v57 }
 0x25f   :  { %v3742_v49 = vpop.eup %3741 }
 0x260   :  { %3745 = vrcp.f32 %v707_v52  ;;  %v713_v56 = vadd.f32 1.0, %v3742_v49  ;;  %v3744_v48 = vpop.eup %3743  ;;  %v6812_v52 = vld [vmem:[#allocation38_spill] sm:$0xff]  ;;  %v6813_v49 = vld [vmem:[#allocation40_spill] sm:$0xff] }
 0x261   :  { %3747 = vtanh.f32 %v702_v46  ;;  %v720_v0 = vadd.f32 1.0, %v3744_v48  ;;  %v6811_v46 = vld [vmem:[#allocation37_spill] sm:$0xff]  ;;  %v6815_v48 = vld [vmem:[#allocation42_spill] sm:$0xff] }
 0x262   :  { %3749 = vrcp.f32 %v713_v56  ;;  %v6814_v56 = vld [vmem:[#allocation41_spill] sm:$0xff] }
 0x263   :  { %3751 = vrcp.f32 %v720_v0  ;;  %v6819_v0 = vld [vmem:[#allocation46_spill] sm:$0xff] }
 0x26d   :  { %v3746_v63 = vpop.eup %3745 }
 0x26e   :  { %v3748_v2 = vpop.eup %3747 }
 0x26f   :  { %v3750_v51 = vpop.eup %3749  ;;  %v724_v55 = vmul.f32 %v3748_v2, %v3746_v63  ;;  %v6816_v63 = vld [vmem:[#allocation43_spill] sm:$0xff]  ;;  %v6817_v2 = vld [vmem:[#allocation44_spill] sm:$0xff] }
 0x270   :  { %v723_v60 = vmul.f32 %v3750_v51, %v4811_v58  ;;  %v3752_v45 = vpop.eup %3751  ;;  %v6805_v58 = vld [vmem:[#allocation31_spill] sm:$0xff]  ;;  %v6818_v51 = vld [vmem:[#allocation45_spill] sm:$0xff] }
 0x272   :  { %v4895_v47 = vadd.f32 %v724_v55, %v723_v60  ;;  %v6808_v55 = vld [vmem:[#allocation34_spill] sm:$0xff]  ;;  %v6820_v60 = vld [vmem:[#allocation47_spill] sm:$0xff] }
 0x274   :  { %3753 = vtanh.f32 %v4895_v47 }
 0x281   :  { %v3754_v50 = vpop.eup %3753 }
 0x282   :  { %v4898_v57 = vmul.f32 %v3754_v50, %v3752_v45  ;;  %v6821_v45 = vld [vmem:[#allocation49_spill] sm:$0xff]  ;;  %v6822_v50 = vld [vmem:[#allocation50_spill] sm:$0xff] }
 0x284   :  { %6804 = vst [vmem:[#allocation59_spill] sm:$0xff] %v4898_v57  ;;  %793 = vmatmul.mubr.f32.vlgmr.msra.gmra.mxu0 %v4898_v57  ;;  %864 = vmatmul.mubr.f32.vlgmr.msra.gmra.mxu1 %v4898_v57  ;;  %v6823_v57 = vld [vmem:[#allocation52_spill] sm:$0xff] }
 0x285   :  { %899 = vmatpush1.msra.mxu0 %v4499_v4  ;;  %970 = vmatpush1.msra.mxu1 %v4503_v5 }
 0x286   :  { %900 = vmatprep.subr.mxu0 %v4505_v6  ;;  %971 = vmatprep.subr.mxu1 %v4507_v7 }
 0x287   :  { %901 = vmatpush1.msra.mxu0 %v4511_v8  ;;  %972 = vmatpush1.msra.mxu1 %v4513_v9 }
 0x288   :  { %902 = vmatprep.subr.mxu0 %v4515_v10  ;;  %973 = vmatprep.subr.mxu1 %v4519_v11 }
 0x289   :  { %903 = vmatpush1.msra.mxu0 %v4521_v12  ;;  %974 = vmatpush1.msra.mxu1 %v4523_v13 }
 0x28a   :  { %904 = vmatprep.subr.mxu0 %v4527_v14  ;;  %975 = vmatprep.subr.mxu1 %v4529_v15 }
 0x28b   :  { %905 = vmatpush1.msra.mxu0 %v4533_v16  ;;  %976 = vmatpush1.msra.mxu1 %v4535_v17 }
 0x28c   :  { %906 = vmatprep.subr.mxu0 %v4539_v18  ;;  %977 = vmatprep.subr.mxu1 %v4541_v19 }
 0x28d   :  { %907 = vmatpush1.msra.mxu0 %v4545_v20  ;;  %978 = vmatpush1.msra.mxu1 %v4547_v21 }
 0x28e   :  { %908 = vmatprep.subr.mxu0 %v4551_v22  ;;  %979 = vmatprep.subr.mxu1 %v4553_v23 }
 0x28f   :  { %909 = vmatpush1.msra.mxu0 %v4557_v24  ;;  %980 = vmatpush1.msra.mxu1 %v4559_v25 }
 0x290   :  { %910 = vmatprep.subr.mxu0 %v4563_v26  ;;  %981 = vmatprep.subr.mxu1 %v4565_v27 }
 0x291   :  { %911 = vmatpush1.msra.mxu0 %v4569_v28  ;;  %982 = vmatpush1.msra.mxu1 %v4571_v29 }
 0x292   :  { %912 = vmatprep.subr.mxu0 %v4575_v30  ;;  %983 = vmatprep.subr.mxu1 %v4577_v31 }
 0x293   :  { %913 = vmatpush1.msra.mxu0 %v4581_v32  ;;  %984 = vmatpush1.msra.mxu1 %v4583_v33 }
 0x294   :  { %914 = vmatprep.subr.mxu0 %v4587_v34  ;;  %985 = vmatprep.subr.mxu1 %v4589_v35 }
 0x295   :  { %915 = vmatpush1.msra.mxu0 %v4593_v36  ;;  %986 = vmatpush1.msra.mxu1 %v4595_v37 }
 0x296   :  { %916 = vmatprep.subr.mxu0 %v4599_v38  ;;  %987 = vmatprep.subr.mxu1 %v4601_v39 }
 0x297   :  { %917 = vmatpush1.msra.mxu0 %v4605_v40  ;;  %988 = vmatpush1.msra.mxu1 %v4607_v41 }
 0x298   :  { %918 = vmatprep.subr.mxu0 %v4611_v42  ;;  %989 = vmatprep.subr.mxu1 %v4613_v43 }
 0x299   :  { %919 = vmatpush1.msra.mxu0 %v6805_v58  ;;  %990 = vmatpush1.msra.mxu1 %v6806_v59 }
 0x29a   :  { %920 = vmatprep.subr.mxu0 %v6807_v3  ;;  %991 = vmatprep.subr.mxu1 %v6808_v55 }
 0x29b   :  { %921 = vmatpush1.msra.mxu0 %v6809_v62  ;;  %992 = vmatpush1.msra.mxu1 %v6810_v53  ;;  %v6834_v53 = vld [vmem:[#allocation60_spill] sm:$0xff] }
 0x29c   :  { %922 = vmatprep.subr.mxu0 %v6811_v46  ;;  %993 = vmatprep.subr.mxu1 %v6812_v52 }
 0x29d   :  { %923 = vmatpush1.msra.mxu0 %v6813_v49  ;;  %994 = vmatpush1.msra.mxu1 %v6814_v56  ;;  %v6824_v49 = vld [vmem:[#allocation53_spill] sm:$0xff]  ;;  %v6825_v56 = vld [vmem:[#allocation54_spill] sm:$0xff] }
 0x29e   :  { %924 = vmatprep.subr.mxu0 %v6815_v48  ;;  %995 = vmatprep.subr.mxu1 %v6816_v63  ;;  %v6826_v48 = vmov 0.0   ;;  %v6827_v63 = vld [vmem:[#allocation55_spill] sm:$0xff] }
 0x29f   :  { %925 = vmatpush1.msra.mxu0 %v6817_v2  ;;  %996 = vmatpush1.msra.mxu1 %v6818_v51  ;;  %v6828_v51 = vld [vmem:[#allocation29_spill] sm:$0xff] }
 0x2a0   :  { %926 = vmatprep.subr.mxu0 %v6819_v0  ;;  %997 = vmatprep.subr.mxu1 %v6820_v60  ;;  %v6829_v0 = vld [vmem:[#allocation30_spill] sm:$0xff]  ;;  %v6830_v60 = vld [vmem:[#allocation61_spill] sm:$0xff] }
 0x2a1   :  { %927 = vmatpush1.msra.mxu0 %v6821_v45  ;;  %998 = vmatpush1.msra.mxu1 %v6822_v50  ;;  %v6831_v45 = vld [vmem:[#allocation51_spill] sm:$0xff]  ;;  %v178_v50 = vpop.permute.xlu1 %177 }
 0x2a2   :  { %928 = vmatprep.subr.mxu0 %v6823_v57  ;;  %999 = vmatprep.subr.mxu1 %v6824_v49  ;;  %v182_v2 = vrot.slane %v6831_v45, %v6830_v60  ;;  %v6832_v57 = vld [vmem:[#allocation57_spill] sm:$0xff]  ;;  %v6833_v49 = vld [vmem:[#allocation58_spill] sm:$0xff] }
 0x2a3   :  { %929 = vmatpush1.msra.mxu0 %v6825_v56  ;;  %962 = vmatprep.mubr.f32.mxu0 %v6826_v48  ;;  %v244_v52 = vmul.f32 %v6832_v57, %v178_v50  ;;  %v245_v46 = vmul.f32 %v6833_v49, %v178_v50  ;;  %v246_v49 = vmul.f32 %v4803_v44, %v178_v50 }
 0x2a4   :  { %1000 = vmatpush1.msra.mxu1 %v6827_v63  ;;  %1033 = vmatprep.mubr.f32.mxu1 %v6826_v48 }
 0x2a5   :  { %1068 = vmatprep.subr.mxu0 %v6828_v51  ;;  %1139 = vmatprep.subr.mxu1 %v6829_v0  ;;  %v298_v56 = vadd.f32 %v6800_v1, %v244_v52  ;;  %v299_v62 = vadd.f32 %v6834_v53, %v245_v46  ;;  %v247_v0 = vmul.f32 %v6802_v54, %v178_v50 }
 0x2a6   :  { %184 = vbcast.lane.b32.xlu1 %v182_v2, 256  ;;  %v6835_v2 = vld [vmem:[#allocation64_spill] sm:$0xff]  ;;  %v300_v52 = vadd.f32 %v4807_v61, %v246_v49 }
 0x2a7   :  { %v301_v45 = vadd.f32 %v6835_v2, %v247_v0 }
 0x344   :  { %v794_v63 = vpop.f32.mrf.mxu0  ;;  %v865_v59 = vpop.f32.mrf.mxu1 }
 0x345   :  { %v870_v55 = vadd.f32 %v794_v63, %v298_v56  ;;  %v872_v56 = vadd.f32 %v865_v59, %v300_v52 }
 0x346   :  { %v796_v48 = vpop.f32.mrf.mxu0  ;;  %v867_v57 = vpop.f32.mrf.mxu1 }
 0x347   :  { %v3658_v3 = vmul.f32 -1.442695, %v870_v55  ;;  %v871_v51 = vadd.f32 %v796_v48, %v299_v62  ;;  %v873_v58 = vadd.f32 %v867_v57, %v301_v45 }
 0x349   :  { %3755 = vpow2.f32 %v3658_v3  ;;  %v3659_v60 = vmul.f32 -1.442695, %v871_v51  ;;  %v3660_v46 = vmul.f32 -1.442695, %v873_v58 }
 0x34b   :  { %3757 = vpow2.f32 %v3659_v60 }
 0x34c   :  { %3759 = vpow2.f32 %v3660_v46  ;;  %v6867_v46 = vld [vmem:[#allocation64_spill] sm:$0xff] }
 0x356   :  { %v3756_v53 = vpop.eup %3755 }
 0x357   :  { %v877_v63 = vadd.f32 1.0, %v3756_v53 }
 0x358   :  { %v3758_v55 = vpop.eup %3757 }
 0x359   :  { %3761 = vrcp.f32 %v877_v63  ;;  %v883_v62 = vadd.f32 1.0, %v3758_v55  ;;  %v3760_v3 = vpop.eup %3759 }
 0x35a   :  { %3763 = vtanh.f32 %v872_v56  ;;  %v890_v0 = vadd.f32 1.0, %v3760_v3 }
 0x35b   :  { %3765 = vrcp.f32 %v883_v62 }
 0x35c   :  { %3767 = vrcp.f32 %v890_v0 }
 0x366   :  { %v3762_v48 = vpop.eup %3761 }
 0x367   :  { %v3764_v60 = vpop.eup %3763 }
 0x368   :  { %v3766_v51 = vpop.eup %3765  ;;  %v894_v2 = vmul.f32 %v3764_v60, %v3762_v48 }
 0x369   :  { %v893_v57 = vmul.f32 %v3766_v51, %v4895_v47  ;;  %v3768_v58 = vpop.eup %3767 }
 0x36b   :  { %v4979_v45 = vadd.f32 %v894_v2, %v893_v57 }
 0x36d   :  { %3769 = vtanh.f32 %v4979_v45 }
 0x37a   :  { %v3770_v59 = vpop.eup %3769 }
 0x37b   :  { %v4982_v53 = vmul.f32 %v3770_v59, %v3768_v58 }
 0x37d   :  { %6836 = vst [vmem:[#allocation62_spill] sm:$0xff] %v4982_v53  ;;  %963 = vmatmul.mubr.f32.vlgmr.msra.gmra.mxu0 %v4982_v53  ;;  %1034 = vmatmul.mubr.f32.vlgmr.msra.gmra.mxu1 %v4982_v53  ;;  %v5224_v53 = vld [vmem:[#allocation8 + $0x48] sm:$0xff] }
 0x37e   :  { %1069 = vmatpush1.msra.mxu0 %v4499_v4  ;;  %1140 = vmatpush1.msra.mxu1 %v4503_v5  ;;  %v6837_v4 = vld [vmem:[#allocation31_spill] sm:$0xff]  ;;  %v6838_v5 = vld [vmem:[#allocation32_spill] sm:$0xff] }
 0x37f   :  { %1070 = vmatprep.subr.mxu0 %v4505_v6  ;;  %1141 = vmatprep.subr.mxu1 %v4507_v7  ;;  %v6839_v6 = vld [vmem:[#allocation33_spill] sm:$0xff]  ;;  %v6840_v7 = vld [vmem:[#allocation34_spill] sm:$0xff] }
 0x380   :  { %1071 = vmatpush1.msra.mxu0 %v4511_v8  ;;  %1142 = vmatpush1.msra.mxu1 %v4513_v9  ;;  %v6841_v8 = vld [vmem:[#allocation35_spill] sm:$0xff]  ;;  %v6842_v9 = vld [vmem:[#allocation36_spill] sm:$0xff] }
 0x381   :  { %1072 = vmatprep.subr.mxu0 %v4515_v10  ;;  %1143 = vmatprep.subr.mxu1 %v4519_v11  ;;  %v6843_v10 = vld [vmem:[#allocation37_spill] sm:$0xff]  ;;  %v6844_v11 = vld [vmem:[#allocation38_spill] sm:$0xff] }
 0x382   :  { %1073 = vmatpush1.msra.mxu0 %v4521_v12  ;;  %1144 = vmatpush1.msra.mxu1 %v4523_v13  ;;  %v6845_v12 = vld [vmem:[#allocation40_spill] sm:$0xff]  ;;  %v6846_v13 = vld [vmem:[#allocation41_spill] sm:$0xff] }
 0x383   :  { %1074 = vmatprep.subr.mxu0 %v4527_v14  ;;  %1145 = vmatprep.subr.mxu1 %v4529_v15  ;;  %v6847_v14 = vld [vmem:[#allocation42_spill] sm:$0xff]  ;;  %v6848_v15 = vld [vmem:[#allocation43_spill] sm:$0xff] }
 0x384   :  { %1075 = vmatpush1.msra.mxu0 %v4533_v16  ;;  %1146 = vmatpush1.msra.mxu1 %v4535_v17  ;;  %v6849_v16 = vld [vmem:[#allocation44_spill] sm:$0xff]  ;;  %v6850_v17 = vld [vmem:[#allocation45_spill] sm:$0xff]  ;;  %6879 = vst [vmem:[#allocation43_spill] sm:$0xff] %v5224_v53 }
 0x385   :  { %1076 = vmatprep.subr.mxu0 %v4539_v18  ;;  %1147 = vmatprep.subr.mxu1 %v4541_v19  ;;  %v6851_v18 = vld [vmem:[#allocation46_spill] sm:$0xff]  ;;  %v6852_v19 = vld [vmem:[#allocation47_spill] sm:$0xff] }
 0x386   :  { %1077 = vmatpush1.msra.mxu0 %v4545_v20  ;;  %1148 = vmatpush1.msra.mxu1 %v4547_v21  ;;  %v6853_v20 = vld [vmem:[#allocation49_spill] sm:$0xff]  ;;  %v6854_v21 = vld [vmem:[#allocation50_spill] sm:$0xff] }
 0x387   :  { %1078 = vmatprep.subr.mxu0 %v4551_v22  ;;  %1149 = vmatprep.subr.mxu1 %v4553_v23  ;;  %v6855_v22 = vld [vmem:[#allocation52_spill] sm:$0xff]  ;;  %v6856_v23 = vld [vmem:[#allocation53_spill] sm:$0xff] }
 0x388   :  { %1079 = vmatpush1.msra.mxu0 %v4557_v24  ;;  %1150 = vmatpush1.msra.mxu1 %v4559_v25  ;;  %v6857_v24 = vld [vmem:[#allocation54_spill] sm:$0xff]  ;;  %v6858_v25 = vmov 0.0  }
 0x389   :  { %1080 = vmatprep.subr.mxu0 %v4563_v26  ;;  %1151 = vmatprep.subr.mxu1 %v4565_v27  ;;  %v6859_v26 = vld [vmem:[#allocation55_spill] sm:$0xff]  ;;  %v5050_v27 = vld [vmem:[#allocation8 + $0x1e8] sm:$0xff] }
 0x38a   :  { %1081 = vmatpush1.msra.mxu0 %v4569_v28  ;;  %1152 = vmatpush1.msra.mxu1 %v4571_v29  ;;  %6860 = vst [vmem:[#allocation29_spill] sm:$0xff] %v5050_v27  ;;  %v5053_v28 = vld [vmem:[#allocation8 + $0x1f8] sm:$0xff] }
 0x38b   :  { %1082 = vmatprep.subr.mxu0 %v4575_v30  ;;  %1153 = vmatprep.subr.mxu1 %v4577_v31  ;;  %6861 = vst [vmem:[#allocation30_spill] sm:$0xff] %v5053_v28  ;;  %v6862_v29 = vld [vmem:[#allocation39_spill] sm:$0xff] }
 0x38c   :  { %1083 = vmatpush1.msra.mxu0 %v4581_v32  ;;  %1154 = vmatpush1.msra.mxu1 %v4583_v33  ;;  %v188_v30 = vsub.s32 4, %v6862_v29  ;;  %v6863_v31 = vld [vmem:[#allocation51_spill] sm:$0xff]  ;;  %v185_v33 = vpop.permute.xlu1 %184 }
 0x38d   :  { %1084 = vmatprep.subr.mxu0 %v4587_v34  ;;  %1155 = vmatprep.subr.mxu1 %v4589_v35  ;;  %v6864_v34 = vld [vmem:[#allocation57_spill] sm:$0xff]  ;;  %v251_v50 = vmul.f32 %v6802_v54, %v185_v33  ;;  %v250_v55 = vmul.f32 %v4803_v44, %v185_v33 }
 0x38e   :  { %1085 = vmatpush1.msra.mxu0 %v4593_v36  ;;  %1156 = vmatpush1.msra.mxu1 %v4595_v37  ;;  %v189_v32 = vrot.slane %v6863_v31, %v188_v30  ;;  %v248_v35 = vmul.f32 %v6864_v34, %v185_v33  ;;  %v6865_v36 = vld [vmem:[#allocation58_spill] sm:$0xff] }
 0x38f   :  { %1086 = vmatprep.subr.mxu0 %v4599_v38  ;;  %1157 = vmatprep.subr.mxu1 %v4601_v39  ;;  %v249_v37 = vmul.f32 %v6865_v36, %v185_v33  ;;  %v6866_v39 = vld [vmem:[#allocation60_spill] sm:$0xff]  ;;  %v305_v56 = vadd.f32 %v6867_v46, %v251_v50  ;;  %v304_v3 = vadd.f32 %v4807_v61, %v250_v55  ;;  %v5113_v30 = vld [vmem:[#allocation8 + $0x190] sm:$0xff]  ;;  %v5116_v31 = vld [vmem:[#allocation8 + $0x168] sm:$0xff] }
 0x390   :  { %1087 = vmatpush1.msra.mxu0 %v4605_v40  ;;  %1158 = vmatpush1.msra.mxu1 %v4607_v41  ;;  %v302_v38 = vadd.f32 %v6800_v1, %v248_v35  ;;  %v5122_v33 = vld [vmem:[#allocation8 + $0x160] sm:$0xff]  ;;  %v5125_v35 = vld [vmem:[#allocation8 + $0x170] sm:$0xff]  ;;  %v5152_v50 = vld [vmem:[#allocation8 + $0x108] sm:$0xff] }
 0x391   :  { %1088 = vmatprep.subr.mxu0 %v4611_v42  ;;  %1159 = vmatprep.subr.mxu1 %v4613_v43  ;;  %v303_v40 = vadd.f32 %v6866_v39, %v249_v37  ;;  %v5128_v37 = vld [vmem:[#allocation8 + $0x148] sm:$0xff]  ;;  %v5167_v55 = vld [vmem:[#allocation8 + $0xf8] sm:$0xff] }
 0x392   :  { %1089 = vmatpush1.msra.mxu0 %v6837_v4  ;;  %1160 = vmatpush1.msra.mxu1 %v6838_v5 }
 0x393   :  { %1090 = vmatprep.subr.mxu0 %v6839_v6  ;;  %1161 = vmatprep.subr.mxu1 %v6840_v7 }
 0x394   :  { %1091 = vmatpush1.msra.mxu0 %v6841_v8  ;;  %1162 = vmatpush1.msra.mxu1 %v6842_v9 }
 0x395   :  { %1092 = vmatprep.subr.mxu0 %v6843_v10  ;;  %1163 = vmatprep.subr.mxu1 %v6844_v11 }
 0x396   :  { %1093 = vmatpush1.msra.mxu0 %v6845_v12  ;;  %1164 = vmatpush1.msra.mxu1 %v6846_v13 }
 0x397   :  { %1094 = vmatprep.subr.mxu0 %v6847_v14  ;;  %1165 = vmatprep.subr.mxu1 %v6848_v15  ;;  %v5074_v14 = vld [vmem:[#allocation8 + $0x1e0] sm:$0xff]  ;;  %v5077_v15 = vld [vmem:[#allocation8 + $0x1f0] sm:$0xff] }
 0x398   :  { %1095 = vmatpush1.msra.mxu0 %v6849_v16  ;;  %1166 = vmatpush1.msra.mxu1 %v6850_v17  ;;  %v5083_v16 = vld [vmem:[#allocation8 + $0x1d8] sm:$0xff]  ;;  %v5086_v17 = vld [vmem:[#allocation8 + $0x1c0] sm:$0xff] }
 0x399   :  { %1096 = vmatprep.subr.mxu0 %v6851_v18  ;;  %1167 = vmatprep.subr.mxu1 %v6852_v19  ;;  %v5089_v18 = vld [vmem:[#allocation8 + $0x1d0] sm:$0xff]  ;;  %v5092_v19 = vld [vmem:[#allocation8 + $0x1a8] sm:$0xff] }
 0x39a   :  { %1097 = vmatpush1.msra.mxu0 %v6853_v20  ;;  %1168 = vmatpush1.msra.mxu1 %v6854_v21  ;;  %v5095_v20 = vld [vmem:[#allocation8 + $0x1b8] sm:$0xff]  ;;  %v5098_v21 = vld [vmem:[#allocation8 + $0x1a0] sm:$0xff] }
 0x39b   :  { %1098 = vmatprep.subr.mxu0 %v6855_v22  ;;  %1169 = vmatprep.subr.mxu1 %v6856_v23  ;;  %v5101_v22 = vld [vmem:[#allocation8 + $0x1b0] sm:$0xff]  ;;  %v5104_v23 = vld [vmem:[#allocation8 + $0x188] sm:$0xff] }
 0x39c   :  { %1099 = vmatpush1.msra.mxu0 %v6857_v24  ;;  %1132 = vmatprep.mubr.f32.mxu0 %v6858_v25  ;;  %v5107_v24 = vld [vmem:[#allocation8 + $0x198] sm:$0xff] }
 0x39d   :  { %1170 = vmatpush1.msra.mxu1 %v6859_v26  ;;  %1203 = vmatprep.mubr.f32.mxu1 %v6858_v25  ;;  %v5110_v26 = vld [vmem:[#allocation8 + $0x180] sm:$0xff] }
 0x39e   :  { %1238 = vmatprep.subr.mxu0 %v5050_v27  ;;  %1309 = vmatprep.subr.mxu1 %v5053_v28 }
 0x39f   :  { %191 = vbcast.lane.b32.xlu0 %v189_v32, 256  ;;  %v5119_v32 = vld [vmem:[#allocation8 + $0x178] sm:$0xff] }
 0x43d   :  { %v964_v41 = vpop.f32.mrf.mxu0  ;;  %v1035_v2 = vpop.f32.mrf.mxu1 }
 0x43e   :  { %v1040_v42 = vadd.f32 %v964_v41, %v302_v38  ;;  %v1042_v51 = vadd.f32 %v1035_v2, %v304_v3  ;;  %v5131_v38 = vld [vmem:[#allocation8 + $0x158] sm:$0xff]  ;;  %v5137_v41 = vld [vmem:[#allocation8 + $0x150] sm:$0xff] }
 0x43f   :  { %v966_v43 = vpop.f32.mrf.mxu0  ;;  %v1037_v63 = vpop.f32.mrf.mxu1  ;;  %v5155_v2 = vld [vmem:[#allocation8 + $0x118] sm:$0xff]  ;;  %v5173_v3 = vld [vmem:[#allocation8 + $0xf0] sm:$0xff] }
 0x440   :  { %v3661_v47 = vmul.f32 -1.442695, %v1040_v42  ;;  %v1041_v49 = vadd.f32 %v966_v43, %v303_v40  ;;  %v1043_v62 = vadd.f32 %v1037_v63, %v305_v56  ;;  %v5134_v40 = vld [vmem:[#allocation8 + $0x140] sm:$0xff]  ;;  %v5140_v42 = vld [vmem:[#allocation8 + $0x128] sm:$0xff]  ;;  %v5143_v43 = vld [vmem:[#allocation8 + $0x138] sm:$0xff] }
 0x441   :  { %v5161_v56 = vld [vmem:[#allocation8 + $0x110] sm:$0xff]  ;;  %v5164_v63 = vld [vmem:[#allocation8 + $0xe8] sm:$0xff] }
 0x442   :  { %3771 = vpow2.f32 %v3661_v47  ;;  %v3662_v52 = vmul.f32 -1.442695, %v1041_v49  ;;  %v3663_v48 = vmul.f32 -1.442695, %v1043_v62  ;;  %v5146_v47 = vld [vmem:[#allocation8 + $0x120] sm:$0xff]  ;;  %v5149_v49 = vld [vmem:[#allocation8 + $0x130] sm:$0xff] }
 0x443   :  { %v5170_v62 = vld [vmem:[#allocation8 + $0xe0] sm:$0xff] }
 0x444   :  { %3773 = vpow2.f32 %v3662_v52  ;;  %v5158_v52 = vld [vmem:[#allocation8 + $0x100] sm:$0xff] }
 0x445   :  { %3775 = vpow2.f32 %v3663_v48  ;;  %v5176_v48 = vld [vmem:[#allocation8 + $0xc8] sm:$0xff] }
 0x44f   :  { %v3772_v60 = vpop.eup %3771 }
 0x450   :  { %v1047_v0 = vadd.f32 1.0, %v3772_v60  ;;  %v5179_v60 = vld [vmem:[#allocation8 + $0xd8] sm:$0xff] }
 0x451   :  { %v3774_v57 = vpop.eup %3773 }
 0x452   :  { %3777 = vrcp.f32 %v1047_v0  ;;  %v1053_v58 = vadd.f32 1.0, %v3774_v57  ;;  %v3776_v59 = vpop.eup %3775  ;;  %v5185_v0 = vld [vmem:[#allocation8 + $0xd0] sm:$0xff]  ;;  %v5188_v57 = vld [vmem:[#allocation8 + $0xa8] sm:$0xff] }
 0x453   :  { %3779 = vtanh.f32 %v1042_v51  ;;  %v1060_v7 = vadd.f32 1.0, %v3776_v59  ;;  %v5182_v51 = vld [vmem:[#allocation8 + $0xc0] sm:$0xff] }
 0x454   :  { %3781 = vrcp.f32 %v1053_v58  ;;  %v5191_v58 = vld [vmem:[#allocation8 + $0xb8] sm:$0xff]  ;;  %v5194_v59 = vld [vmem:[#allocation8 + $0xa0] sm:$0xff] }
 0x455   :  { %3783 = vrcp.f32 %v1060_v7  ;;  %6869 = vst [vmem:[#allocation32_spill] sm:$0xff] %v5194_v59  ;;  %v5206_v7 = vld [vmem:[#allocation8 + $0x80] sm:$0xff] }
 0x456   :  { %6873 = vst [vmem:[#allocation36_spill] sm:$0xff] %v5206_v7 }
 0x45f   :  { %v3778_v4 = vpop.eup %3777 }
 0x460   :  { %v3780_v5 = vpop.eup %3779 }
 0x461   :  { %v3782_v6 = vpop.eup %3781  ;;  %v1064_v8 = vmul.f32 %v3780_v5, %v3778_v4  ;;  %v5197_v4 = vld [vmem:[#allocation8 + $0xb0] sm:$0xff]  ;;  %v5200_v5 = vld [vmem:[#allocation8 + $0x88] sm:$0xff] }
 0x462   :  { %v1063_v9 = vmul.f32 %v3782_v6, %v4979_v45  ;;  %v3784_v11 = vpop.eup %3783  ;;  %v5080_v45 = vld [vmem:[#allocation8 + $0x1c8] sm:$0xff]  ;;  %6870 = vst [vmem:[#allocation33_spill] sm:$0xff] %v5197_v4  ;;  %6871 = vst [vmem:[#allocation34_spill] sm:$0xff] %v5200_v5  ;;  %v5203_v6 = vld [vmem:[#allocation8 + $0x98] sm:$0xff] }
 0x463   :  { %6872 = vst [vmem:[#allocation35_spill] sm:$0xff] %v5203_v6 }
 0x464   :  { %v5067_v10 = vadd.f32 %v1064_v8, %v1063_v9  ;;  %v5209_v8 = vld [vmem:[#allocation8 + $0x90] sm:$0xff]  ;;  %v5212_v9 = vld [vmem:[#allocation8 + $0x68] sm:$0xff] }
 0x465   :  { %6874 = vst [vmem:[#allocation37_spill] sm:$0xff] %v5209_v8  ;;  %6875 = vst [vmem:[#allocation38_spill] sm:$0xff] %v5212_v9 }
 0x466   :  { %3785 = vtanh.f32 %v5067_v10 }
 0x473   :  { %v3786_v12 = vpop.eup %3785 }
 0x474   :  { %v5070_v13 = vmul.f32 %v3786_v12, %v3784_v11  ;;  %v5215_v11 = vld [vmem:[#allocation8 + $0x78] sm:$0xff]  ;;  %v5218_v12 = vld [vmem:[#allocation8 + $0x60] sm:$0xff] }
 0x475   :  { %6876 = vst [vmem:[#allocation40_spill] sm:$0xff] %v5215_v11  ;;  %6877 = vst [vmem:[#allocation41_spill] sm:$0xff] %v5218_v12 }
 0x476   :  { %6868 = vst [vmem:[#allocation31_spill] sm:$0xff] %v5070_v13  ;;  %1133 = vmatmul.mubr.f32.vlgmr.msra.gmra.mxu0 %v5070_v13  ;;  %1204 = vmatmul.mubr.f32.vlgmr.msra.gmra.mxu1 %v5070_v13  ;;  %v5221_v13 = vld [vmem:[#allocation8 + $0x70] sm:$0xff] }
 0x477   :  { %1239 = vmatpush1.msra.mxu0 %v5074_v14  ;;  %1310 = vmatpush1.msra.mxu1 %v5077_v15  ;;  %6878 = vst [vmem:[#allocation42_spill] sm:$0xff] %v5221_v13 }
 0x478   :  { %1240 = vmatprep.subr.mxu0 %v5080_v45  ;;  %1311 = vmatprep.subr.mxu1 %v5083_v16 }
 0x479   :  { %1241 = vmatpush1.msra.mxu0 %v5086_v17  ;;  %1312 = vmatpush1.msra.mxu1 %v5089_v18 }
 0x47a   :  { %1242 = vmatprep.subr.mxu0 %v5092_v19  ;;  %1313 = vmatprep.subr.mxu1 %v5095_v20 }
 0x47b   :  { %1243 = vmatpush1.msra.mxu0 %v5098_v21  ;;  %1314 = vmatpush1.msra.mxu1 %v5101_v22 }
 0x47c   :  { %1244 = vmatprep.subr.mxu0 %v5104_v23  ;;  %1315 = vmatprep.subr.mxu1 %v5107_v24 }
 0x47d   :  { %1245 = vmatpush1.msra.mxu0 %v5110_v26  ;;  %1316 = vmatpush1.msra.mxu1 %v5113_v30 }
 0x47e   :  { %1246 = vmatprep.subr.mxu0 %v5116_v31  ;;  %1317 = vmatprep.subr.mxu1 %v5119_v32 }
 0x47f   :  { %1247 = vmatpush1.msra.mxu0 %v5122_v33  ;;  %1318 = vmatpush1.msra.mxu1 %v5125_v35 }
 0x480   :  { %1248 = vmatprep.subr.mxu0 %v5128_v37  ;;  %1319 = vmatprep.subr.mxu1 %v5131_v38 }
 0x481   :  { %1249 = vmatpush1.msra.mxu0 %v5134_v40  ;;  %1320 = vmatpush1.msra.mxu1 %v5137_v41 }
 0x482   :  { %1250 = vmatprep.subr.mxu0 %v5140_v42  ;;  %1321 = vmatprep.subr.mxu1 %v5143_v43 }
 0x483   :  { %1251 = vmatpush1.msra.mxu0 %v5146_v47  ;;  %1322 = vmatpush1.msra.mxu1 %v5149_v49 }
 0x484   :  { %1252 = vmatprep.subr.mxu0 %v5152_v50  ;;  %1323 = vmatprep.subr.mxu1 %v5155_v2 }
 0x485   :  { %1253 = vmatpush1.msra.mxu0 %v5158_v52  ;;  %1324 = vmatpush1.msra.mxu1 %v5161_v56 }
 0x486   :  { %1254 = vmatprep.subr.mxu0 %v5164_v63  ;;  %1325 = vmatprep.subr.mxu1 %v5167_v55 }
 0x487   :  { %1255 = vmatpush1.msra.mxu0 %v5170_v62  ;;  %1326 = vmatpush1.msra.mxu1 %v5173_v3 }
 0x488   :  { %1256 = vmatprep.subr.mxu0 %v5176_v48  ;;  %1327 = vmatprep.subr.mxu1 %v5179_v60 }
 0x489   :  { %1257 = vmatpush1.msra.mxu0 %v5182_v51  ;;  %1328 = vmatpush1.msra.mxu1 %v5185_v0 }
 0x48a   :  { %1258 = vmatprep.subr.mxu0 %v5188_v57  ;;  %1329 = vmatprep.subr.mxu1 %v5191_v58 }
 0x48b   :  { %1259 = vmatpush1.msra.mxu0 %v5194_v59  ;;  %1330 = vmatpush1.msra.mxu1 %v5197_v4 }
 0x48c   :  { %1260 = vmatprep.subr.mxu0 %v5200_v5  ;;  %1331 = vmatprep.subr.mxu1 %v5203_v6 }
 0x48d   :  { %1261 = vmatpush1.msra.mxu0 %v5206_v7  ;;  %1332 = vmatpush1.msra.mxu1 %v5209_v8  ;;  %v5227_v8 = vld [vmem:[#allocation8 + $0x58] sm:$0xff] }
 0x48e   :  { %1262 = vmatprep.subr.mxu0 %v5212_v9  ;;  %1333 = vmatprep.subr.mxu1 %v5215_v11  ;;  %6880 = vst [vmem:[#allocation44_spill] sm:$0xff] %v5227_v8  ;;  %v5230_v9 = vld [vmem:[#allocation8 + $0x40] sm:$0xff]  ;;  %v5233_v11 = vld [vmem:[#allocation8 + $0x50] sm:$0xff] }
 0x48f   :  { %1263 = vmatpush1.msra.mxu0 %v5218_v12  ;;  %1334 = vmatpush1.msra.mxu1 %v5221_v13  ;;  %6881 = vst [vmem:[#allocation45_spill] sm:$0xff] %v5230_v9  ;;  %6882 = vst [vmem:[#allocation46_spill] sm:$0xff] %v5233_v11  ;;  %v5236_v12 = vld [vmem:[#allocation8 + $0x28] sm:$0xff]  ;;  %v5239_v13 = vld [vmem:[#allocation8 + $0x38] sm:$0xff] }
 0x490   :  { %1264 = vmatprep.subr.mxu0 %v5224_v53  ;;  %1335 = vmatprep.subr.mxu1 %v5227_v8  ;;  %6883 = vst [vmem:[#allocation47_spill] sm:$0xff] %v5236_v12  ;;  %6884 = vst [vmem:[#allocation49_spill] sm:$0xff] %v5239_v13  ;;  %v5242_v53 = vld [vmem:[#allocation8 + $0x20] sm:$0xff]  ;;  %v5245_v8 = vld [vmem:[#allocation8 + $0x30] sm:$0xff] }
 0x491   :  { %1265 = vmatpush1.msra.mxu0 %v5230_v9  ;;  %1336 = vmatpush1.msra.mxu1 %v5233_v11  ;;  %6885 = vst [vmem:[#allocation50_spill] sm:$0xff] %v5242_v53  ;;  %6886 = vst [vmem:[#allocation52_spill] sm:$0xff] %v5245_v8  ;;  %v5248_v9 = vld [vmem:[#allocation8 + $0x8] sm:$0xff]  ;;  %v5251_v11 = vld [vmem:[#allocation8 + $0x18] sm:$0xff] }
 0x492   :  { %1266 = vmatprep.subr.mxu0 %v5236_v12  ;;  %1337 = vmatprep.subr.mxu1 %v5239_v13  ;;  %6887 = vst [vmem:[#allocation53_spill] sm:$0xff] %v5248_v9  ;;  %6888 = vst [vmem:[#allocation54_spill] sm:$0xff] %v5251_v11  ;;  %v5254_v12 = vld [vmem:[#allocation8] sm:$0xff]  ;;  %v5258_v13 = vld [vmem:[#allocation8 + $0x10] sm:$0xff] }
 0x493   :  { %1267 = vmatpush1.msra.mxu0 %v5242_v53  ;;  %1338 = vmatpush1.msra.mxu1 %v5245_v8  ;;  %6889 = vst [vmem:[#allocation55_spill] sm:$0xff] %v5254_v12  ;;  %6890 = vst [vmem:[#allocation51_spill] sm:$0xff] %v5258_v13  ;;  %v5265_v8 = vld [vmem:[#allocation3] sm:$0xff] }
 0x494   :  { %1268 = vmatprep.subr.mxu0 %v5248_v9  ;;  %1339 = vmatprep.subr.mxu1 %v5251_v11  ;;  %v195_v9 = vsub.s32 5, %v6862_v29  ;;  %6891 = vst [vmem:[#allocation66_spill] sm:$0xff] %v5265_v8 }
 0x495   :  { %1269 = vmatpush1.msra.mxu0 %v5254_v12  ;;  %1302 = vmatprep.mubr.f32.mxu0 %v6858_v25  ;;  %v192_v12 = vpop.permute.xlu0 %191 }
 0x496   :  { %1340 = vmatpush1.msra.mxu1 %v5258_v13  ;;  %1373 = vmatprep.mubr.f32.mxu1 %v6858_v25  ;;  %v196_v11 = vrot.slane %v5265_v8, %v195_v9  ;;  %v252_v53 = vmul.f32 %v6864_v34, %v192_v12  ;;  %v253_v7 = vmul.f32 %v6865_v36, %v192_v12 }
 0x497   :  { %1408 = vmatprep.subr.mxu0 %v5050_v27  ;;  %1479 = vmatprep.subr.mxu1 %v5053_v28  ;;  %v255_v29 = vmul.f32 %v6802_v54, %v192_v12  ;;  %v254_v36 = vmul.f32 %v4803_v44, %v192_v12 }
 0x498   :  { %198 = vbcast.lane.b32.xlu1 %v196_v11, 256  ;;  %v306_v13 = vadd.f32 %v6800_v1, %v252_v53  ;;  %v307_v25 = vadd.f32 %v6866_v39, %v253_v7 }
 0x499   :  { %v309_v11 = vadd.f32 %v6867_v46, %v255_v29  ;;  %v308_v53 = vadd.f32 %v4807_v61, %v254_v36 }
 0x536   :  { %v1134_v6 = vpop.f32.mrf.mxu0  ;;  %v1205_v59 = vpop.f32.mrf.mxu1 }
 0x537   :  { %v1210_v27 = vadd.f32 %v1134_v6, %v306_v13  ;;  %v1212_v13 = vadd.f32 %v1205_v59, %v308_v53  ;;  %v6897_v53 = vld [vmem:[#allocation36_spill] sm:$0xff] }
 0x538   :  { %v1136_v5 = vpop.f32.mrf.mxu0  ;;  %v1207_v34 = vpop.f32.mrf.mxu1 }
 0x539   :  { %v3664_v28 = vmul.f32 -1.442695, %v1210_v27  ;;  %v1211_v4 = vadd.f32 %v1136_v5, %v307_v25  ;;  %v1213_v8 = vadd.f32 %v1207_v34, %v309_v11  ;;  %v6896_v11 = vld [vmem:[#allocation35_spill] sm:$0xff] }
 0x53b   :  { %3787 = vpow2.f32 %v3664_v28  ;;  %v3665_v9 = vmul.f32 -1.442695, %v1211_v4  ;;  %v3666_v7 = vmul.f32 -1.442695, %v1213_v8  ;;  %v6895_v8 = vld [vmem:[#allocation34_spill] sm:$0xff] }
 0x53d   :  { %3789 = vpow2.f32 %v3665_v9 }
 0x53e   :  { %3791 = vpow2.f32 %v3666_v7  ;;  %v6898_v7 = vld [vmem:[#allocation37_spill] sm:$0xff] }
 0x548   :  { %v3788_v39 = vpop.eup %3787 }
 0x549   :  { %v1217_v6 = vadd.f32 1.0, %v3788_v39 }
 0x54a   :  { %v3790_v27 = vpop.eup %3789 }
 0x54b   :  { %3793 = vrcp.f32 %v1217_v6  ;;  %v1223_v25 = vadd.f32 1.0, %v3790_v27  ;;  %v3792_v28 = vpop.eup %3791  ;;  %v6900_v6 = vld [vmem:[#allocation40_spill] sm:$0xff]  ;;  %v6901_v27 = vld [vmem:[#allocation41_spill] sm:$0xff] }
 0x54c   :  { %3795 = vtanh.f32 %v1212_v13  ;;  %v1230_v9 = vadd.f32 1.0, %v3792_v28  ;;  %v6899_v13 = vld [vmem:[#allocation38_spill] sm:$0xff]  ;;  %v6903_v28 = vld [vmem:[#allocation43_spill] sm:$0xff] }
 0x54d   :  { %3797 = vrcp.f32 %v1223_v25  ;;  %v6902_v25 = vld [vmem:[#allocation42_spill] sm:$0xff] }
 0x54e   :  { %3799 = vrcp.f32 %v1230_v9  ;;  %v6907_v9 = vld [vmem:[#allocation47_spill] sm:$0xff] }
 0x558   :  { %v3794_v4 = vpop.eup %3793 }
 0x559   :  { %v3796_v5 = vpop.eup %3795 }
 0x55a   :  { %v3798_v29 = vpop.eup %3797  ;;  %v1234_v46 = vmul.f32 %v3796_v5, %v3794_v4  ;;  %v6904_v4 = vld [vmem:[#allocation44_spill] sm:$0xff]  ;;  %v6905_v5 = vld [vmem:[#allocation45_spill] sm:$0xff] }
 0x55b   :  { %v1233_v34 = vmul.f32 %v3798_v29, %v5067_v10  ;;  %v3800_v36 = vpop.eup %3799  ;;  %v6894_v10 = vld [vmem:[#allocation33_spill] sm:$0xff]  ;;  %v6906_v29 = vld [vmem:[#allocation46_spill] sm:$0xff] }
 0x55d   :  { %v5277_v12 = vadd.f32 %v1234_v46, %v1233_v34  ;;  %v6893_v46 = vld [vmem:[#allocation32_spill] sm:$0xff]  ;;  %v6908_v34 = vld [vmem:[#allocation49_spill] sm:$0xff] }
 0x55f   :  { %3801 = vtanh.f32 %v5277_v12 }
 0x56c   :  { %v3802_v39 = vpop.eup %3801 }
 0x56d   :  { %v5280_v59 = vmul.f32 %v3802_v39, %v3800_v36  ;;  %v6909_v36 = vld [vmem:[#allocation50_spill] sm:$0xff]  ;;  %v6910_v39 = vld [vmem:[#allocation52_spill] sm:$0xff] }
 0x56f   :  { %6892 = vst [vmem:[#allocation67_spill] sm:$0xff] %v5280_v59  ;;  %1303 = vmatmul.mubr.f32.vlgmr.msra.gmra.mxu0 %v5280_v59  ;;  %1374 = vmatmul.mubr.f32.vlgmr.msra.gmra.mxu1 %v5280_v59  ;;  %v6911_v59 = vld [vmem:[#allocation53_spill] sm:$0xff] }
 0x570   :  { %1409 = vmatpush1.msra.mxu0 %v5074_v14  ;;  %1480 = vmatpush1.msra.mxu1 %v5077_v15 }
 0x571   :  { %1410 = vmatprep.subr.mxu0 %v5080_v45  ;;  %1481 = vmatprep.subr.mxu1 %v5083_v16 }
 0x572   :  { %1411 = vmatpush1.msra.mxu0 %v5086_v17  ;;  %1482 = vmatpush1.msra.mxu1 %v5089_v18 }
 0x573   :  { %1412 = vmatprep.subr.mxu0 %v5092_v19  ;;  %1483 = vmatprep.subr.mxu1 %v5095_v20 }
 0x574   :  { %1413 = vmatpush1.msra.mxu0 %v5098_v21  ;;  %1484 = vmatpush1.msra.mxu1 %v5101_v22 }
 0x575   :  { %1414 = vmatprep.subr.mxu0 %v5104_v23  ;;  %1485 = vmatprep.subr.mxu1 %v5107_v24 }
 0x576   :  { %1415 = vmatpush1.msra.mxu0 %v5110_v26  ;;  %1486 = vmatpush1.msra.mxu1 %v5113_v30 }
 0x577   :  { %1416 = vmatprep.subr.mxu0 %v5116_v31  ;;  %1487 = vmatprep.subr.mxu1 %v5119_v32 }
 0x578   :  { %1417 = vmatpush1.msra.mxu0 %v5122_v33  ;;  %1488 = vmatpush1.msra.mxu1 %v5125_v35 }
 0x579   :  { %1418 = vmatprep.subr.mxu0 %v5128_v37  ;;  %1489 = vmatprep.subr.mxu1 %v5131_v38 }
 0x57a   :  { %1419 = vmatpush1.msra.mxu0 %v5134_v40  ;;  %1490 = vmatpush1.msra.mxu1 %v5137_v41 }
 0x57b   :  { %1420 = vmatprep.subr.mxu0 %v5140_v42  ;;  %1491 = vmatprep.subr.mxu1 %v5143_v43 }
 0x57c   :  { %1421 = vmatpush1.msra.mxu0 %v5146_v47  ;;  %1492 = vmatpush1.msra.mxu1 %v5149_v49 }
 0x57d   :  { %1422 = vmatprep.subr.mxu0 %v5152_v50  ;;  %1493 = vmatprep.subr.mxu1 %v5155_v2 }
 0x57e   :  { %1423 = vmatpush1.msra.mxu0 %v5158_v52  ;;  %1494 = vmatpush1.msra.mxu1 %v5161_v56 }
 0x57f   :  { %1424 = vmatprep.subr.mxu0 %v5164_v63  ;;  %1495 = vmatprep.subr.mxu1 %v5167_v55 }
 0x580   :  { %1425 = vmatpush1.msra.mxu0 %v5170_v62  ;;  %1496 = vmatpush1.msra.mxu1 %v5173_v3 }
 0x581   :  { %1426 = vmatprep.subr.mxu0 %v5176_v48  ;;  %1497 = vmatprep.subr.mxu1 %v5179_v60 }
 0x582   :  { %1427 = vmatpush1.msra.mxu0 %v5182_v51  ;;  %1498 = vmatpush1.msra.mxu1 %v5185_v0 }
 0x583   :  { %1428 = vmatprep.subr.mxu0 %v5188_v57  ;;  %1499 = vmatprep.subr.mxu1 %v5191_v58 }
 0x584   :  { %1429 = vmatpush1.msra.mxu0 %v6893_v46  ;;  %1500 = vmatpush1.msra.mxu1 %v6894_v10 }
 0x585   :  { %1430 = vmatprep.subr.mxu0 %v6895_v8  ;;  %1501 = vmatprep.subr.mxu1 %v6896_v11 }
 0x586   :  { %1431 = vmatpush1.msra.mxu0 %v6897_v53  ;;  %1502 = vmatpush1.msra.mxu1 %v6898_v7  ;;  %v6922_v53 = vld [vmem:[#allocation60_spill] sm:$0xff] }
 0x587   :  { %1432 = vmatprep.subr.mxu0 %v6899_v13  ;;  %1503 = vmatprep.subr.mxu1 %v6900_v6  ;;  %v6920_v6 = vld [vmem:[#allocation57_spill] sm:$0xff]  ;;  %v6921_v13 = vld [vmem:[#allocation58_spill] sm:$0xff] }
 0x588   :  { %1433 = vmatpush1.msra.mxu0 %v6901_v27  ;;  %1504 = vmatpush1.msra.mxu1 %v6902_v25  ;;  %v6912_v27 = vld [vmem:[#allocation54_spill] sm:$0xff]  ;;  %v6913_v25 = vld [vmem:[#allocation55_spill] sm:$0xff] }
 0x589   :  { %1434 = vmatprep.subr.mxu0 %v6903_v28  ;;  %1505 = vmatprep.subr.mxu1 %v6904_v4  ;;  %v6914_v28 = vmov 0.0   ;;  %v6915_v4 = vld [vmem:[#allocation51_spill] sm:$0xff] }
 0x58a   :  { %1435 = vmatpush1.msra.mxu0 %v6905_v5  ;;  %1506 = vmatpush1.msra.mxu1 %v6906_v29  ;;  %v6916_v29 = vld [vmem:[#allocation29_spill] sm:$0xff]  ;;  %v6919_v5 = vld [vmem:[#allocation66_spill] sm:$0xff] }
 0x58b   :  { %1436 = vmatprep.subr.mxu0 %v6907_v9  ;;  %1507 = vmatprep.subr.mxu1 %v6908_v34  ;;  %v6917_v9 = vld [vmem:[#allocation30_spill] sm:$0xff]  ;;  %v6918_v34 = vld [vmem:[#allocation39_spill] sm:$0xff] }
 0x58c   :  { %1437 = vmatpush1.msra.mxu0 %v6909_v36  ;;  %1508 = vmatpush1.msra.mxu1 %v6910_v39  ;;  %v202_v36 = vsub.s32 6, %v6918_v34 }
 0x58d   :  { %1438 = vmatprep.subr.mxu0 %v6911_v59  ;;  %1509 = vmatprep.subr.mxu1 %v6912_v27  ;;  %v199_v59 = vpop.permute.xlu1 %198 }
 0x58e   :  { %1439 = vmatpush1.msra.mxu0 %v6913_v25  ;;  %1472 = vmatprep.mubr.f32.mxu0 %v6914_v28  ;;  %v203_v39 = vrot.slane %v6919_v5, %v202_v36  ;;  %v256_v27 = vmul.f32 %v6920_v6, %v199_v59  ;;  %v257_v25 = vmul.f32 %v6921_v13, %v199_v59 }
 0x58f   :  { %1510 = vmatpush1.msra.mxu1 %v6915_v4  ;;  %1543 = vmatprep.mubr.f32.mxu1 %v6914_v28  ;;  %v258_v13 = vmul.f32 %v4803_v44, %v199_v59 }
 0x590   :  { %1578 = vmatprep.subr.mxu0 %v6916_v29  ;;  %1649 = vmatprep.subr.mxu1 %v6917_v9  ;;  %v310_v7 = vadd.f32 %v6800_v1, %v256_v27  ;;  %v311_v4 = vadd.f32 %v6922_v53, %v257_v25  ;;  %v259_v9 = vmul.f32 %v6802_v54, %v199_v59 }
 0x591   :  { %205 = vbcast.lane.b32.xlu0 %v203_v39, 256  ;;  %v6923_v39 = vld [vmem:[#allocation64_spill] sm:$0xff]  ;;  %v312_v27 = vadd.f32 %v4807_v61, %v258_v13 }
 0x592   :  { %v313_v5 = vadd.f32 %v6923_v39, %v259_v9 }
 0x62f   :  { %v1304_v11 = vpop.f32.mrf.mxu0  ;;  %v1375_v34 = vpop.f32.mrf.mxu1 }
 0x630   :  { %v1380_v28 = vadd.f32 %v1304_v11, %v310_v7  ;;  %v1382_v11 = vadd.f32 %v1375_v34, %v312_v27 }
 0x631   :  { %v1306_v8 = vpop.f32.mrf.mxu0  ;;  %v1377_v6 = vpop.f32.mrf.mxu1 }
 0x632   :  { %v3667_v29 = vmul.f32 -1.442695, %v1380_v28  ;;  %v1381_v10 = vadd.f32 %v1306_v8, %v311_v4  ;;  %v1383_v46 = vadd.f32 %v1377_v6, %v313_v5 }
 0x634   :  { %3803 = vpow2.f32 %v3667_v29  ;;  %v3668_v36 = vmul.f32 -1.442695, %v1381_v10  ;;  %v3669_v25 = vmul.f32 -1.442695, %v1383_v46 }
 0x636   :  { %3805 = vpow2.f32 %v3668_v36 }
 0x637   :  { %3807 = vpow2.f32 %v3669_v25  ;;  %v6952_v25 = vld [vmem:[#allocation64_spill] sm:$0xff] }
 0x641   :  { %v3804_v53 = vpop.eup %3803 }
 0x642   :  { %v1387_v7 = vadd.f32 1.0, %v3804_v53 }
 0x643   :  { %v3806_v28 = vpop.eup %3805 }
 0x644   :  { %3809 = vrcp.f32 %v1387_v7  ;;  %v1393_v8 = vadd.f32 1.0, %v3806_v28  ;;  %v3808_v10 = vpop.eup %3807 }
 0x645   :  { %3811 = vtanh.f32 %v1382_v11  ;;  %v1400_v36 = vadd.f32 1.0, %v3808_v10 }
 0x646   :  { %3813 = vrcp.f32 %v1393_v8 }
 0x647   :  { %3815 = vrcp.f32 %v1400_v36 }
 0x651   :  { %v3810_v4 = vpop.eup %3809 }
 0x652   :  { %v3812_v29 = vpop.eup %3811 }
 0x653   :  { %v3814_v9 = vpop.eup %3813  ;;  %v1404_v39 = vmul.f32 %v3812_v29, %v3810_v4 }
 0x654   :  { %v1403_v59 = vmul.f32 %v3814_v9, %v5277_v12  ;;  %v3816_v46 = vpop.eup %3815 }
 0x656   :  { %v5361_v6 = vadd.f32 %v1404_v39, %v1403_v59 }
 0x658   :  { %3817 = vtanh.f32 %v5361_v6 }
 0x665   :  { %v3818_v53 = vpop.eup %3817 }
 0x666   :  { %v5364_v13 = vmul.f32 %v3818_v53, %v3816_v46 }
 0x668   :  { %1473 = vmatmul.mubr.f32.vlgmr.msra.gmra.mxu0 %v5364_v13  ;;  %1544 = vmatmul.mubr.f32.vlgmr.msra.gmra.mxu1 %v5364_v13 }
 0x669   :  { %1579 = vmatpush1.msra.mxu0 %v5074_v14  ;;  %1650 = vmatpush1.msra.mxu1 %v5077_v15  ;;  %v6924_v14 = vld [vmem:[#allocation32_spill] sm:$0xff]  ;;  %v6925_v15 = vld [vmem:[#allocation33_spill] sm:$0xff] }
 0x66a   :  { %1580 = vmatprep.subr.mxu0 %v5080_v45  ;;  %1651 = vmatprep.subr.mxu1 %v5083_v16  ;;  %v6926_v45 = vld [vmem:[#allocation34_spill] sm:$0xff]  ;;  %v6927_v16 = vld [vmem:[#allocation35_spill] sm:$0xff] }
 0x66b   :  { %1581 = vmatpush1.msra.mxu0 %v5086_v17  ;;  %1652 = vmatpush1.msra.mxu1 %v5089_v18  ;;  %v6928_v17 = vld [vmem:[#allocation36_spill] sm:$0xff]  ;;  %v6929_v18 = vld [vmem:[#allocation37_spill] sm:$0xff] }
 0x66c   :  { %1582 = vmatprep.subr.mxu0 %v5092_v19  ;;  %1653 = vmatprep.subr.mxu1 %v5095_v20  ;;  %v6930_v19 = vld [vmem:[#allocation38_spill] sm:$0xff]  ;;  %v6931_v20 = vld [vmem:[#allocation40_spill] sm:$0xff] }
 0x66d   :  { %1583 = vmatpush1.msra.mxu0 %v5098_v21  ;;  %1654 = vmatpush1.msra.mxu1 %v5101_v22  ;;  %v6932_v21 = vld [vmem:[#allocation41_spill] sm:$0xff]  ;;  %v6933_v22 = vld [vmem:[#allocation42_spill] sm:$0xff] }
 0x66e   :  { %1584 = vmatprep.subr.mxu0 %v5104_v23  ;;  %1655 = vmatprep.subr.mxu1 %v5107_v24  ;;  %v6934_v23 = vld [vmem:[#allocation43_spill] sm:$0xff]  ;;  %v6935_v24 = vld [vmem:[#allocation44_spill] sm:$0xff] }
 0x66f   :  { %1585 = vmatpush1.msra.mxu0 %v5110_v26  ;;  %1656 = vmatpush1.msra.mxu1 %v5113_v30  ;;  %v6936_v26 = vld [vmem:[#allocation45_spill] sm:$0xff]  ;;  %v6937_v30 = vld [vmem:[#allocation46_spill] sm:$0xff] }
 0x670   :  { %1586 = vmatprep.subr.mxu0 %v5116_v31  ;;  %1657 = vmatprep.subr.mxu1 %v5119_v32  ;;  %v6938_v31 = vld [vmem:[#allocation47_spill] sm:$0xff]  ;;  %v6939_v32 = vld [vmem:[#allocation49_spill] sm:$0xff] }
 0x671   :  { %1587 = vmatpush1.msra.mxu0 %v5122_v33  ;;  %1658 = vmatpush1.msra.mxu1 %v5125_v35  ;;  %v6940_v33 = vld [vmem:[#allocation50_spill] sm:$0xff]  ;;  %v6941_v35 = vld [vmem:[#allocation52_spill] sm:$0xff] }
 0x672   :  { %1588 = vmatprep.subr.mxu0 %v5128_v37  ;;  %1659 = vmatprep.subr.mxu1 %v5131_v38  ;;  %v6942_v37 = vld [vmem:[#allocation53_spill] sm:$0xff]  ;;  %v6943_v38 = vld [vmem:[#allocation54_spill] sm:$0xff] }
 0x673   :  { %1589 = vmatpush1.msra.mxu0 %v5134_v40  ;;  %1660 = vmatpush1.msra.mxu1 %v5137_v41  ;;  %v6944_v40 = vld [vmem:[#allocation55_spill] sm:$0xff] }
 0x674   :  { %1590 = vmatprep.subr.mxu0 %v5140_v42  ;;  %1661 = vmatprep.subr.mxu1 %v5143_v43  ;;  %v6945_v41 = vld [vmem:[#allocation51_spill] sm:$0xff]  ;;  %v6946_v42 = vmov 0.0  }
 0x675   :  { %1591 = vmatpush1.msra.mxu0 %v5146_v47  ;;  %1662 = vmatpush1.msra.mxu1 %v5149_v49  ;;  %v1811_v43 = vld [vmem:[#allocation11 + $0x1e8] sm:$0xff]  ;;  %v1813_v47 = vld [vmem:[#allocation11 + $0x1f8] sm:$0xff] }
 0x676   :  { %1592 = vmatprep.subr.mxu0 %v5152_v50  ;;  %1663 = vmatprep.subr.mxu1 %v5155_v2  ;;  %v6947_v49 = vld [vmem:[#allocation39_spill] sm:$0xff]  ;;  %v6948_v2 = vld [vmem:[#allocation66_spill] sm:$0xff] }
 0x677   :  { %1593 = vmatpush1.msra.mxu0 %v5158_v52  ;;  %1664 = vmatpush1.msra.mxu1 %v5161_v56  ;;  %v209_v50 = vsub.s32 7, %v6947_v49  ;;  %v206_v56 = vpop.permute.xlu0 %205  ;;  %v5638_v49 = vld [vmem:[#allocation12 + $0x58] sm:$0xff] }
 0x678   :  { %1594 = vmatprep.subr.mxu0 %v5164_v63  ;;  %1665 = vmatprep.subr.mxu1 %v5167_v55  ;;  %v6949_v63 = vld [vmem:[#allocation57_spill] sm:$0xff]  ;;  %v263_v34 = vmul.f32 %v6802_v54, %v206_v56  ;;  %v262_v28 = vmul.f32 %v4803_v44, %v206_v56  ;;  %6972 = vst [vmem:[#allocation45_spill] sm:$0xff] %v5638_v49 }
 0x679   :  { %1595 = vmatpush1.msra.mxu0 %v5170_v62  ;;  %1666 = vmatpush1.msra.mxu1 %v5173_v3  ;;  %v210_v52 = vrot.slane %v6948_v2, %v209_v50  ;;  %v260_v55 = vmul.f32 %v6949_v63, %v206_v56  ;;  %v6950_v62 = vld [vmem:[#allocation58_spill] sm:$0xff]  ;;  %v1797_v50 = vld [vmem:[#allocation11 + $0x178] sm:$0xff] }
 0x67a   :  { %1596 = vmatprep.subr.mxu0 %v5176_v48  ;;  %1667 = vmatprep.subr.mxu1 %v5179_v60  ;;  %v261_v3 = vmul.f32 %v6950_v62, %v206_v56  ;;  %v6951_v60 = vld [vmem:[#allocation60_spill] sm:$0xff]  ;;  %v317_v11 = vadd.f32 %v6952_v25, %v263_v34  ;;  %v316_v10 = vadd.f32 %v4807_v61, %v262_v28  ;;  %v1794_v2 = vld [vmem:[#allocation11 + $0x160] sm:$0xff]  ;;  %v1791_v56 = vld [vmem:[#allocation11 + $0x148] sm:$0xff] }
 0x67b   :  { %1597 = vmatpush1.msra.mxu0 %v5182_v51  ;;  %1668 = vmatpush1.msra.mxu1 %v5185_v0  ;;  %v314_v48 = vadd.f32 %v6800_v1, %v260_v55  ;;  %v1793_v55 = vld [vmem:[#allocation11 + $0x158] sm:$0xff]  ;;  %v1782_v34 = vld [vmem:[#allocation11 + $0x100] sm:$0xff]  ;;  %v1780_v28 = vld [vmem:[#allocation11 + $0xf0] sm:$0xff] }
 0x67c   :  { %1598 = vmatprep.subr.mxu0 %v5188_v57  ;;  %1669 = vmatprep.subr.mxu1 %v5191_v58  ;;  %v315_v51 = vadd.f32 %v6951_v60, %v261_v3  ;;  %v1790_v3 = vld [vmem:[#allocation11 + $0x140] sm:$0xff] }
 0x67d   :  { %1599 = vmatpush1.msra.mxu0 %v6924_v14  ;;  %1670 = vmatpush1.msra.mxu1 %v6925_v15 }
 0x67e   :  { %1600 = vmatprep.subr.mxu0 %v6926_v45  ;;  %1671 = vmatprep.subr.mxu1 %v6927_v16 }
 0x67f   :  { %1601 = vmatpush1.msra.mxu0 %v6928_v17  ;;  %1672 = vmatpush1.msra.mxu1 %v6929_v18 }
 0x680   :  { %1602 = vmatprep.subr.mxu0 %v6930_v19  ;;  %1673 = vmatprep.subr.mxu1 %v6931_v20 }
 0x681   :  { %1603 = vmatpush1.msra.mxu0 %v6932_v21  ;;  %1674 = vmatpush1.msra.mxu1 %v6933_v22 }
 0x682   :  { %1604 = vmatprep.subr.mxu0 %v6934_v23  ;;  %1675 = vmatprep.subr.mxu1 %v6935_v24  ;;  %v1810_v23 = vld [vmem:[#allocation11 + $0x1e0] sm:$0xff]  ;;  %v1812_v24 = vld [vmem:[#allocation11 + $0x1f0] sm:$0xff] }
 0x683   :  { %1605 = vmatpush1.msra.mxu0 %v6936_v26  ;;  %1676 = vmatpush1.msra.mxu1 %v6937_v30  ;;  %v1807_v26 = vld [vmem:[#allocation11 + $0x1c8] sm:$0xff]  ;;  %v1809_v30 = vld [vmem:[#allocation11 + $0x1d8] sm:$0xff] }
 0x684   :  { %1606 = vmatprep.subr.mxu0 %v6938_v31  ;;  %1677 = vmatprep.subr.mxu1 %v6939_v32  ;;  %v1806_v31 = vld [vmem:[#allocation11 + $0x1c0] sm:$0xff]  ;;  %v1808_v32 = vld [vmem:[#allocation11 + $0x1d0] sm:$0xff] }
 0x685   :  { %1607 = vmatpush1.msra.mxu0 %v6940_v33  ;;  %1678 = vmatpush1.msra.mxu1 %v6941_v35  ;;  %v1805_v33 = vld [vmem:[#allocation11 + $0x1b8] sm:$0xff]  ;;  %v1802_v35 = vld [vmem:[#allocation11 + $0x1a0] sm:$0xff] }
 0x686   :  { %1608 = vmatprep.subr.mxu0 %v6942_v37  ;;  %1679 = vmatprep.subr.mxu1 %v6943_v38  ;;  %v1804_v37 = vld [vmem:[#allocation11 + $0x1b0] sm:$0xff]  ;;  %v1799_v38 = vld [vmem:[#allocation11 + $0x188] sm:$0xff] }
 0x687   :  { %1609 = vmatpush1.msra.mxu0 %v6944_v40  ;;  %1680 = vmatpush1.msra.mxu1 %v6945_v41  ;;  %v1801_v40 = vld [vmem:[#allocation11 + $0x198] sm:$0xff]  ;;  %v1798_v41 = vld [vmem:[#allocation11 + $0x180] sm:$0xff] }
 0x688   :  { %1642 = vmatprep.mubr.f32.mxu0 %v6946_v42  ;;  %1713 = vmatprep.mubr.f32.mxu1 %v6946_v42 }
 0x689   :  { %1836 = vmatprep.subr.mxu0 %v1811_v43  ;;  %1949 = vmatprep.subr.mxu1 %v1813_v47  ;;  %v1800_v43 = vld [vmem:[#allocation11 + $0x190] sm:$0xff]  ;;  %v1795_v47 = vld [vmem:[#allocation11 + $0x168] sm:$0xff] }
 0x68a   :  { %212 = vbcast.lane.b32.xlu1 %v210_v52, 256  ;;  %v1796_v52 = vld [vmem:[#allocation11 + $0x170] sm:$0xff] }
 0x728   :  { %v1474_v0 = vpop.f32.mrf.mxu0  ;;  %v1545_v39 = vpop.f32.mrf.mxu1 }
 0x729   :  { %v1550_v57 = vadd.f32 %v1474_v0, %v314_v48  ;;  %v1552_v9 = vadd.f32 %v1545_v39, %v316_v10  ;;  %v1792_v48 = vld [vmem:[#allocation11 + $0x150] sm:$0xff]  ;;  %v1789_v0 = vld [vmem:[#allocation11 + $0x138] sm:$0xff] }
 0x72a   :  { %v1476_v58 = vpop.f32.mrf.mxu0  ;;  %v1547_v7 = vpop.f32.mrf.mxu1  ;;  %v1784_v39 = vld [vmem:[#allocation11 + $0x110] sm:$0xff]  ;;  %v1777_v10 = vld [vmem:[#allocation11 + $0xd8] sm:$0xff] }
 0x72b   :  { %v3670_v12 = vmul.f32 -1.442695, %v1550_v57  ;;  %v1551_v5 = vadd.f32 %v1476_v58, %v315_v51  ;;  %v1553_v8 = vadd.f32 %v1547_v7, %v317_v11  ;;  %v1787_v51 = vld [vmem:[#allocation11 + $0x128] sm:$0xff]  ;;  %v1786_v57 = vld [vmem:[#allocation11 + $0x120] sm:$0xff]  ;;  %v1788_v58 = vld [vmem:[#allocation11 + $0x130] sm:$0xff] }
 0x72c   :  { %v1781_v11 = vld [vmem:[#allocation11 + $0xf8] sm:$0xff]  ;;  %v1778_v7 = vld [vmem:[#allocation11 + $0xe0] sm:$0xff] }
 0x72d   :  { %3819 = vpow2.f32 %v3670_v12  ;;  %v3671_v27 = vmul.f32 -1.442695, %v1551_v5  ;;  %v3672_v4 = vmul.f32 -1.442695, %v1553_v8  ;;  %v1783_v12 = vld [vmem:[#allocation11 + $0x108] sm:$0xff]  ;;  %v1785_v5 = vld [vmem:[#allocation11 + $0x118] sm:$0xff] }
 0x72e   :  { %v1775_v8 = vld [vmem:[#allocation11 + $0xc8] sm:$0xff] }
 0x72f   :  { %3821 = vpow2.f32 %v3671_v27  ;;  %v1779_v27 = vld [vmem:[#allocation11 + $0xe8] sm:$0xff] }
 0x730   :  { %3823 = vpow2.f32 %v3672_v4  ;;  %v1774_v4 = vld [vmem:[#allocation11 + $0xc0] sm:$0xff] }
 0x73a   :  { %v3820_v29 = vpop.eup %3819 }
 0x73b   :  { %v1557_v36 = vadd.f32 1.0, %v3820_v29  ;;  %v1776_v29 = vld [vmem:[#allocation11 + $0xd0] sm:$0xff] }
 0x73c   :  { %v3822_v59 = vpop.eup %3821 }
 0x73d   :  { %3825 = vrcp.f32 %v1557_v36  ;;  %v1563_v46 = vadd.f32 1.0, %v3822_v59  ;;  %v3824_v53 = vpop.eup %3823  ;;  %v1773_v36 = vld [vmem:[#allocation11 + $0xb8] sm:$0xff]  ;;  %v1770_v59 = vld [vmem:[#allocation11 + $0xa0] sm:$0xff] }
 0x73e   :  { %3827 = vtanh.f32 %v1552_v9  ;;  %v1570_v16 = vadd.f32 1.0, %v3824_v53  ;;  %v1771_v9 = vld [vmem:[#allocation11 + $0xa8] sm:$0xff] }
 0x73f   :  { %3829 = vrcp.f32 %v1563_v46  ;;  %v1772_v46 = vld [vmem:[#allocation11 + $0xb0] sm:$0xff]  ;;  %v1767_v53 = vld [vmem:[#allocation11 + $0x88] sm:$0xff] }
 0x740   :  { %3831 = vrcp.f32 %v1570_v16  ;;  %v1763_v16 = vld [vmem:[#allocation11 + $0x68] sm:$0xff] }
 0x74a   :  { %v3826_v14 = vpop.eup %3825 }
 0x74b   :  { %v3828_v15 = vpop.eup %3827 }
 0x74c   :  { %v3830_v45 = vpop.eup %3829  ;;  %v1574_v17 = vmul.f32 %v3828_v15, %v3826_v14  ;;  %v1769_v14 = vld [vmem:[#allocation11 + $0x98] sm:$0xff]  ;;  %v1766_v15 = vld [vmem:[#allocation11 + $0x80] sm:$0xff] }
 0x74d   :  { %v1573_v18 = vmul.f32 %v3830_v45, %v5361_v6  ;;  %v3832_v20 = vpop.eup %3831  ;;  %v1803_v6 = vld [vmem:[#allocation11 + $0x1a8] sm:$0xff]  ;;  %v1768_v45 = vld [vmem:[#allocation11 + $0x90] sm:$0xff] }
 0x74f   :  { %v5443_v19 = vadd.f32 %v1574_v17, %v1573_v18  ;;  %v1765_v17 = vld [vmem:[#allocation11 + $0x78] sm:$0xff]  ;;  %v1762_v18 = vld [vmem:[#allocation11 + $0x60] sm:$0xff] }
 0x751   :  { %3833 = vtanh.f32 %v5443_v19 }
 0x75e   :  { %v3834_v21 = vpop.eup %3833 }
 0x75f   :  { %v5446_v22 = vmul.f32 %v3834_v21, %v3832_v20  ;;  %v1764_v20 = vld [vmem:[#allocation11 + $0x70] sm:$0xff]  ;;  %v1759_v21 = vld [vmem:[#allocation11 + $0x48] sm:$0xff] }
 0x761   :  { %1643 = vmatmul.mubr.f32.vlgmr.msra.gmra.mxu0 %v5446_v22  ;;  %1714 = vmatmul.mubr.f32.vlgmr.msra.gmra.mxu1 %v5446_v22 }
 0x762   :  { %1837 = vmatpush1.msra.mxu0 %v1810_v23  ;;  %1950 = vmatpush1.msra.mxu1 %v1812_v24  ;;  %v1761_v23 = vld [vmem:[#allocation11 + $0x58] sm:$0xff]  ;;  %v1758_v24 = vld [vmem:[#allocation11 + $0x40] sm:$0xff] }
 0x763   :  { %1838 = vmatprep.subr.mxu0 %v1807_v26  ;;  %1951 = vmatprep.subr.mxu1 %v1809_v30  ;;  %v1760_v26 = vld [vmem:[#allocation11 + $0x50] sm:$0xff]  ;;  %v1755_v30 = vld [vmem:[#allocation11 + $0x28] sm:$0xff] }
 0x764   :  { %1839 = vmatpush1.msra.mxu0 %v1806_v31  ;;  %1952 = vmatpush1.msra.mxu1 %v1808_v32  ;;  %v1757_v31 = vld [vmem:[#allocation11 + $0x38] sm:$0xff]  ;;  %v1754_v32 = vld [vmem:[#allocation11 + $0x20] sm:$0xff] }
 0x765   :  { %1840 = vmatprep.subr.mxu0 %v1803_v6  ;;  %1953 = vmatprep.subr.mxu1 %v1805_v33  ;;  %v1756_v6 = vld [vmem:[#allocation11 + $0x30] sm:$0xff]  ;;  %v1751_v33 = vld [vmem:[#allocation11 + $0x8] sm:$0xff] }
 0x766   :  { %1841 = vmatpush1.msra.mxu0 %v1802_v35  ;;  %1954 = vmatpush1.msra.mxu1 %v1804_v37  ;;  %v1753_v35 = vld [vmem:[#allocation11 + $0x18] sm:$0xff]  ;;  %v1750_v37 = vld [vmem:[#allocation11] sm:$0xff] }
 0x767   :  { %1842 = vmatprep.subr.mxu0 %v1799_v38  ;;  %1955 = vmatprep.subr.mxu1 %v1801_v40  ;;  %v1752_v38 = vld [vmem:[#allocation11 + $0x10] sm:$0xff]  ;;  %v6953_v40 = vld [vmem:[#allocation65_spill] sm:$0xff] }
 0x768   :  { %1843 = vmatpush1.msra.mxu0 %v1798_v41  ;;  %1956 = vmatpush1.msra.mxu1 %v1800_v43  ;;  %v6954_v41 = vld [vmem:[#allocation59_spill] sm:$0xff]  ;;  %v6955_v43 = vld [vmem:[#allocation62_spill] sm:$0xff] }
 0x769   :  { %1844 = vmatprep.subr.mxu0 %v1795_v47  ;;  %1957 = vmatprep.subr.mxu1 %v1797_v50  ;;  %v6956_v47 = vld [vmem:[#allocation31_spill] sm:$0xff] }
 0x76a   :  { %1845 = vmatpush1.msra.mxu0 %v1794_v2  ;;  %1958 = vmatpush1.msra.mxu1 %v1796_v52  ;;  %v6957_v50 = vld [vmem:[#allocation67_spill] sm:$0xff]  ;;  %v5482_v52 = vld [vmem:[#allocation12 + $0x1f8] sm:$0xff] }
 0x76b   :  { %1846 = vmatprep.subr.mxu0 %v1791_v56  ;;  %1959 = vmatprep.subr.mxu1 %v1793_v55  ;;  %v5480_v2 = vld [vmem:[#allocation12 + $0x1e8] sm:$0xff]  ;;  %6959 = vst [vmem:[#allocation30_spill] sm:$0xff] %v5482_v52  ;;  %v5485_v56 = vld [vmem:[#allocation12 + $0x1e0] sm:$0xff] }
 0x76c   :  { %1847 = vmatpush1.msra.mxu0 %v1790_v3  ;;  %1960 = vmatpush1.msra.mxu1 %v1792_v48  ;;  %6958 = vst [vmem:[#allocation29_spill] sm:$0xff] %v5480_v2  ;;  %v5491_v55 = vld [vmem:[#allocation12 + $0x1c8] sm:$0xff]  ;;  %v5497_v3 = vld [vmem:[#allocation12 + $0x1c0] sm:$0xff]  ;;  %v5500_v48 = vld [vmem:[#allocation12 + $0x1d0] sm:$0xff] }
 0x76d   :  { %1848 = vmatprep.subr.mxu0 %v1787_v51  ;;  %1961 = vmatprep.subr.mxu1 %v1789_v0  ;;  %v5503_v51 = vld [vmem:[#allocation12 + $0x1a8] sm:$0xff]  ;;  %v5506_v0 = vld [vmem:[#allocation12 + $0x1b8] sm:$0xff] }
 0x76e   :  { %1849 = vmatpush1.msra.mxu0 %v1786_v57  ;;  %1962 = vmatpush1.msra.mxu1 %v1788_v58  ;;  %v5509_v57 = vld [vmem:[#allocation12 + $0x1a0] sm:$0xff]  ;;  %v5512_v58 = vld [vmem:[#allocation12 + $0x1b0] sm:$0xff] }
 0x76f   :  { %1850 = vmatprep.subr.mxu0 %v1783_v12  ;;  %1963 = vmatprep.subr.mxu1 %v1785_v5  ;;  %v5515_v12 = vld [vmem:[#allocation12 + $0x188] sm:$0xff]  ;;  %v5518_v5 = vld [vmem:[#allocation12 + $0x198] sm:$0xff] }
 0x770   :  { %1851 = vmatpush1.msra.mxu0 %v1782_v34  ;;  %1964 = vmatpush1.msra.mxu1 %v1784_v39  ;;  %v5521_v34 = vld [vmem:[#allocation12 + $0x180] sm:$0xff]  ;;  %v5524_v39 = vld [vmem:[#allocation12 + $0x190] sm:$0xff] }
 0x771   :  { %1852 = vmatprep.subr.mxu0 %v1779_v27  ;;  %1965 = vmatprep.subr.mxu1 %v1781_v11  ;;  %v5527_v27 = vld [vmem:[#allocation12 + $0x168] sm:$0xff]  ;;  %v5530_v11 = vld [vmem:[#allocation12 + $0x178] sm:$0xff] }
 0x772   :  { %1853 = vmatpush1.msra.mxu0 %v1778_v7  ;;  %1966 = vmatpush1.msra.mxu1 %v1780_v28  ;;  %v5533_v7 = vld [vmem:[#allocation12 + $0x160] sm:$0xff]  ;;  %v5536_v28 = vld [vmem:[#allocation12 + $0x170] sm:$0xff] }
 0x773   :  { %1854 = vmatprep.subr.mxu0 %v1775_v8  ;;  %1967 = vmatprep.subr.mxu1 %v1777_v10  ;;  %v5539_v8 = vld [vmem:[#allocation12 + $0x148] sm:$0xff]  ;;  %v5542_v10 = vld [vmem:[#allocation12 + $0x158] sm:$0xff] }
 0x774   :  { %1855 = vmatpush1.msra.mxu0 %v1774_v4  ;;  %1968 = vmatpush1.msra.mxu1 %v1776_v29  ;;  %v5545_v4 = vld [vmem:[#allocation12 + $0x140] sm:$0xff]  ;;  %v5548_v29 = vld [vmem:[#allocation12 + $0x150] sm:$0xff] }
 0x775   :  { %1856 = vmatprep.subr.mxu0 %v1771_v9  ;;  %1969 = vmatprep.subr.mxu1 %v1773_v36  ;;  %v5551_v9 = vld [vmem:[#allocation12 + $0x128] sm:$0xff]  ;;  %v5554_v36 = vld [vmem:[#allocation12 + $0x138] sm:$0xff] }
 0x776   :  { %1857 = vmatpush1.msra.mxu0 %v1770_v59  ;;  %1970 = vmatpush1.msra.mxu1 %v1772_v46  ;;  %v5557_v59 = vld [vmem:[#allocation12 + $0x120] sm:$0xff]  ;;  %v5560_v46 = vld [vmem:[#allocation12 + $0x130] sm:$0xff] }
 0x777   :  { %1858 = vmatprep.subr.mxu0 %v1767_v53  ;;  %1971 = vmatprep.subr.mxu1 %v1769_v14  ;;  %v5563_v53 = vld [vmem:[#allocation12 + $0x108] sm:$0xff]  ;;  %v5566_v14 = vld [vmem:[#allocation12 + $0x118] sm:$0xff] }
 0x778   :  { %1859 = vmatpush1.msra.mxu0 %v1766_v15  ;;  %1972 = vmatpush1.msra.mxu1 %v1768_v45  ;;  %v5569_v15 = vld [vmem:[#allocation12 + $0x100] sm:$0xff]  ;;  %v5572_v45 = vld [vmem:[#allocation12 + $0x110] sm:$0xff] }
 0x779   :  { %1860 = vmatprep.subr.mxu0 %v1763_v16  ;;  %1973 = vmatprep.subr.mxu1 %v1765_v17  ;;  %v5575_v16 = vld [vmem:[#allocation12 + $0xe8] sm:$0xff]  ;;  %v5578_v17 = vld [vmem:[#allocation12 + $0xf8] sm:$0xff] }
 0x77a   :  { %1861 = vmatpush1.msra.mxu0 %v1762_v18  ;;  %1974 = vmatpush1.msra.mxu1 %v1764_v20  ;;  %v5581_v18 = vld [vmem:[#allocation12 + $0xe0] sm:$0xff]  ;;  %v5584_v20 = vld [vmem:[#allocation12 + $0xf0] sm:$0xff] }
 0x77b   :  { %1862 = vmatprep.subr.mxu0 %v1759_v21  ;;  %1975 = vmatprep.subr.mxu1 %v1761_v23  ;;  %v5587_v21 = vld [vmem:[#allocation12 + $0xc8] sm:$0xff]  ;;  %v5590_v23 = vld [vmem:[#allocation12 + $0xd8] sm:$0xff] }
 0x77c   :  { %1863 = vmatpush1.msra.mxu0 %v1758_v24  ;;  %1976 = vmatpush1.msra.mxu1 %v1760_v26  ;;  %v5593_v24 = vld [vmem:[#allocation12 + $0xc0] sm:$0xff]  ;;  %v5596_v26 = vld [vmem:[#allocation12 + $0xd0] sm:$0xff] }
 0x77d   :  { %1864 = vmatprep.subr.mxu0 %v1755_v30  ;;  %1977 = vmatprep.subr.mxu1 %v1757_v31  ;;  %v5599_v30 = vld [vmem:[#allocation12 + $0xa8] sm:$0xff]  ;;  %v5602_v31 = vld [vmem:[#allocation12 + $0xb8] sm:$0xff] }
 0x77e   :  { %1865 = vmatpush1.msra.mxu0 %v1754_v32  ;;  %1978 = vmatpush1.msra.mxu1 %v1756_v6  ;;  %6960 = vst [vmem:[#allocation32_spill] sm:$0xff] %v5602_v31  ;;  %v5605_v32 = vld [vmem:[#allocation12 + $0xa0] sm:$0xff]  ;;  %v5608_v6 = vld [vmem:[#allocation12 + $0xb0] sm:$0xff] }
 0x77f   :  { %1866 = vmatprep.subr.mxu0 %v1751_v33  ;;  %1979 = vmatprep.subr.mxu1 %v1753_v35  ;;  %6961 = vst [vmem:[#allocation33_spill] sm:$0xff] %v5605_v32  ;;  %6962 = vst [vmem:[#allocation34_spill] sm:$0xff] %v5608_v6  ;;  %v5611_v33 = vld [vmem:[#allocation12 + $0x88] sm:$0xff]  ;;  %v5614_v35 = vld [vmem:[#allocation12 + $0x98] sm:$0xff] }
 0x780   :  { %1867 = vmatpush1.msra.mxu0 %v1750_v37  ;;  %1900 = vmatprep.mubr.f32.mxu0 %v6946_v42  ;;  %6963 = vst [vmem:[#allocation35_spill] sm:$0xff] %v5611_v33  ;;  %6964 = vst [vmem:[#allocation36_spill] sm:$0xff] %v5614_v35  ;;  %v5617_v37 = vld [vmem:[#allocation12 + $0x80] sm:$0xff] }
 0x781   :  { %1980 = vmatpush1.msra.mxu1 %v1752_v38  ;;  %2013 = vmatprep.mubr.f32.mxu1 %v6946_v42  ;;  %6965 = vst [vmem:[#allocation37_spill] sm:$0xff] %v5617_v37  ;;  %v5620_v38 = vld [vmem:[#allocation12 + $0x90] sm:$0xff] }
 0x782   :  { %1901 = vmatmul.mubr.f32.vlgmr.msra.gmra.mxu0 %v6953_v40  ;;  %2014 = vmatmul.mubr.f32.vlgmr.msra.gmra.mxu1 %v6953_v40  ;;  %6966 = vst [vmem:[#allocation38_spill] sm:$0xff] %v5620_v38  ;;  %v5623_v40 = vld [vmem:[#allocation12 + $0x68] sm:$0xff] }
 0x783   :  { %1906 = vmatprep.mubr.f32.mxu0 %v6946_v42  ;;  %2019 = vmatprep.mubr.f32.mxu1 %v6946_v42  ;;  %6967 = vst [vmem:[#allocation40_spill] sm:$0xff] %v5623_v40 }
 0x784   :  { %2130 = vmatprep.subr.mxu0 %v5480_v2  ;;  %2201 = vmatprep.subr.mxu1 %v5482_v52 }
 0x785   :  { %2131 = vmatpush1.msra.mxu0 %v5485_v56 }
 0x786   :  { %1907 = vmatmul.mubr.f32.gmra.mxu0 %v6954_v41  ;;  %2020 = vmatmul.mubr.f32.gmra.mxu1 %v6954_v41  ;;  %v5626_v41 = vld [vmem:[#allocation12 + $0x78] sm:$0xff] }
 0x787   :  { %1912 = vmatprep.mubr.f32.mxu0 %v6946_v42  ;;  %2025 = vmatprep.mubr.f32.mxu1 %v6946_v42  ;;  %6968 = vst [vmem:[#allocation41_spill] sm:$0xff] %v5626_v41 }
 0x788   :  { %2132 = vmatprep.subr.mxu0 %v5491_v55 }
 0x789   :  { %2133 = vmatpush1.msra.mxu0 %v5497_v3 }
 0x78a   :  { %1913 = vmatmul.mubr.f32.gmra.mxu0 %v6955_v43  ;;  %2026 = vmatmul.mubr.f32.gmra.mxu1 %v6955_v43  ;;  %v5629_v43 = vld [vmem:[#allocation12 + $0x60] sm:$0xff] }
 0x78b   :  { %1918 = vmatprep.mubr.f32.mxu0 %v6946_v42  ;;  %2031 = vmatprep.mubr.f32.mxu1 %v6946_v42  ;;  %6969 = vst [vmem:[#allocation42_spill] sm:$0xff] %v5629_v43 }
 0x78c   :  { %2134 = vmatprep.subr.mxu0 %v5503_v51 }
 0x78d   :  { %2135 = vmatpush1.msra.mxu0 %v5509_v57 }
 0x78e   :  { %1919 = vmatmul.mubr.f32.gmra.mxu0 %v6956_v47  ;;  %2032 = vmatmul.mubr.f32.gmra.mxu1 %v6956_v47  ;;  %v5632_v47 = vld [vmem:[#allocation12 + $0x70] sm:$0xff] }
 0x78f   :  { %1924 = vmatprep.mubr.f32.mxu0 %v6946_v42  ;;  %2037 = vmatprep.mubr.f32.mxu1 %v6946_v42  ;;  %6970 = vst [vmem:[#allocation43_spill] sm:$0xff] %v5632_v47 }
 0x790   :  { %2136 = vmatprep.subr.mxu0 %v5515_v12 }
 0x791   :  { %2137 = vmatpush1.msra.mxu0 %v5521_v34 }
 0x792   :  { %1925 = vmatmul.mubr.f32.gmra.mxu0 %v6957_v50  ;;  %2038 = vmatmul.mubr.f32.gmra.mxu1 %v6957_v50  ;;  %v5635_v50 = vld [vmem:[#allocation12 + $0x48] sm:$0xff] }
 0x793   :  { %1930 = vmatprep.mubr.f32.mxu0 %v6946_v42  ;;  %2043 = vmatprep.mubr.f32.mxu1 %v6946_v42  ;;  %6971 = vst [vmem:[#allocation44_spill] sm:$0xff] %v5635_v50 }
 0x794   :  { %2138 = vmatprep.subr.mxu0 %v5527_v27 }
 0x795   :  { %2139 = vmatpush1.msra.mxu0 %v5533_v7 }
 0x796   :  { %1931 = vmatmul.mubr.f32.gmra.mxu0 %v5364_v13  ;;  %2044 = vmatmul.mubr.f32.gmra.mxu1 %v5364_v13  ;;  %v5488_v13 = vld [vmem:[#allocation12 + $0x1f0] sm:$0xff] }
 0x797   :  { %1936 = vmatprep.mubr.f32.mxu0 %v6946_v42  ;;  %2049 = vmatprep.mubr.f32.mxu1 %v6946_v42 }
 0x798   :  { %2202 = vmatpush1.msra.mxu1 %v5488_v13  ;;  %2140 = vmatprep.subr.mxu0 %v5539_v8 }
 0x799   :  { %2141 = vmatpush1.msra.mxu0 %v5545_v4 }
 0x79a   :  { %1937 = vmatmul.mubr.f32.gmra.mxu0 %v5446_v22  ;;  %2050 = vmatmul.mubr.f32.gmra.mxu1 %v5446_v22  ;;  %v5494_v22 = vld [vmem:[#allocation12 + $0x1d8] sm:$0xff] }
 0x79b   :  { %1942 = vmatprep.mubr.f32.mxu0 %v6946_v42  ;;  %2055 = vmatprep.mubr.f32.mxu1 %v6946_v42 }
 0x79c   :  { %2203 = vmatprep.subr.mxu1 %v5494_v22  ;;  %2142 = vmatprep.subr.mxu0 %v5551_v9 }
 0x79d   :  { %2204 = vmatpush1.msra.mxu1 %v5500_v48  ;;  %2143 = vmatpush1.msra.mxu0 %v5557_v59 }
 0x79e   :  { %2205 = vmatprep.subr.mxu1 %v5506_v0  ;;  %2144 = vmatprep.subr.mxu0 %v5563_v53 }
 0x79f   :  { %2206 = vmatpush1.msra.mxu1 %v5512_v58  ;;  %2145 = vmatpush1.msra.mxu0 %v5569_v15 }
 0x7a0   :  { %2207 = vmatprep.subr.mxu1 %v5518_v5  ;;  %2146 = vmatprep.subr.mxu0 %v5575_v16 }
 0x7a1   :  { %2208 = vmatpush1.msra.mxu1 %v5524_v39  ;;  %2147 = vmatpush1.msra.mxu0 %v5581_v18 }
 0x7a2   :  { %2209 = vmatprep.subr.mxu1 %v5530_v11  ;;  %2148 = vmatprep.subr.mxu0 %v5587_v21 }
 0x7a3   :  { %2210 = vmatpush1.msra.mxu1 %v5536_v28  ;;  %2149 = vmatpush1.msra.mxu0 %v5593_v24 }
 0x7a4   :  { %2211 = vmatprep.subr.mxu1 %v5542_v10  ;;  %2150 = vmatprep.subr.mxu0 %v5599_v30 }
 0x7a5   :  { %2212 = vmatpush1.msra.mxu1 %v5548_v29  ;;  %2151 = vmatpush1.msra.mxu0 %v5605_v32 }
 0x7a6   :  { %2213 = vmatprep.subr.mxu1 %v5554_v36  ;;  %2152 = vmatprep.subr.mxu0 %v5611_v33 }
 0x7a7   :  { %2214 = vmatpush1.msra.mxu1 %v5560_v46  ;;  %2153 = vmatpush1.msra.mxu0 %v5617_v37  ;;  %v5664_v37 = vld [vmem:[#allocation12 + $0x18] sm:$0xff] }
 0x7a8   :  { %2215 = vmatprep.subr.mxu1 %v5566_v14  ;;  %2154 = vmatprep.subr.mxu0 %v5623_v40  ;;  %v5644_v40 = vld [vmem:[#allocation12 + $0x50] sm:$0xff]  ;;  %6981 = vst [vmem:[#allocation51_spill] sm:$0xff] %v5664_v37 }
 0x7a9   :  { %2216 = vmatpush1.msra.mxu1 %v5572_v45  ;;  %2155 = vmatpush1.msra.mxu0 %v5629_v43  ;;  %6974 = vst [vmem:[#allocation47_spill] sm:$0xff] %v5644_v40  ;;  %v5650_v43 = vld [vmem:[#allocation12 + $0x38] sm:$0xff] }
 0x7aa   :  { %2217 = vmatprep.subr.mxu1 %v5578_v17  ;;  %2156 = vmatprep.subr.mxu0 %v5635_v50  ;;  %6976 = vst [vmem:[#allocation50_spill] sm:$0xff] %v5650_v43  ;;  %v5656_v50 = vld [vmem:[#allocation12 + $0x30] sm:$0xff] }
 0x7ab   :  { %2218 = vmatpush1.msra.mxu1 %v5584_v20  ;;  %6978 = vst [vmem:[#allocation53_spill] sm:$0xff] %v5656_v50 }
 0x7ac   :  { %2219 = vmatprep.subr.mxu1 %v5590_v23 }
 0x7ad   :  { %2220 = vmatpush1.msra.mxu1 %v5596_v26 }
 0x7ae   :  { %2221 = vmatprep.subr.mxu1 %v5602_v31 }
 0x7af   :  { %2222 = vmatpush1.msra.mxu1 %v5608_v6 }
 0x7b0   :  { %2223 = vmatprep.subr.mxu1 %v5614_v35 }
 0x7b1   :  { %2224 = vmatpush1.msra.mxu1 %v5620_v38  ;;  %v5641_v38 = vld [vmem:[#allocation12 + $0x40] sm:$0xff] }
 0x7b2   :  { %2225 = vmatprep.subr.mxu1 %v5626_v41  ;;  %6973 = vst [vmem:[#allocation46_spill] sm:$0xff] %v5641_v38  ;;  %2157 = vmatpush1.msra.mxu0 %v5641_v38  ;;  %v5647_v41 = vld [vmem:[#allocation12 + $0x28] sm:$0xff]  ;;  %v5662_v38 = vld [vmem:[#allocation12] sm:$0xff] }
 0x7b3   :  { %2226 = vmatpush1.msra.mxu1 %v5632_v47  ;;  %6975 = vst [vmem:[#allocation49_spill] sm:$0xff] %v5647_v41  ;;  %2158 = vmatprep.subr.mxu0 %v5647_v41  ;;  %v5653_v47 = vld [vmem:[#allocation12 + $0x20] sm:$0xff]  ;;  %6980 = vst [vmem:[#allocation55_spill] sm:$0xff] %v5662_v38  ;;  %v5668_v41 = vld [vmem:[#allocation12 + $0x10] sm:$0xff] }
 0x7b4   :  { %2227 = vmatprep.subr.mxu1 %v5638_v49  ;;  %6977 = vst [vmem:[#allocation52_spill] sm:$0xff] %v5653_v47  ;;  %2159 = vmatpush1.msra.mxu0 %v5653_v47  ;;  %v5659_v49 = vld [vmem:[#allocation12 + $0x8] sm:$0xff]  ;;  %6982 = vst [vmem:[#allocation66_spill] sm:$0xff] %v5668_v41  ;;  %v213_v47 = vpop.permute.xlu1 %212 }
 0x7b5   :  { %2228 = vmatpush1.msra.mxu1 %v5644_v40  ;;  %6979 = vst [vmem:[#allocation54_spill] sm:$0xff] %v5659_v49  ;;  %2160 = vmatprep.subr.mxu0 %v5659_v49 }
 0x7b6   :  { %2229 = vmatprep.subr.mxu1 %v5650_v43  ;;  %2161 = vmatpush1.msra.mxu0 %v5662_v38  ;;  %v265_v43 = vmul.f32 %v6950_v62, %v213_v47  ;;  %v266_v62 = vmul.f32 %v4803_v44, %v213_v47 }
 0x7b7   :  { %2230 = vmatpush1.msra.mxu1 %v5656_v50  ;;  %2300 = vmatprep.subr.mxu0 %v5480_v2  ;;  %v264_v50 = vmul.f32 %v6949_v63, %v213_v47 }
 0x7b8   :  { %2231 = vmatprep.subr.mxu1 %v5664_v37  ;;  %v319_v49 = vadd.f32 %v6951_v60, %v265_v43 }
 0x7b9   :  { %2232 = vmatpush1.msra.mxu1 %v5668_v41  ;;  %v318_v40 = vadd.f32 %v6800_v1, %v264_v50  ;;  %v267_v41 = vmul.f32 %v6802_v54, %v213_v47  ;;  %v320_v1 = vadd.f32 %v4807_v61, %v266_v62  ;;  %v6984_v47 = vld [vmem:[#allocation33_spill] sm:$0xff]  ;;  %v6985_v50 = vld [vmem:[#allocation34_spill] sm:$0xff]  ;;  %v6987_v62 = vld [vmem:[#allocation36_spill] sm:$0xff] }
 0x7ba   :  { %2371 = vmatprep.subr.mxu1 %v5482_v52 }
 0x7bb   :  { %v321_v52 = vadd.f32 %v6952_v25, %v267_v41  ;;  %v3676_v41 = vld [vmem:[%s6466_s9 + $0x8] sm:$0xff]  ;;  %s4378_s9 = smov [#allocation19]  }
 0x7bc   :  { %s3617_s16 = sshll.u32 %s4378_s9, 4  ;;  %s3618_s16 = int_to_ptr.vmem [resolvable:$true] %s3617_s16 }
 0x7bd   :  { %s4289_s5 = scalar_lea.vmem %s3618_s16, 256  ;;  %p4294_p4 = scmp.lt.s32.totalorder %s3618_s16, %s3618_s16 }
 0x7be   :  { %p4290_p3 = scmp.ne.s32.totalorder %s3618_s16, %s4289_s5  ;;  %p4295_p5 = scmp.lt.s32.totalorder %s4289_s5, %s4289_s5 }
 0x7c0   :  { %p4296_p6 = por %p4295_p5, %p4294_p4 }
 0x7c2   :  { %p4297_p7 = pnand %p4296_p6, %p4290_p3 }
 0x821   :  { %v1644_v37 = vpop.f32.mrf.mxu0  ;;  %v1715_v2 = vpop.f32.mrf.mxu1 }
 0x822   :  { %v1720_v35 = vadd.f32 %v1644_v37, %v318_v40  ;;  %v1722_v37 = vadd.f32 %v1715_v2, %v320_v1  ;;  %v6988_v1 = vld [vmem:[#allocation37_spill] sm:$0xff] }
 0x823   :  { %v1646_v33 = vpop.f32.mrf.mxu0  ;;  %v1717_v63 = vpop.f32.mrf.mxu1 }
 0x824   :  { %v3673_v6 = vmul.f32 -1.442695, %v1720_v35  ;;  %v1721_v38 = vadd.f32 %v1646_v33, %v319_v49  ;;  %v1723_v31 = vadd.f32 %v1717_v63, %v321_v52  ;;  %v6986_v63 = vld [vmem:[#allocation35_spill] sm:$0xff] }
 0x826   :  { %3835 = vpow2.f32 %v3673_v6  ;;  %v3674_v32 = vmul.f32 -1.442695, %v1721_v38  ;;  %v3675_v60 = vmul.f32 -1.442695, %v1723_v31 }
 0x828   :  { %3837 = vpow2.f32 %v3674_v32 }
 0x829   :  { %3839 = vpow2.f32 %v3675_v60  ;;  %v6989_v60 = vld [vmem:[#allocation38_spill] sm:$0xff] }
 0x833   :  { %v3836_v43 = vpop.eup %3835 }
 0x834   :  { %v1727_v40 = vadd.f32 1.0, %v3836_v43  ;;  %v6990_v43 = vld [vmem:[#allocation40_spill] sm:$0xff] }
 0x835   :  { %v3838_v35 = vpop.eup %3837 }
 0x836   :  { %3841 = vrcp.f32 %v1727_v40  ;;  %v1733_v54 = vadd.f32 1.0, %v3838_v35  ;;  %v3840_v49 = vpop.eup %3839  ;;  %v6992_v40 = vld [vmem:[#allocation42_spill] sm:$0xff]  ;;  %v6993_v35 = vld [vmem:[#allocation43_spill] sm:$0xff] }
 0x837   :  { %3843 = vtanh.f32 %v1722_v37  ;;  %v1740_v33 = vadd.f32 1.0, %v3840_v49  ;;  %v6991_v37 = vld [vmem:[#allocation41_spill] sm:$0xff] }
 0x838   :  { %3845 = vrcp.f32 %v1733_v54  ;;  %v6994_v54 = vld [vmem:[#allocation44_spill] sm:$0xff]  ;;  %v6995_v49 = vld [vmem:[#allocation45_spill] sm:$0xff] }
 0x839   :  { %3847 = vrcp.f32 %v1740_v33  ;;  %v6999_v33 = vld [vmem:[#allocation50_spill] sm:$0xff] }
 0x843   :  { %v3842_v32 = vpop.eup %3841 }
 0x844   :  { %v3844_v6 = vpop.eup %3843 }
 0x845   :  { %v3846_v25 = vpop.eup %3845  ;;  %v1744_v38 = vmul.f32 %v3844_v6, %v3842_v32  ;;  %v6996_v32 = vld [vmem:[#allocation46_spill] sm:$0xff]  ;;  %v6997_v6 = vld [vmem:[#allocation47_spill] sm:$0xff] }
 0x846   :  { %v1743_v44 = vmul.f32 %v3846_v25, %v5443_v19  ;;  %v3848_v61 = vpop.eup %3847  ;;  %v6983_v19 = vld [vmem:[#allocation32_spill] sm:$0xff]  ;;  %v6998_v25 = vld [vmem:[#allocation49_spill] sm:$0xff] }
 0x848   :  { %v1745_v52 = vadd.f32 %v1744_v38, %v1743_v44  ;;  %v7000_v38 = vld [vmem:[#allocation52_spill] sm:$0xff]  ;;  %v7001_v44 = vld [vmem:[#allocation53_spill] sm:$0xff] }
 0x84a   :  { %3849 = vtanh.f32 %v1745_v52  ;;  %1749 = vst [vmem:[#allocation21] sm:$0xff] %v1745_v52  ;;  %v7002_v52 = vld [vmem:[#allocation54_spill] sm:$0xff] }
 0x857   :  { %v3850_v2 = vpop.eup %3849 }
 0x858   :  { %v1747_v31 = vmul.f32 %v3850_v2, %v3848_v61  ;;  %v7003_v61 = vld [vmem:[#allocation51_spill] sm:$0xff] }
 0x859   :  { %v7004_v2 = vld [vmem:[#allocation55_spill] sm:$0xff] }
 0x85a   :  { %1943 = vmatmul.mubr.f32.gmra.mxu0 %v1747_v31  ;;  %1748 = vst [vmem:[#allocation19] sm:$0xff] %v1747_v31  ;;  %2056 = vmatmul.mubr.f32.gmra.mxu1 %v1747_v31  ;;  %v7005_v31 = vld [vmem:[#allocation66_spill] sm:$0xff] }
 0x85b   :  { %2194 = vmatprep.mubr.f32.mxu0 %v6946_v42  ;;  %2265 = vmatprep.mubr.f32.mxu1 %v6946_v42 }
 0x85e   :  { %2195 = vmatmul.mubr.f32.vlgmr.msra.gmra.mxu0 %v3676_v41  ;;  %2266 = vmatmul.mubr.f32.vlgmr.msra.gmra.mxu1 %v3676_v41  ;;  %v7006_v41 = vld [vmem:[#allocation29_spill] sm:$0xff] }
 0x85f   :  { %2301 = vmatpush1.msra.mxu0 %v5485_v56  ;;  %2372 = vmatpush1.msra.mxu1 %v5488_v13 }
 0x860   :  { %2302 = vmatprep.subr.mxu0 %v5491_v55  ;;  %2373 = vmatprep.subr.mxu1 %v5494_v22 }
 0x861   :  { %2303 = vmatpush1.msra.mxu0 %v5497_v3  ;;  %2374 = vmatpush1.msra.mxu1 %v5500_v48 }
 0x862   :  { %2304 = vmatprep.subr.mxu0 %v5503_v51  ;;  %2375 = vmatprep.subr.mxu1 %v5506_v0 }
 0x863   :  { %2305 = vmatpush1.msra.mxu0 %v5509_v57  ;;  %2376 = vmatpush1.msra.mxu1 %v5512_v58 }
 0x864   :  { %2306 = vmatprep.subr.mxu0 %v5515_v12  ;;  %2377 = vmatprep.subr.mxu1 %v5518_v5 }
 0x865   :  { %2307 = vmatpush1.msra.mxu0 %v5521_v34  ;;  %2378 = vmatpush1.msra.mxu1 %v5524_v39 }
 0x866   :  { %2308 = vmatprep.subr.mxu0 %v5527_v27  ;;  %2379 = vmatprep.subr.mxu1 %v5530_v11 }
 0x867   :  { %2309 = vmatpush1.msra.mxu0 %v5533_v7  ;;  %2380 = vmatpush1.msra.mxu1 %v5536_v28 }
 0x868   :  { %2310 = vmatprep.subr.mxu0 %v5539_v8  ;;  %2381 = vmatprep.subr.mxu1 %v5542_v10 }
 0x869   :  { %2311 = vmatpush1.msra.mxu0 %v5545_v4  ;;  %2382 = vmatpush1.msra.mxu1 %v5548_v29 }
 0x86a   :  { %2312 = vmatprep.subr.mxu0 %v5551_v9  ;;  %2383 = vmatprep.subr.mxu1 %v5554_v36 }
 0x86b   :  { %2313 = vmatpush1.msra.mxu0 %v5557_v59  ;;  %2384 = vmatpush1.msra.mxu1 %v5560_v46 }
 0x86c   :  { %2314 = vmatprep.subr.mxu0 %v5563_v53  ;;  %2385 = vmatprep.subr.mxu1 %v5566_v14 }
 0x86d   :  { %2315 = vmatpush1.msra.mxu0 %v5569_v15  ;;  %2386 = vmatpush1.msra.mxu1 %v5572_v45 }
 0x86e   :  { %2316 = vmatprep.subr.mxu0 %v5575_v16  ;;  %2387 = vmatprep.subr.mxu1 %v5578_v17 }
 0x86f   :  { %2317 = vmatpush1.msra.mxu0 %v5581_v18  ;;  %2388 = vmatpush1.msra.mxu1 %v5584_v20 }
 0x870   :  { %2318 = vmatprep.subr.mxu0 %v5587_v21  ;;  %2389 = vmatprep.subr.mxu1 %v5590_v23 }
 0x871   :  { %2319 = vmatpush1.msra.mxu0 %v5593_v24  ;;  %2390 = vmatpush1.msra.mxu1 %v5596_v26 }
 0x872   :  { %2320 = vmatprep.subr.mxu0 %v5599_v30  ;;  %2391 = vmatprep.subr.mxu1 %v6983_v19 }
 0x873   :  { %2321 = vmatpush1.msra.mxu0 %v6984_v47  ;;  %2392 = vmatpush1.msra.mxu1 %v6985_v50 }
 0x874   :  { %2322 = vmatprep.subr.mxu0 %v6986_v63  ;;  %2393 = vmatprep.subr.mxu1 %v6987_v62 }
 0x875   :  { %2323 = vmatpush1.msra.mxu0 %v6988_v1  ;;  %2394 = vmatpush1.msra.mxu1 %v6989_v60 }
 0x876   :  { %2324 = vmatprep.subr.mxu0 %v6990_v43  ;;  %2395 = vmatprep.subr.mxu1 %v6991_v37 }
 0x877   :  { %2325 = vmatpush1.msra.mxu0 %v6992_v40  ;;  %2396 = vmatpush1.msra.mxu1 %v6993_v35 }
 0x878   :  { %2326 = vmatprep.subr.mxu0 %v6994_v54  ;;  %2397 = vmatprep.subr.mxu1 %v6995_v49 }
 0x879   :  { %2327 = vmatpush1.msra.mxu0 %v6996_v32  ;;  %2398 = vmatpush1.msra.mxu1 %v6997_v6 }
 0x87a   :  { %2328 = vmatprep.subr.mxu0 %v6998_v25  ;;  %2399 = vmatprep.subr.mxu1 %v6999_v33  ;;  %v7007_v25 = vld [vmem:[#allocation30_spill] sm:$0xff]  ;;  %v1902_v33 = vpop.f32.mrf.mxu0 }
 0x87b   :  { %2329 = vmatpush1.msra.mxu0 %v7000_v38  ;;  %2400 = vmatpush1.msra.mxu1 %v7001_v44  ;;  %v2015_v38 = vpop.f32.mrf.mxu1 }
 0x87c   :  { %2330 = vmatprep.subr.mxu0 %v7002_v52  ;;  %2401 = vmatprep.subr.mxu1 %v7003_v61  ;;  %v1904_v6 = vpop.f32.mrf.mxu0 }
 0x87d   :  { %2331 = vmatpush1.msra.mxu0 %v7004_v2  ;;  %2364 = vmatprep.mubr.f32.mxu0 %v6946_v42  ;;  %v2017_v44 = vpop.f32.mrf.mxu1 }
 0x87e   :  { %2402 = vmatpush1.msra.mxu1 %v7005_v31  ;;  %2435 = vmatprep.mubr.f32.mxu1 %v6946_v42  ;;  %v5754_v32 = vpop.f32.mrf.mxu0 }
 0x87f   :  { %2470 = vmatprep.subr.mxu0 %v7006_v41  ;;  %2541 = vmatprep.subr.mxu1 %v7007_v25  ;;  %7008 = vst [vmem:[#allocation57_spill] sm:$0xff] %v5754_v32  ;;  %v5756_v52 = vpop.f32.mrf.mxu1 }
 0x880   :  { %7009 = vst [vmem:[#allocation58_spill] sm:$0xff] %v5756_v52  ;;  %v5758_v61 = vpop.f32.mrf.mxu0 }
 0x881   :  { %7010 = vst [vmem:[#allocation60_spill] sm:$0xff] %v5758_v61  ;;  %v5760_v2 = vpop.f32.mrf.mxu1 }
 0x882   :  { %7011 = vst [vmem:[#allocation64_spill] sm:$0xff] %v5760_v2  ;;  %v5762_v49 = vpop.f32.mrf.mxu0 }
 0x883   :  { %7012 = vst [vmem:[#allocation65_spill] sm:$0xff] %v5762_v49  ;;  %v5764_v31 = vpop.f32.mrf.mxu1 }
 0x884   :  { %7013 = vst [vmem:[#allocation59_spill] sm:$0xff] %v5764_v31  ;;  %v5766_v42 = vpop.f32.mrf.mxu0 }
 0x885   :  { %7014 = vst [vmem:[#allocation62_spill] sm:$0xff] %v5766_v42  ;;  %v5768_v41 = vpop.f32.mrf.mxu1 }
 0x886   :  { %7015 = vst [vmem:[#allocation31_spill] sm:$0xff] %v5768_v41  ;;  %v5770_v25 = vpop.f32.mrf.mxu0 }
 0x887   :  { %7016 = vst [vmem:[#allocation67_spill] sm:$0xff] %v5770_v25  ;;  %v5772_v54 = vpop.f32.mrf.mxu1 }
 0x888   :  { %7017 = vst [vmem:[#allocation32_spill] sm:$0xff] %v5772_v54  ;;  %v5774_v35 = vpop.f32.mrf.mxu0 }
 0x889   :  { %7018 = vst [vmem:[#allocation68_spill] sm:$0xff] %v5774_v35  ;;  %v5776_v32 = vpop.f32.mrf.mxu1 }
 0x88a   :  { %7019 = vst [vmem:[#allocation69_spill] sm:$0xff] %v5776_v32  ;;  %v5778_v52 = vpop.f32.mrf.mxu0  ;;  %v1814_v32 = vld [vmem:[#allocation14] sm:$0xf] }
 0x88b   :  { %7020 = vst [vmem:[#allocation70_spill] sm:$0xff] %v5778_v52  ;;  %v5780_v61 = vpop.f32.mrf.mxu1 }
 0x88c   :  { %7021 = vst [vmem:[#allocation71_spill] sm:$0xff] %v5780_v61  ;;  %v5782_v2 = vpop.f32.mrf.mxu0  ;;  %v7031_v61 = vld [vmem:[#allocation48_spill] sm:$0xff] }
 0x88d   :  { %7022 = vst [vmem:[#allocation72_spill] sm:$0xff] %v5782_v2  ;;  %v5784_v49 = vpop.f32.mrf.mxu1  ;;  %v5801_v40 = vrot.slane %v1814_v32, %v7031_v61 }
 0x88e   :  { %7023 = vst [vmem:[#allocation73_spill] sm:$0xff] %v5784_v49  ;;  %v5786_v31 = vpop.f32.mrf.mxu0 }
 0x88f   :  { %7024 = vst [vmem:[#allocation74_spill] sm:$0xff] %v5786_v31  ;;  %v5788_v42 = vpop.f32.mrf.mxu1  ;;  %7032 = vst [vmem:[#allocation48_spill] sm:$0xff] %v5801_v40  ;;  %v7035_v31 = vld [vmem:[#allocation56_spill] sm:$0xff] }
 0x890   :  { %7025 = vst [vmem:[#allocation75_spill] sm:$0xff] %v5788_v42  ;;  %v5790_v41 = vpop.f32.mrf.mxu0  ;;  %v5808_v42 = vrot.slane %v1814_v32, %v7035_v31  ;;  %v7039_v31 = vld [vmem:[#allocation61_spill] sm:$0xff] }
 0x891   :  { %7026 = vst [vmem:[#allocation76_spill] sm:$0xff] %v5790_v41  ;;  %v5792_v25 = vpop.f32.mrf.mxu1  ;;  %v5819_v62 = vrot.slane %v1814_v32, %v7039_v31  ;;  %v2129_v31 = vld [vmem:[#allocation17 + $0x8] sm:$0xff] }
 0x892   :  { %7027 = vst [vmem:[#allocation77_spill] sm:$0xff] %v5792_v25  ;;  %v5794_v54 = vpop.f32.mrf.mxu0  ;;  %v1905_v37 = vadd.f32 %v1904_v6, %v5808_v42 }
 0x893   :  { %7028 = vst [vmem:[#allocation78_spill] sm:$0xff] %v5794_v54  ;;  %v5796_v35 = vpop.f32.mrf.mxu1  ;;  %v1903_v54 = vadd.f32 %v1902_v33, %v5801_v40  ;;  %7040 = vst [vmem:[#allocation61_spill] sm:$0xff] %v5819_v62  ;;  %v7041_v33 = vld [vmem:[#allocation63_spill] sm:$0xff] }
 0x894   :  { %7029 = vst [vmem:[#allocation79_spill] sm:$0xff] %v5796_v35  ;;  %v5798_v52 = vpop.f32.mrf.mxu0  ;;  %v5823_v40 = vrot.slane %v1814_v32, %v7041_v33 }
 0x895   :  { %7030 = vst [vmem:[#allocation80_spill] sm:$0xff] %v5798_v52  ;;  %v5803_v2 = vpop.f32.mrf.mxu1 }
 0x896   :  { %7033 = vst [vmem:[#allocation81_spill] sm:$0xff] %v5803_v2 }
 0x91a   :  { %v5805_v49 = vpop.f32.mrf.mxu0  ;;  %v5810_v41 = vpop.f32.mrf.mxu1 }
 0x91b   :  { %7034 = vst [vmem:[#allocation82_spill] sm:$0xff] %v5805_v49  ;;  %7036 = vst [vmem:[#allocation56_spill] sm:$0xff] %v5810_v41 }
 0x91c   :  { %v5812_v25 = vpop.f32.mrf.mxu0  ;;  %v5816_v52 = vpop.f32.mrf.mxu1 }
 0x91d   :  { %7037 = vst [vmem:[#allocation83_spill] sm:$0xff] %v5812_v25  ;;  %7038 = vst [vmem:[#allocation84_spill] sm:$0xff] %v5816_v52  ;;  %v2018_v25 = vadd.f32 %v2017_v44, %v5819_v62  ;;  %v2016_v52 = vadd.f32 %v2015_v38, %v5823_v40 }
 0x91e   :  { %v2196_v35 = vpop.f32.mrf.mxu0  ;;  %v2267_v49 = vpop.f32.mrf.mxu1 }
 0x91f   :  { %v2272_v61 = vadd.f32 %v2196_v35, %v1903_v54 }
 0x920   :  { %v2198_v43 = vpop.f32.mrf.mxu0  ;;  %v2269_v41 = vpop.f32.mrf.mxu1 }
 0x921   :  { %v3677_v60 = vmul.f32 -1.442695, %v2272_v61  ;;  %v2273_v2 = vadd.f32 %v2198_v43, %v1905_v37  ;;  %v2275_v6 = vadd.f32 %v2269_v41, %v2018_v25  ;;  %v2274_v61 = vadd.f32 %v2267_v49, %v2016_v52  ;;  %v5829_v52 = vld [vmem:[#allocation15] ss:$0 sm:$0xff] }
 0x923   :  { %3851 = vpow2.f32 %v3677_v60  ;;  %v3678_v1 = vmul.f32 -1.442695, %v2273_v2  ;;  %v3679_v35 = vmul.f32 -1.442695, %v2275_v6 }
 0x925   :  { %3853 = vpow2.f32 %v3678_v1 }
 0x926   :  { %3855 = vpow2.f32 %v3679_v35 }
 0x930   :  { %v3852_v54 = vpop.eup %3851 }
 0x931   :  { %v2279_v43 = vadd.f32 1.0, %v3852_v54  ;;  %v7043_v54 = vld [vmem:[#allocation37_spill] sm:$0xff] }
 0x932   :  { %v3854_v60 = vpop.eup %3853 }
 0x933   :  { %3857 = vrcp.f32 %v2279_v43  ;;  %v2285_v37 = vadd.f32 1.0, %v3854_v60  ;;  %v3856_v1 = vpop.eup %3855  ;;  %v7045_v43 = vld [vmem:[#allocation40_spill] sm:$0xff]  ;;  %v7046_v60 = vld [vmem:[#allocation41_spill] sm:$0xff] }
 0x934   :  { %3859 = vtanh.f32 %v2274_v61  ;;  %v2292_v32 = vadd.f32 1.0, %v3856_v1  ;;  %v7044_v61 = vld [vmem:[#allocation38_spill] sm:$0xff]  ;;  %v7048_v1 = vld [vmem:[#allocation43_spill] sm:$0xff] }
 0x935   :  { %3861 = vrcp.f32 %v2285_v37  ;;  %v7047_v37 = vld [vmem:[#allocation42_spill] sm:$0xff] }
 0x936   :  { %3863 = vrcp.f32 %v2292_v32  ;;  %v7052_v32 = vld [vmem:[#allocation47_spill] sm:$0xff] }
 0x940   :  { %v3858_v2 = vpop.eup %3857 }
 0x941   :  { %v3860_v44 = vpop.eup %3859 }
 0x942   :  { %v3862_v62 = vpop.eup %3861  ;;  %v2296_v33 = vmul.f32 %v3860_v44, %v3858_v2  ;;  %v7049_v2 = vld [vmem:[#allocation44_spill] sm:$0xff]  ;;  %v7051_v44 = vld [vmem:[#allocation46_spill] sm:$0xff] }
 0x943   :  { %v2295_v25 = vmul.f32 %v3862_v62, %v2129_v31  ;;  %v3864_v49 = vpop.eup %3863  ;;  %v7042_v62 = vld [vmem:[#allocation36_spill] sm:$0xff]  ;;  %v7050_v31 = vld [vmem:[#allocation45_spill] sm:$0xff] }
 0x945   :  { %v5826_v41 = vadd.f32 %v2296_v33, %v2295_v25  ;;  %v7053_v33 = vld [vmem:[#allocation49_spill] sm:$0xff]  ;;  %v7054_v25 = vld [vmem:[#allocation50_spill] sm:$0xff] }
 0x947   :  { %3865 = vtanh.f32 %v5826_v41 }
 0x954   :  { %v3866_v38 = vpop.eup %3865 }
 0x955   :  { %v2299_v6 = vmul.f32 %v3866_v38, %v3864_v49  ;;  %v7055_v49 = vld [vmem:[#allocation52_spill] sm:$0xff]  ;;  %v7056_v38 = vld [vmem:[#allocation53_spill] sm:$0xff] }
 0x957   :  { %2365 = vmatmul.mubr.f32.vlgmr.msra.gmra.mxu0 %v2299_v6  ;;  %2436 = vmatmul.mubr.f32.vlgmr.msra.gmra.mxu1 %v2299_v6  ;;  %v3501_v35 = vmul.f32 %v5829_v52, %v2299_v6  ;;  %v7057_v6 = vld [vmem:[#allocation54_spill] sm:$0xff] }
 0x958   :  { %2471 = vmatpush1.msra.mxu0 %v5485_v56  ;;  %2542 = vmatpush1.msra.mxu1 %v5488_v13 }
 0x959   :  { %3509 = vadd.xlane.f32.xlu0 %v3501_v35  ;;  %2472 = vmatprep.subr.mxu0 %v5491_v55  ;;  %v7058_v35 = vld [vmem:[#allocation51_spill] sm:$0xff] }
 0x95a   :  { %2543 = vmatprep.subr.mxu1 %v5494_v22  ;;  %2473 = vmatpush1.msra.mxu0 %v5497_v3 }
 0x95b   :  { %2544 = vmatpush1.msra.mxu1 %v5500_v48  ;;  %2474 = vmatprep.subr.mxu0 %v5503_v51 }
 0x95c   :  { %2545 = vmatprep.subr.mxu1 %v5506_v0  ;;  %2475 = vmatpush1.msra.mxu0 %v5509_v57 }
 0x95d   :  { %2546 = vmatpush1.msra.mxu1 %v5512_v58  ;;  %2476 = vmatprep.subr.mxu0 %v5515_v12 }
 0x95e   :  { %2547 = vmatprep.subr.mxu1 %v5518_v5  ;;  %2477 = vmatpush1.msra.mxu0 %v5521_v34 }
 0x95f   :  { %2548 = vmatpush1.msra.mxu1 %v5524_v39  ;;  %2478 = vmatprep.subr.mxu0 %v5527_v27 }
 0x960   :  { %2549 = vmatprep.subr.mxu1 %v5530_v11  ;;  %2479 = vmatpush1.msra.mxu0 %v5533_v7 }
 0x961   :  { %2550 = vmatpush1.msra.mxu1 %v5536_v28  ;;  %2480 = vmatprep.subr.mxu0 %v5539_v8 }
 0x962   :  { %2551 = vmatprep.subr.mxu1 %v5542_v10  ;;  %2481 = vmatpush1.msra.mxu0 %v5545_v4 }
 0x963   :  { %2552 = vmatpush1.msra.mxu1 %v5548_v29  ;;  %2482 = vmatprep.subr.mxu0 %v5551_v9 }
 0x964   :  { %2553 = vmatprep.subr.mxu1 %v5554_v36  ;;  %2483 = vmatpush1.msra.mxu0 %v5557_v59 }
 0x965   :  { %2554 = vmatpush1.msra.mxu1 %v5560_v46  ;;  %2484 = vmatprep.subr.mxu0 %v5563_v53 }
 0x966   :  { %2555 = vmatprep.subr.mxu1 %v5566_v14  ;;  %2485 = vmatpush1.msra.mxu0 %v5569_v15 }
 0x967   :  { %2556 = vmatpush1.msra.mxu1 %v5572_v45  ;;  %2486 = vmatprep.subr.mxu0 %v5575_v16 }
 0x968   :  { %2557 = vmatprep.subr.mxu1 %v5578_v17  ;;  %2487 = vmatpush1.msra.mxu0 %v5581_v18 }
 0x969   :  { %2558 = vmatpush1.msra.mxu1 %v5584_v20  ;;  %2488 = vmatprep.subr.mxu0 %v5587_v21 }
 0x96a   :  { %2559 = vmatprep.subr.mxu1 %v5590_v23  ;;  %2489 = vmatpush1.msra.mxu0 %v5593_v24 }
 0x96b   :  { %2560 = vmatpush1.msra.mxu1 %v5596_v26  ;;  %2490 = vmatprep.subr.mxu0 %v5599_v30 }
 0x96c   :  { %2561 = vmatprep.subr.mxu1 %v6983_v19  ;;  %2491 = vmatpush1.msra.mxu0 %v6984_v47 }
 0x96d   :  { %2562 = vmatpush1.msra.mxu1 %v6985_v50  ;;  %2492 = vmatprep.subr.mxu0 %v6986_v63  ;;  %v7069_v63 = vld [vmem:[#allocation58_spill] sm:$0xff] }
 0x96e   :  { %2563 = vmatprep.subr.mxu1 %v7042_v62  ;;  %2493 = vmatpush1.msra.mxu0 %v7043_v54  ;;  %v7067_v54 = vld [vmem:[#allocation61_spill] sm:$0xff] }
 0x96f   :  { %2564 = vmatpush1.msra.mxu1 %v7044_v61  ;;  %2494 = vmatprep.subr.mxu0 %v7045_v43 }
 0x970   :  { %2565 = vmatprep.subr.mxu1 %v7046_v60  ;;  %2495 = vmatpush1.msra.mxu0 %v7047_v37 }
 0x971   :  { %2566 = vmatpush1.msra.mxu1 %v7048_v1  ;;  %2496 = vmatprep.subr.mxu0 %v7049_v2  ;;  %v7059_v1 = vld [vmem:[#allocation55_spill] sm:$0xff]  ;;  %v7060_v2 = vmov 0.0  }
 0x972   :  { %2567 = vmatprep.subr.mxu1 %v7050_v31  ;;  %2497 = vmatpush1.msra.mxu0 %v7051_v44  ;;  %v7061_v31 = vld [vmem:[#allocation66_spill] sm:$0xff] }
 0x973   :  { %2568 = vmatpush1.msra.mxu1 %v7052_v32  ;;  %2498 = vmatprep.subr.mxu0 %v7053_v33  ;;  %v7062_v32 = vld [vmem:[#allocation29_spill] sm:$0xff]  ;;  %v7063_v33 = vld [vmem:[#allocation30_spill] sm:$0xff] }
 0x974   :  { %2569 = vmatprep.subr.mxu1 %v7054_v25  ;;  %2499 = vmatpush1.msra.mxu0 %v7055_v49  ;;  %v7064_v25 = vld [vmem:[#allocation48_spill] sm:$0xff]  ;;  %v7065_v49 = vld [vmem:[#allocation57_spill] sm:$0xff] }
 0x975   :  { %2570 = vmatpush1.msra.mxu1 %v7056_v38  ;;  %2500 = vmatprep.subr.mxu0 %v7057_v6  ;;  %v1909_v44 = vadd.f32 %v7065_v49, %v7064_v25  ;;  %v7066_v6 = vld [vmem:[#allocation60_spill] sm:$0xff]  ;;  %v2022_v49 = vadd.f32 %v7069_v63, %v5823_v40 }
 0x976   :  { %2571 = vmatprep.subr.mxu1 %v7058_v35  ;;  %2501 = vmatpush1.msra.mxu0 %v7059_v1  ;;  %v1911_v37 = vadd.f32 %v7066_v6, %v5808_v42 }
 0x977   :  { %2534 = vmatprep.mubr.f32.mxu0 %v7060_v2  ;;  %2572 = vmatpush1.msra.mxu1 %v7061_v31 }
 0x978   :  { %2605 = vmatprep.mubr.f32.mxu1 %v7060_v2  ;;  %2640 = vmatprep.subr.mxu0 %v7062_v32  ;;  %v7068_v32 = vld [vmem:[#allocation64_spill] sm:$0xff] }
 0x979   :  { %2711 = vmatprep.subr.mxu1 %v7063_v33  ;;  %v2024_v62 = vadd.f32 %v7068_v32, %v7067_v54 }
 0xa17   :  { %v2366_v38 = vpop.f32.mrf.mxu0  ;;  %v2437_v61 = vpop.f32.mrf.mxu1 }
 0xa18   :  { %v2442_v35 = vadd.f32 %v2366_v38, %v1909_v44  ;;  %v2444_v25 = vadd.f32 %v2437_v61, %v2022_v49 }
 0xa19   :  { %v2368_v60 = vpop.f32.mrf.mxu0  ;;  %v2439_v2 = vpop.f32.mrf.mxu1 }
 0xa1a   :  { %v3680_v1 = vmul.f32 -1.442695, %v2442_v35  ;;  %v2443_v43 = vadd.f32 %v2368_v60, %v1911_v37  ;;  %v2445_v33 = vadd.f32 %v2439_v2, %v2024_v62 }
 0xa1c   :  { %3867 = vpow2.f32 %v3680_v1  ;;  %v3681_v31 = vmul.f32 -1.442695, %v2443_v43  ;;  %v3682_v50 = vmul.f32 -1.442695, %v2445_v33 }
 0xa1e   :  { %3869 = vpow2.f32 %v3681_v31 }
 0xa1f   :  { %3871 = vtanh.f32 %v2444_v25 }
 0xa20   :  { %3873 = vpow2.f32 %v3682_v50 }
 0xa29   :  { %v3868_v47 = vpop.eup %3867 }
 0xa2a   :  { %v2449_v6 = vadd.f32 1.0, %v3868_v47 }
 0xa2b   :  { %v3870_v44 = vpop.eup %3869 }
 0xa2c   :  { %3875 = vrcp.f32 %v2449_v6  ;;  %v2455_v60 = vadd.f32 1.0, %v3870_v44  ;;  %v3872_v43 = vpop.eup %3871 }
 0xa2d   :  { %v3874_v37 = vpop.eup %3873 }
 0xa2e   :  { %3877 = vrcp.f32 %v2455_v60  ;;  %v2462_v32 = vadd.f32 1.0, %v3874_v37  ;;  %v7098_v60 = vld [vmem:[#allocation31_spill] sm:$0xff] }
 0xa30   :  { %3879 = vrcp.f32 %v2462_v32 }
 0xa39   :  { %v3876_v1 = vpop.eup %3875 }
 0xa3a   :  { %v2466_v31 = vmul.f32 %v3876_v1, %v3872_v43  ;;  %v2030_v43 = vadd.f32 %v7098_v60, %v7067_v54  ;;  %v7099_v1 = vld [vmem:[#allocation59_spill] sm:$0xff]  ;;  %v6002_v60 = vld [vmem:[#allocation12 + $0x1c0] sm:$0xff] }
 0xa3b   :  { %v3878_v38 = vpop.eup %3877 }
 0xa3c   :  { %v2465_v62 = vmul.f32 %v3878_v38, %v5826_v41 }
 0xa3d   :  { %v3880_v47 = vpop.eup %3879 }
 0xa3e   :  { %v5907_v2 = vadd.f32 %v2466_v31, %v2465_v62  ;;  %v2028_v31 = vadd.f32 %v7099_v1, %v5823_v40  ;;  %v6011_v1 = vld [vmem:[#allocation12 + $0x1b8] sm:$0xff] }
 0xa40   :  { %3881 = vtanh.f32 %v5907_v2 }
 0xa4d   :  { %v3882_v63 = vpop.eup %3881 }
 0xa4e   :  { %v2469_v61 = vmul.f32 %v3882_v63, %v3880_v47 }
 0xa50   :  { %2535 = vmatmul.mubr.f32.vlgmr.msra.gmra.mxu0 %v2469_v61  ;;  %2606 = vmatmul.mubr.f32.vlgmr.msra.gmra.mxu1 %v2469_v61  ;;  %v3502_v50 = vmul.f32 %v5829_v52, %v2469_v61 }
 0xa51   :  { %2641 = vmatpush1.msra.mxu0 %v5485_v56  ;;  %2712 = vmatpush1.msra.mxu1 %v5488_v13  ;;  %v7070_v56 = vld [vmem:[#allocation33_spill] sm:$0xff]  ;;  %v7071_v13 = vld [vmem:[#allocation34_spill] sm:$0xff] }
 0xa52   :  { %3511 = vadd.xlane.f32.xlu1 %v3502_v50  ;;  %2642 = vmatprep.subr.mxu0 %v5491_v55  ;;  %v7072_v55 = vld [vmem:[#allocation35_spill] sm:$0xff] }
 0xa53   :  { %2713 = vmatprep.subr.mxu1 %v5494_v22  ;;  %2643 = vmatpush1.msra.mxu0 %v5497_v3  ;;  %v7073_v22 = vld [vmem:[#allocation36_spill] sm:$0xff]  ;;  %v7074_v3 = vld [vmem:[#allocation37_spill] sm:$0xff] }
 0xa54   :  { %2714 = vmatpush1.msra.mxu1 %v5500_v48  ;;  %2644 = vmatprep.subr.mxu0 %v5503_v51  ;;  %v7075_v48 = vld [vmem:[#allocation38_spill] sm:$0xff]  ;;  %v7076_v51 = vld [vmem:[#allocation40_spill] sm:$0xff] }
 0xa55   :  { %2715 = vmatprep.subr.mxu1 %v5506_v0  ;;  %2645 = vmatpush1.msra.mxu0 %v5509_v57  ;;  %v7077_v0 = vld [vmem:[#allocation41_spill] sm:$0xff]  ;;  %v7078_v57 = vld [vmem:[#allocation42_spill] sm:$0xff] }
 0xa56   :  { %2716 = vmatpush1.msra.mxu1 %v5512_v58  ;;  %2646 = vmatprep.subr.mxu0 %v5515_v12  ;;  %v7079_v58 = vld [vmem:[#allocation43_spill] sm:$0xff]  ;;  %v7080_v12 = vld [vmem:[#allocation44_spill] sm:$0xff] }
 0xa57   :  { %2717 = vmatprep.subr.mxu1 %v5518_v5  ;;  %2647 = vmatpush1.msra.mxu0 %v5521_v34  ;;  %v7081_v5 = vld [vmem:[#allocation45_spill] sm:$0xff]  ;;  %v7082_v34 = vld [vmem:[#allocation46_spill] sm:$0xff] }
 0xa58   :  { %2718 = vmatpush1.msra.mxu1 %v5524_v39  ;;  %2648 = vmatprep.subr.mxu0 %v5527_v27  ;;  %v7083_v39 = vld [vmem:[#allocation47_spill] sm:$0xff]  ;;  %v7084_v27 = vld [vmem:[#allocation49_spill] sm:$0xff] }
 0xa59   :  { %2719 = vmatprep.subr.mxu1 %v5530_v11  ;;  %2649 = vmatpush1.msra.mxu0 %v5533_v7  ;;  %v7085_v11 = vld [vmem:[#allocation50_spill] sm:$0xff]  ;;  %v7086_v7 = vld [vmem:[#allocation52_spill] sm:$0xff] }
 0xa5a   :  { %2720 = vmatpush1.msra.mxu1 %v5536_v28  ;;  %2650 = vmatprep.subr.mxu0 %v5539_v8  ;;  %v7087_v28 = vld [vmem:[#allocation53_spill] sm:$0xff]  ;;  %v7088_v8 = vld [vmem:[#allocation54_spill] sm:$0xff] }
 0xa5b   :  { %2721 = vmatprep.subr.mxu1 %v5542_v10  ;;  %2651 = vmatpush1.msra.mxu0 %v5545_v4  ;;  %v7089_v10 = vld [vmem:[#allocation51_spill] sm:$0xff] }
 0xa5c   :  { %2722 = vmatpush1.msra.mxu1 %v5548_v29  ;;  %2652 = vmatprep.subr.mxu0 %v5551_v9  ;;  %v7090_v4 = vld [vmem:[#allocation55_spill] sm:$0xff]  ;;  %v7091_v29 = vmov 0.0   ;;  %v7092_v9 = vld [vmem:[#allocation66_spill] sm:$0xff] }
 0xa5d   :  { %2723 = vmatprep.subr.mxu1 %v5554_v36  ;;  %2653 = vmatpush1.msra.mxu0 %v5557_v59  ;;  %v7093_v36 = vld [vmem:[#allocation29_spill] sm:$0xff]  ;;  %v7094_v59 = vld [vmem:[#allocation30_spill] sm:$0xff] }
 0xa5e   :  { %2724 = vmatpush1.msra.mxu1 %v5560_v46  ;;  %2654 = vmatprep.subr.mxu0 %v5563_v53  ;;  %v7095_v46 = vld [vmem:[#allocation48_spill] sm:$0xff]  ;;  %v7096_v53 = vld [vmem:[#allocation65_spill] sm:$0xff] }
 0xa5f   :  { %2725 = vmatprep.subr.mxu1 %v5566_v14  ;;  %2655 = vmatpush1.msra.mxu0 %v5569_v15  ;;  %v1915_v14 = vadd.f32 %v7096_v53, %v7095_v46 }
 0xa60   :  { %2726 = vmatpush1.msra.mxu1 %v5572_v45  ;;  %2656 = vmatprep.subr.mxu0 %v5575_v16  ;;  %v7097_v45 = vld [vmem:[#allocation62_spill] sm:$0xff] }
 0xa61   :  { %2727 = vmatprep.subr.mxu1 %v5578_v17  ;;  %2657 = vmatpush1.msra.mxu0 %v5581_v18  ;;  %v1917_v16 = vadd.f32 %v7097_v45, %v5808_v42 }
 0xa62   :  { %2728 = vmatpush1.msra.mxu1 %v5584_v20  ;;  %2658 = vmatprep.subr.mxu0 %v5587_v21 }
 0xa63   :  { %2729 = vmatprep.subr.mxu1 %v5590_v23  ;;  %2659 = vmatpush1.msra.mxu0 %v5593_v24 }
 0xa64   :  { %2730 = vmatpush1.msra.mxu1 %v5596_v26  ;;  %2660 = vmatprep.subr.mxu0 %v5599_v30 }
 0xa65   :  { %2731 = vmatprep.subr.mxu1 %v6983_v19  ;;  %2661 = vmatpush1.msra.mxu0 %v7070_v56 }
 0xa66   :  { %2732 = vmatpush1.msra.mxu1 %v7071_v13  ;;  %2662 = vmatprep.subr.mxu0 %v7072_v55 }
 0xa67   :  { %2733 = vmatprep.subr.mxu1 %v7073_v22  ;;  %2663 = vmatpush1.msra.mxu0 %v7074_v3 }
 0xa68   :  { %2734 = vmatpush1.msra.mxu1 %v7075_v48  ;;  %2664 = vmatprep.subr.mxu0 %v7076_v51 }
 0xa69   :  { %2735 = vmatprep.subr.mxu1 %v7077_v0  ;;  %2665 = vmatpush1.msra.mxu0 %v7078_v57 }
 0xa6a   :  { %2736 = vmatpush1.msra.mxu1 %v7079_v58  ;;  %2666 = vmatprep.subr.mxu0 %v7080_v12 }
 0xa6b   :  { %2737 = vmatprep.subr.mxu1 %v7081_v5  ;;  %2667 = vmatpush1.msra.mxu0 %v7082_v34 }
 0xa6c   :  { %2738 = vmatpush1.msra.mxu1 %v7083_v39  ;;  %2668 = vmatprep.subr.mxu0 %v7084_v27 }
 0xa6d   :  { %2739 = vmatprep.subr.mxu1 %v7085_v11  ;;  %2669 = vmatpush1.msra.mxu0 %v7086_v7 }
 0xa6e   :  { %2740 = vmatpush1.msra.mxu1 %v7087_v28  ;;  %2670 = vmatprep.subr.mxu0 %v7088_v8 }
 0xa6f   :  { %2741 = vmatprep.subr.mxu1 %v7089_v10  ;;  %2671 = vmatpush1.msra.mxu0 %v7090_v4 }
 0xa70   :  { %2704 = vmatprep.mubr.f32.mxu0 %v7091_v29  ;;  %2742 = vmatpush1.msra.mxu1 %v7092_v9 }
 0xa71   :  { %2775 = vmatprep.mubr.f32.mxu1 %v7091_v29  ;;  %2810 = vmatprep.subr.mxu0 %v7093_v36 }
 0xa72   :  { %2881 = vmatprep.subr.mxu1 %v7094_v59 }
 0xb10   :  { %v2536_v15 = vpop.f32.mrf.mxu0  ;;  %v2607_v49 = vpop.f32.mrf.mxu1 }
 0xb11   :  { %v2612_v41 = vadd.f32 %v2536_v15, %v1915_v14  ;;  %v2614_v38 = vadd.f32 %v2607_v49, %v2028_v31  ;;  %v5990_v49 = vld [vmem:[#allocation12 + $0x1e0] sm:$0xff] }
 0xb12   :  { %v2538_v33 = vpop.f32.mrf.mxu0  ;;  %v2609_v44 = vpop.f32.mrf.mxu1  ;;  %v6014_v31 = vld [vmem:[#allocation12 + $0x1a0] sm:$0xff] }
 0xb13   :  { %v3683_v25 = vmul.f32 -1.442695, %v2612_v41  ;;  %v2613_v35 = vadd.f32 %v2538_v33, %v1917_v16  ;;  %v2615_v37 = vadd.f32 %v2609_v44, %v2030_v43  ;;  %v5999_v44 = vld [vmem:[#allocation12 + $0x1d8] sm:$0xff]  ;;  %v6005_v43 = vld [vmem:[#allocation12 + $0x1d0] sm:$0xff] }
 0xb15   :  { %3883 = vpow2.f32 %v3683_v25  ;;  %v3684_v6 = vmul.f32 -1.442695, %v2613_v35  ;;  %v3685_v32 = vmul.f32 -1.442695, %v2615_v37  ;;  %v6008_v37 = vld [vmem:[#allocation12 + $0x1a8] sm:$0xff] }
 0xb17   :  { %3885 = vpow2.f32 %v3684_v6  ;;  %v5993_v6 = vld [vmem:[#allocation12 + $0x1f0] sm:$0xff] }
 0xb18   :  { %3887 = vtanh.f32 %v2614_v38  ;;  %v6017_v38 = vld [vmem:[#allocation12 + $0x1b0] sm:$0xff] }
 0xb19   :  { %3889 = vpow2.f32 %v3685_v32  ;;  %v6020_v32 = vld [vmem:[#allocation12 + $0x188] sm:$0xff] }
 0xb22   :  { %v3884_v62 = vpop.eup %3883 }
 0xb23   :  { %v2619_v47 = vadd.f32 1.0, %v3884_v62  ;;  %v6023_v62 = vld [vmem:[#allocation12 + $0x198] sm:$0xff] }
 0xb24   :  { %v3886_v63 = vpop.eup %3885 }
 0xb25   :  { %3891 = vrcp.f32 %v2619_v47  ;;  %v2625_v61 = vadd.f32 1.0, %v3886_v63  ;;  %v3888_v50 = vpop.eup %3887  ;;  %v6026_v47 = vld [vmem:[#allocation12 + $0x180] sm:$0xff]  ;;  %v6029_v63 = vld [vmem:[#allocation12 + $0x190] sm:$0xff] }
 0xb26   :  { %v3890_v36 = vpop.eup %3889 }
 0xb27   :  { %3893 = vrcp.f32 %v2625_v61  ;;  %v2632_v15 = vadd.f32 1.0, %v3890_v36  ;;  %v6032_v61 = vld [vmem:[#allocation12 + $0x168] sm:$0xff]  ;;  %v6038_v36 = vld [vmem:[#allocation12 + $0x160] sm:$0xff] }
 0xb29   :  { %3895 = vrcp.f32 %v2632_v15  ;;  %v6050_v15 = vld [vmem:[#allocation12 + $0x140] sm:$0xff] }
 0xb2a   :  { %7100 = vst [vmem:[#allocation63_spill] sm:$0xff] %v6050_v15 }
 0xb32   :  { %v3892_v59 = vpop.eup %3891 }
 0xb33   :  { %v2636_v53 = vmul.f32 %v3892_v59, %v3888_v50  ;;  %v6035_v50 = vld [vmem:[#allocation12 + $0x178] sm:$0xff]  ;;  %v6041_v59 = vld [vmem:[#allocation12 + $0x170] sm:$0xff] }
 0xb34   :  { %v3894_v14 = vpop.eup %3893 }
 0xb35   :  { %v2635_v45 = vmul.f32 %v3894_v14, %v5907_v2  ;;  %v5996_v2 = vld [vmem:[#allocation12 + $0x1c8] sm:$0xff]  ;;  %v6047_v14 = vld [vmem:[#allocation12 + $0x158] sm:$0xff] }
 0xb36   :  { %v3896_v41 = vpop.eup %3895 }
 0xb37   :  { %v5986_v16 = vadd.f32 %v2636_v53, %v2635_v45  ;;  %v6044_v53 = vld [vmem:[#allocation12 + $0x148] sm:$0xff]  ;;  %v6053_v45 = vld [vmem:[#allocation12 + $0x150] sm:$0xff] }
 0xb38   :  { %7101 = vst [vmem:[#allocation57_spill] sm:$0xff] %v6053_v45 }
 0xb39   :  { %3897 = vtanh.f32 %v5986_v16 }
 0xb46   :  { %v3898_v33 = vpop.eup %3897 }
 0xb47   :  { %v2639_v25 = vmul.f32 %v3898_v33, %v3896_v41  ;;  %v6056_v41 = vld [vmem:[#allocation12 + $0x128] sm:$0xff]  ;;  %v6059_v33 = vld [vmem:[#allocation12 + $0x138] sm:$0xff] }
 0xb48   :  { %7102 = vst [vmem:[#allocation60_spill] sm:$0xff] %v6056_v41  ;;  %7103 = vst [vmem:[#allocation61_spill] sm:$0xff] %v6059_v33 }
 0xb49   :  { %2705 = vmatmul.mubr.f32.vlgmr.msra.gmra.mxu0 %v2639_v25  ;;  %2776 = vmatmul.mubr.f32.vlgmr.msra.gmra.mxu1 %v2639_v25  ;;  %v3503_v35 = vmul.f32 %v5829_v52, %v2639_v25  ;;  %v6062_v25 = vld [vmem:[#allocation12 + $0x120] sm:$0xff] }
 0xb4a   :  { %2811 = vmatpush1.msra.mxu0 %v5990_v49  ;;  %2882 = vmatpush1.msra.mxu1 %v5993_v6  ;;  %7104 = vst [vmem:[#allocation64_spill] sm:$0xff] %v6062_v25 }
 0xb4b   :  { %3513 = vadd.xlane.f32.xlu0 %v3503_v35  ;;  %2812 = vmatprep.subr.mxu0 %v5996_v2  ;;  %v6065_v35 = vld [vmem:[#allocation12 + $0x130] sm:$0xff] }
 0xb4c   :  { %2883 = vmatprep.subr.mxu1 %v5999_v44  ;;  %2813 = vmatpush1.msra.mxu0 %v6002_v60 }
 0xb4d   :  { %2884 = vmatpush1.msra.mxu1 %v6005_v43  ;;  %2814 = vmatprep.subr.mxu0 %v6008_v37 }
 0xb4e   :  { %2885 = vmatprep.subr.mxu1 %v6011_v1  ;;  %2815 = vmatpush1.msra.mxu0 %v6014_v31 }
 0xb4f   :  { %2886 = vmatpush1.msra.mxu1 %v6017_v38  ;;  %2816 = vmatprep.subr.mxu0 %v6020_v32 }
 0xb50   :  { %2887 = vmatprep.subr.mxu1 %v6023_v62  ;;  %2817 = vmatpush1.msra.mxu0 %v6026_v47 }
 0xb51   :  { %2888 = vmatpush1.msra.mxu1 %v6029_v63  ;;  %2818 = vmatprep.subr.mxu0 %v6032_v61 }
 0xb52   :  { %2889 = vmatprep.subr.mxu1 %v6035_v50  ;;  %2819 = vmatpush1.msra.mxu0 %v6038_v36 }
 0xb53   :  { %2890 = vmatpush1.msra.mxu1 %v6041_v59  ;;  %2820 = vmatprep.subr.mxu0 %v6044_v53 }
 0xb54   :  { %2891 = vmatprep.subr.mxu1 %v6047_v14  ;;  %2821 = vmatpush1.msra.mxu0 %v6050_v15  ;;  %v6068_v15 = vld [vmem:[#allocation12 + $0x108] sm:$0xff] }
 0xb55   :  { %2892 = vmatpush1.msra.mxu1 %v6053_v45  ;;  %2822 = vmatprep.subr.mxu0 %v6056_v41  ;;  %v6071_v45 = vld [vmem:[#allocation12 + $0x118] sm:$0xff]  ;;  %v6074_v41 = vld [vmem:[#allocation12 + $0x100] sm:$0xff] }
 0xb56   :  { %2893 = vmatprep.subr.mxu1 %v6059_v33  ;;  %2823 = vmatpush1.msra.mxu0 %v6062_v25  ;;  %v6077_v33 = vld [vmem:[#allocation12 + $0x110] sm:$0xff]  ;;  %v6080_v25 = vld [vmem:[#allocation12 + $0xe8] sm:$0xff] }
 0xb57   :  { %2894 = vmatpush1.msra.mxu1 %v6065_v35  ;;  %2824 = vmatprep.subr.mxu0 %v6068_v15 }
 0xb58   :  { %2895 = vmatprep.subr.mxu1 %v6071_v45  ;;  %2825 = vmatpush1.msra.mxu0 %v6074_v41 }
 0xb59   :  { %2896 = vmatpush1.msra.mxu1 %v6077_v33  ;;  %2826 = vmatprep.subr.mxu0 %v6080_v25 }
 0xb5a   :  { %2897 = vmatprep.subr.mxu1 %v5578_v17  ;;  %2827 = vmatpush1.msra.mxu0 %v5581_v18  ;;  %v6116_v17 = vld [vmem:[#allocation12 + $0x1e8] sm:$0xff]  ;;  %v6119_v18 = vld [vmem:[#allocation12 + $0x1f8] sm:$0xff] }
 0xb5b   :  { %2898 = vmatpush1.msra.mxu1 %v5584_v20  ;;  %2828 = vmatprep.subr.mxu0 %v5587_v21  ;;  %7105 = vst [vmem:[#allocation58_spill] sm:$0xff] %v6116_v17  ;;  %7106 = vst [vmem:[#allocation33_spill] sm:$0xff] %v6119_v18  ;;  %v7107_v20 = vld [vmem:[#allocation67_spill] sm:$0xff] }
 0xb5c   :  { %2899 = vmatprep.subr.mxu1 %v5590_v23  ;;  %2829 = vmatpush1.msra.mxu0 %v5593_v24  ;;  %v1921_v21 = vadd.f32 %v7107_v20, %v7095_v46  ;;  %v7108_v24 = vld [vmem:[#allocation68_spill] sm:$0xff] }
 0xb5d   :  { %2900 = vmatpush1.msra.mxu1 %v5596_v26  ;;  %2830 = vmatprep.subr.mxu0 %v5599_v30  ;;  %v1923_v26 = vadd.f32 %v7108_v24, %v5808_v42 }
 0xb5e   :  { %2901 = vmatprep.subr.mxu1 %v6983_v19  ;;  %2831 = vmatpush1.msra.mxu0 %v7070_v56 }
 0xb5f   :  { %2902 = vmatpush1.msra.mxu1 %v7071_v13  ;;  %2832 = vmatprep.subr.mxu0 %v7072_v55 }
 0xb60   :  { %2903 = vmatprep.subr.mxu1 %v7073_v22  ;;  %2833 = vmatpush1.msra.mxu0 %v7074_v3 }
 0xb61   :  { %2904 = vmatpush1.msra.mxu1 %v7075_v48  ;;  %2834 = vmatprep.subr.mxu0 %v7076_v51  ;;  %v7109_v48 = vld [vmem:[#allocation69_spill] sm:$0xff] }
 0xb62   :  { %2905 = vmatprep.subr.mxu1 %v7077_v0  ;;  %2835 = vmatpush1.msra.mxu0 %v7078_v57  ;;  %v2036_v51 = vadd.f32 %v7109_v48, %v7067_v54  ;;  %v7110_v57 = vld [vmem:[#allocation32_spill] sm:$0xff] }
 0xb63   :  { %2906 = vmatpush1.msra.mxu1 %v7079_v58  ;;  %2836 = vmatprep.subr.mxu0 %v7080_v12  ;;  %v2034_v58 = vadd.f32 %v7110_v57, %v5823_v40  ;;  %v6172_v48 = vld [vmem:[#allocation12 + $0xf0] sm:$0xff]  ;;  %v6181_v57 = vld [vmem:[#allocation12 + $0xc0] sm:$0xff] }
 0xb64   :  { %2907 = vmatprep.subr.mxu1 %v7081_v5  ;;  %2837 = vmatpush1.msra.mxu0 %v7082_v34 }
 0xb65   :  { %2908 = vmatpush1.msra.mxu1 %v7083_v39  ;;  %2838 = vmatprep.subr.mxu0 %v7084_v27 }
 0xb66   :  { %2909 = vmatprep.subr.mxu1 %v7085_v11  ;;  %2839 = vmatpush1.msra.mxu0 %v7086_v7 }
 0xb67   :  { %2910 = vmatpush1.msra.mxu1 %v7087_v28  ;;  %2840 = vmatprep.subr.mxu0 %v7088_v8 }
 0xb68   :  { %2911 = vmatprep.subr.mxu1 %v7089_v10  ;;  %2841 = vmatpush1.msra.mxu0 %v7090_v4 }
 0xb69   :  { %2874 = vmatprep.mubr.f32.mxu0 %v7091_v29  ;;  %2912 = vmatpush1.msra.mxu1 %v7092_v9 }
 0xb6a   :  { %2945 = vmatprep.mubr.f32.mxu1 %v7091_v29  ;;  %2980 = vmatprep.subr.mxu0 %v6116_v17 }
 0xb6b   :  { %3051 = vmatprep.subr.mxu1 %v6119_v18 }
 0xc09   :  { %v2706_v23 = vpop.f32.mrf.mxu0  ;;  %v2777_v55 = vpop.f32.mrf.mxu1 }
 0xc0a   :  { %v2782_v30 = vadd.f32 %v2706_v23, %v1921_v21  ;;  %v2784_v12 = vadd.f32 %v2777_v55, %v2034_v58  ;;  %v7115_v55 = vld [vmem:[#allocation64_spill] sm:$0xff] }
 0xc0b   :  { %v2708_v19 = vpop.f32.mrf.mxu0  ;;  %v2779_v3 = vpop.f32.mrf.mxu1  ;;  %v6184_v58 = vld [vmem:[#allocation12 + $0xd0] sm:$0xff] }
 0xc0c   :  { %v3686_v56 = vmul.f32 -1.442695, %v2782_v30  ;;  %v2783_v13 = vadd.f32 %v2708_v19, %v1923_v26  ;;  %v2785_v0 = vadd.f32 %v2779_v3, %v2036_v51  ;;  %v7112_v19 = vld [vmem:[#allocation57_spill] sm:$0xff]  ;;  %v6175_v51 = vld [vmem:[#allocation12 + $0xc8] sm:$0xff] }
 0xc0d   :  { %v6169_v3 = vld [vmem:[#allocation12 + $0xe0] sm:$0xff] }
 0xc0e   :  { %3899 = vpow2.f32 %v3686_v56  ;;  %v3687_v22 = vmul.f32 -1.442695, %v2783_v13  ;;  %v3688_v5 = vmul.f32 -1.442695, %v2785_v0  ;;  %v7113_v56 = vld [vmem:[#allocation60_spill] sm:$0xff]  ;;  %v7114_v13 = vld [vmem:[#allocation61_spill] sm:$0xff] }
 0xc0f   :  { %v6178_v0 = vld [vmem:[#allocation12 + $0xd8] sm:$0xff] }
 0xc10   :  { %3901 = vpow2.f32 %v3687_v22  ;;  %v6166_v22 = vld [vmem:[#allocation12 + $0xf8] sm:$0xff] }
 0xc11   :  { %3903 = vtanh.f32 %v2784_v12  ;;  %v6187_v12 = vld [vmem:[#allocation12 + $0xa8] sm:$0xff] }
 0xc12   :  { %3905 = vpow2.f32 %v3688_v5  ;;  %v6190_v5 = vld [vmem:[#allocation12 + $0xb8] sm:$0xff] }
 0xc1b   :  { %v3900_v34 = vpop.eup %3899 }
 0xc1c   :  { %v2789_v39 = vadd.f32 1.0, %v3900_v34  ;;  %v6193_v34 = vld [vmem:[#allocation12 + $0xa0] sm:$0xff] }
 0xc1d   :  { %v3902_v27 = vpop.eup %3901  ;;  %7116 = vst [vmem:[#allocation34_spill] sm:$0xff] %v6193_v34 }
 0xc1e   :  { %3907 = vrcp.f32 %v2789_v39  ;;  %v2795_v11 = vadd.f32 1.0, %v3902_v27  ;;  %v3904_v7 = vpop.eup %3903  ;;  %v6196_v39 = vld [vmem:[#allocation12 + $0xb0] sm:$0xff]  ;;  %v6199_v27 = vld [vmem:[#allocation12 + $0x88] sm:$0xff] }
 0xc1f   :  { %v3906_v28 = vpop.eup %3905  ;;  %7117 = vst [vmem:[#allocation35_spill] sm:$0xff] %v6196_v39  ;;  %7118 = vst [vmem:[#allocation36_spill] sm:$0xff] %v6199_v27 }
 0xc20   :  { %3909 = vrcp.f32 %v2795_v11  ;;  %v2802_v9 = vadd.f32 1.0, %v3906_v28  ;;  %v6202_v11 = vld [vmem:[#allocation12 + $0x98] sm:$0xff]  ;;  %v6208_v28 = vld [vmem:[#allocation12 + $0x90] sm:$0xff] }
 0xc21   :  { %7119 = vst [vmem:[#allocation37_spill] sm:$0xff] %v6202_v11  ;;  %7121 = vst [vmem:[#allocation40_spill] sm:$0xff] %v6208_v28 }
 0xc22   :  { %3911 = vrcp.f32 %v2802_v9  ;;  %v6220_v9 = vld [vmem:[#allocation12 + $0x70] sm:$0xff] }
 0xc23   :  { %7125 = vst [vmem:[#allocation44_spill] sm:$0xff] %v6220_v9 }
 0xc2b   :  { %v3908_v8 = vpop.eup %3907 }
 0xc2c   :  { %v2806_v10 = vmul.f32 %v3908_v8, %v3904_v7  ;;  %v6205_v7 = vld [vmem:[#allocation12 + $0x80] sm:$0xff]  ;;  %v6211_v8 = vld [vmem:[#allocation12 + $0x68] sm:$0xff] }
 0xc2d   :  { %v3910_v4 = vpop.eup %3909  ;;  %7120 = vst [vmem:[#allocation38_spill] sm:$0xff] %v6205_v7  ;;  %7122 = vst [vmem:[#allocation41_spill] sm:$0xff] %v6211_v8 }
 0xc2e   :  { %v2805_v20 = vmul.f32 %v3910_v4, %v5986_v16  ;;  %v7111_v16 = vld [vmem:[#allocation63_spill] sm:$0xff]  ;;  %v6217_v4 = vld [vmem:[#allocation12 + $0x60] sm:$0xff] }
 0xc2f   :  { %v3912_v23 = vpop.eup %3911  ;;  %7124 = vst [vmem:[#allocation43_spill] sm:$0xff] %v6217_v4 }
 0xc30   :  { %v6131_v21 = vadd.f32 %v2806_v10, %v2805_v20  ;;  %v6214_v10 = vld [vmem:[#allocation12 + $0x78] sm:$0xff]  ;;  %v6223_v20 = vld [vmem:[#allocation12 + $0x48] sm:$0xff] }
 0xc31   :  { %7123 = vst [vmem:[#allocation42_spill] sm:$0xff] %v6214_v10  ;;  %7126 = vst [vmem:[#allocation45_spill] sm:$0xff] %v6223_v20 }
 0xc32   :  { %3913 = vtanh.f32 %v6131_v21 }
 0xc3f   :  { %v3914_v24 = vpop.eup %3913 }
 0xc40   :  { %v2809_v26 = vmul.f32 %v3914_v24, %v3912_v23  ;;  %v6226_v23 = vld [vmem:[#allocation12 + $0x58] sm:$0xff]  ;;  %v6229_v24 = vld [vmem:[#allocation12 + $0x40] sm:$0xff] }
 0xc41   :  { %7127 = vst [vmem:[#allocation46_spill] sm:$0xff] %v6226_v23  ;;  %7128 = vst [vmem:[#allocation47_spill] sm:$0xff] %v6229_v24 }
 0xc42   :  { %2875 = vmatmul.mubr.f32.vlgmr.msra.gmra.mxu0 %v2809_v26  ;;  %2946 = vmatmul.mubr.f32.vlgmr.msra.gmra.mxu1 %v2809_v26  ;;  %v3504_v30 = vmul.f32 %v5829_v52, %v2809_v26  ;;  %v6232_v26 = vld [vmem:[#allocation12 + $0x50] sm:$0xff] }
 0xc43   :  { %2981 = vmatpush1.msra.mxu0 %v5990_v49  ;;  %3052 = vmatpush1.msra.mxu1 %v5993_v6  ;;  %7129 = vst [vmem:[#allocation49_spill] sm:$0xff] %v6232_v26 }
 0xc44   :  { %3515 = vadd.xlane.f32.xlu0 %v3504_v30  ;;  %2982 = vmatprep.subr.mxu0 %v5996_v2  ;;  %v6235_v30 = vld [vmem:[#allocation12 + $0x28] sm:$0xff] }
 0xc45   :  { %3053 = vmatprep.subr.mxu1 %v5999_v44  ;;  %2983 = vmatpush1.msra.mxu0 %v6002_v60  ;;  %7130 = vst [vmem:[#allocation50_spill] sm:$0xff] %v6235_v30 }
 0xc46   :  { %3054 = vmatpush1.msra.mxu1 %v6005_v43  ;;  %2984 = vmatprep.subr.mxu0 %v6008_v37 }
 0xc47   :  { %3055 = vmatprep.subr.mxu1 %v6011_v1  ;;  %2985 = vmatpush1.msra.mxu0 %v6014_v31 }
 0xc48   :  { %3056 = vmatpush1.msra.mxu1 %v6017_v38  ;;  %2986 = vmatprep.subr.mxu0 %v6020_v32 }
 0xc49   :  { %3057 = vmatprep.subr.mxu1 %v6023_v62  ;;  %2987 = vmatpush1.msra.mxu0 %v6026_v47 }
 0xc4a   :  { %3058 = vmatpush1.msra.mxu1 %v6029_v63  ;;  %2988 = vmatprep.subr.mxu0 %v6032_v61 }
 0xc4b   :  { %3059 = vmatprep.subr.mxu1 %v6035_v50  ;;  %2989 = vmatpush1.msra.mxu0 %v6038_v36 }
 0xc4c   :  { %3060 = vmatpush1.msra.mxu1 %v6041_v59  ;;  %2990 = vmatprep.subr.mxu0 %v6044_v53 }
 0xc4d   :  { %3061 = vmatprep.subr.mxu1 %v6047_v14  ;;  %2991 = vmatpush1.msra.mxu0 %v7111_v16 }
 0xc4e   :  { %3062 = vmatpush1.msra.mxu1 %v7112_v19  ;;  %2992 = vmatprep.subr.mxu0 %v7113_v56 }
 0xc4f   :  { %3063 = vmatprep.subr.mxu1 %v7114_v13  ;;  %2993 = vmatpush1.msra.mxu0 %v7115_v55 }
 0xc50   :  { %3064 = vmatpush1.msra.mxu1 %v6065_v35  ;;  %2994 = vmatprep.subr.mxu0 %v6068_v15 }
 0xc51   :  { %3065 = vmatprep.subr.mxu1 %v6071_v45  ;;  %2995 = vmatpush1.msra.mxu0 %v6074_v41 }
 0xc52   :  { %3066 = vmatpush1.msra.mxu1 %v6077_v33  ;;  %2996 = vmatprep.subr.mxu0 %v6080_v25 }
 0xc53   :  { %3067 = vmatprep.subr.mxu1 %v6166_v22  ;;  %2997 = vmatpush1.msra.mxu0 %v6169_v3 }
 0xc54   :  { %3068 = vmatpush1.msra.mxu1 %v6172_v48  ;;  %2998 = vmatprep.subr.mxu0 %v6175_v51 }
 0xc55   :  { %3069 = vmatprep.subr.mxu1 %v6178_v0  ;;  %2999 = vmatpush1.msra.mxu0 %v6181_v57 }
 0xc56   :  { %3070 = vmatpush1.msra.mxu1 %v6184_v58  ;;  %3000 = vmatprep.subr.mxu0 %v6187_v12 }
 0xc57   :  { %3071 = vmatprep.subr.mxu1 %v6190_v5  ;;  %3001 = vmatpush1.msra.mxu0 %v6193_v34 }
 0xc58   :  { %3072 = vmatpush1.msra.mxu1 %v6196_v39  ;;  %3002 = vmatprep.subr.mxu0 %v6199_v27  ;;  %v7141_v27 = vld [vmem:[#allocation71_spill] sm:$0xff] }
 0xc59   :  { %3073 = vmatprep.subr.mxu1 %v6202_v11  ;;  %3003 = vmatpush1.msra.mxu0 %v6205_v7 }
 0xc5a   :  { %3074 = vmatpush1.msra.mxu1 %v6208_v28  ;;  %3004 = vmatprep.subr.mxu0 %v6211_v8 }
 0xc5b   :  { %3075 = vmatprep.subr.mxu1 %v6214_v10  ;;  %3005 = vmatpush1.msra.mxu0 %v6217_v4 }
 0xc5c   :  { %3076 = vmatpush1.msra.mxu1 %v6220_v9  ;;  %3006 = vmatprep.subr.mxu0 %v6223_v20  ;;  %v6238_v9 = vld [vmem:[#allocation12 + $0x38] sm:$0xff]  ;;  %v6241_v20 = vld [vmem:[#allocation12 + $0x20] sm:$0xff] }
 0xc5d   :  { %3077 = vmatprep.subr.mxu1 %v6226_v23  ;;  %3007 = vmatpush1.msra.mxu0 %v6229_v24  ;;  %7131 = vst [vmem:[#allocation52_spill] sm:$0xff] %v6238_v9  ;;  %7132 = vst [vmem:[#allocation53_spill] sm:$0xff] %v6241_v20  ;;  %v6244_v23 = vld [vmem:[#allocation12 + $0x30] sm:$0xff]  ;;  %v6247_v24 = vld [vmem:[#allocation12 + $0x8] sm:$0xff] }
 0xc5e   :  { %3078 = vmatpush1.msra.mxu1 %v6232_v26  ;;  %3008 = vmatprep.subr.mxu0 %v6235_v30  ;;  %7133 = vst [vmem:[#allocation54_spill] sm:$0xff] %v6244_v23  ;;  %7134 = vst [vmem:[#allocation51_spill] sm:$0xff] %v6247_v24  ;;  %v6250_v26 = vld [vmem:[#allocation12 + $0x18] sm:$0xff]  ;;  %v6253_v30 = vld [vmem:[#allocation12] sm:$0xff] }
 0xc5f   :  { %3079 = vmatprep.subr.mxu1 %v6238_v9  ;;  %3009 = vmatpush1.msra.mxu0 %v6241_v20  ;;  %7135 = vst [vmem:[#allocation55_spill] sm:$0xff] %v6250_v26  ;;  %7136 = vst [vmem:[#allocation66_spill] sm:$0xff] %v6253_v30  ;;  %v6257_v9 = vld [vmem:[#allocation12 + $0x10] sm:$0xff] }
 0xc60   :  { %3080 = vmatpush1.msra.mxu1 %v6244_v23  ;;  %3010 = vmatprep.subr.mxu0 %v6247_v24  ;;  %7137 = vst [vmem:[#allocation29_spill] sm:$0xff] %v6257_v9  ;;  %v7138_v24 = vld [vmem:[#allocation70_spill] sm:$0xff]  ;;  %v7139_v20 = vld [vmem:[#allocation72_spill] sm:$0xff] }
 0xc61   :  { %3081 = vmatprep.subr.mxu1 %v6250_v26  ;;  %3011 = vmatpush1.msra.mxu0 %v6253_v30  ;;  %v1927_v23 = vadd.f32 %v7138_v24, %v7095_v46  ;;  %v1929_v4 = vadd.f32 %v7139_v20, %v5808_v42  ;;  %v2040_v24 = vadd.f32 %v7141_v27, %v5823_v40  ;;  %v7144_v27 = vld [vmem:[#allocation36_spill] sm:$0xff] }
 0xc62   :  { %3044 = vmatprep.mubr.f32.mxu0 %v7091_v29  ;;  %3082 = vmatpush1.msra.mxu1 %v6257_v9 }
 0xc63   :  { %3115 = vmatprep.mubr.f32.mxu1 %v7091_v29  ;;  %3150 = vmatprep.subr.mxu0 %v6116_v17  ;;  %v7140_v17 = vld [vmem:[#allocation73_spill] sm:$0xff] }
 0xc64   :  { %3221 = vmatprep.subr.mxu1 %v6119_v18  ;;  %v2042_v11 = vadd.f32 %v7140_v17, %v7067_v54 }
 0xd02   :  { %v2876_v26 = vpop.f32.mrf.mxu0  ;;  %v2947_v7 = vpop.f32.mrf.mxu1 }
 0xd03   :  { %v2952_v30 = vadd.f32 %v2876_v26, %v1927_v23  ;;  %v2954_v46 = vadd.f32 %v2947_v7, %v2040_v24  ;;  %v7145_v7 = vld [vmem:[#allocation37_spill] sm:$0xff]  ;;  %v7147_v24 = vld [vmem:[#allocation40_spill] sm:$0xff] }
 0xd04   :  { %v2878_v10 = vpop.f32.mrf.mxu0  ;;  %v2949_v29 = vpop.f32.mrf.mxu1 }
 0xd05   :  { %v3689_v8 = vmul.f32 -1.442695, %v2952_v30  ;;  %v2953_v28 = vadd.f32 %v2878_v10, %v1929_v4  ;;  %v2955_v18 = vadd.f32 %v2949_v29, %v2042_v11  ;;  %v7146_v30 = vld [vmem:[#allocation38_spill] sm:$0xff] }
 0xd07   :  { %3915 = vpow2.f32 %v3689_v8  ;;  %v3690_v9 = vmul.f32 -1.442695, %v2953_v28  ;;  %v3691_v39 = vmul.f32 -1.442695, %v2955_v18 }
 0xd09   :  { %3917 = vpow2.f32 %v3690_v9 }
 0xd0a   :  { %3919 = vtanh.f32 %v2954_v46 }
 0xd0b   :  { %3921 = vpow2.f32 %v3691_v39 }
 0xd14   :  { %v3916_v34 = vpop.eup %3915 }
 0xd15   :  { %v2959_v20 = vadd.f32 1.0, %v3916_v34 }
 0xd16   :  { %v3918_v23 = vpop.eup %3917 }
 0xd17   :  { %3923 = vrcp.f32 %v2959_v20  ;;  %v2965_v8 = vadd.f32 1.0, %v3918_v23  ;;  %v3920_v28 = vpop.eup %3919  ;;  %v7148_v20 = vld [vmem:[#allocation41_spill] sm:$0xff]  ;;  %v7149_v23 = vld [vmem:[#allocation42_spill] sm:$0xff] }
 0xd18   :  { %v3922_v10 = vpop.eup %3921 }
 0xd19   :  { %3925 = vrcp.f32 %v2965_v8  ;;  %v2972_v17 = vadd.f32 1.0, %v3922_v10  ;;  %v7150_v8 = vld [vmem:[#allocation43_spill] sm:$0xff]  ;;  %v7152_v10 = vld [vmem:[#allocation45_spill] sm:$0xff] }
 0xd1b   :  { %3927 = vrcp.f32 %v2972_v17  ;;  %v7156_v17 = vld [vmem:[#allocation50_spill] sm:$0xff] }
 0xd24   :  { %v3924_v4 = vpop.eup %3923 }
 0xd25   :  { %v2976_v9 = vmul.f32 %v3924_v4, %v3920_v28  ;;  %v7151_v28 = vld [vmem:[#allocation44_spill] sm:$0xff]  ;;  %v7153_v4 = vld [vmem:[#allocation46_spill] sm:$0xff] }
 0xd26   :  { %v3926_v26 = vpop.eup %3925 }
 0xd27   :  { %v2975_v29 = vmul.f32 %v3926_v26, %v6131_v21  ;;  %v7143_v21 = vld [vmem:[#allocation35_spill] sm:$0xff]  ;;  %v7155_v26 = vld [vmem:[#allocation49_spill] sm:$0xff] }
 0xd28   :  { %v3928_v18 = vpop.eup %3927 }
 0xd29   :  { %v6272_v11 = vadd.f32 %v2976_v9, %v2975_v29  ;;  %v7154_v9 = vld [vmem:[#allocation47_spill] sm:$0xff]  ;;  %v7157_v29 = vld [vmem:[#allocation52_spill] sm:$0xff] }
 0xd2b   :  { %3929 = vtanh.f32 %v6272_v11 }
 0xd38   :  { %v3930_v46 = vpop.eup %3929 }
 0xd39   :  { %v2979_v34 = vmul.f32 %v3930_v46, %v3928_v18  ;;  %v7158_v18 = vld [vmem:[#allocation53_spill] sm:$0xff]  ;;  %v7159_v46 = vld [vmem:[#allocation54_spill] sm:$0xff] }
 0xd3b   :  { %3045 = vmatmul.mubr.f32.vlgmr.msra.gmra.mxu0 %v2979_v34  ;;  %3116 = vmatmul.mubr.f32.vlgmr.msra.gmra.mxu1 %v2979_v34  ;;  %v3505_v39 = vmul.f32 %v5829_v52, %v2979_v34  ;;  %v7142_v52 = vld [vmem:[#allocation34_spill] sm:$0xff]  ;;  %v7160_v34 = vld [vmem:[#allocation51_spill] sm:$0xff] }
 0xd3c   :  { %3151 = vmatpush1.msra.mxu0 %v5990_v49  ;;  %3222 = vmatpush1.msra.mxu1 %v5993_v6 }
 0xd3d   :  { %3517 = vadd.xlane.f32.xlu1 %v3505_v39  ;;  %3152 = vmatprep.subr.mxu0 %v5996_v2  ;;  %v7161_v39 = vld [vmem:[#allocation55_spill] sm:$0xff] }
 0xd3e   :  { %3223 = vmatprep.subr.mxu1 %v5999_v44  ;;  %3153 = vmatpush1.msra.mxu0 %v6002_v60 }
 0xd3f   :  { %3224 = vmatpush1.msra.mxu1 %v6005_v43  ;;  %3154 = vmatprep.subr.mxu0 %v6008_v37 }
 0xd40   :  { %3225 = vmatprep.subr.mxu1 %v6011_v1  ;;  %3155 = vmatpush1.msra.mxu0 %v6014_v31 }
 0xd41   :  { %3226 = vmatpush1.msra.mxu1 %v6017_v38  ;;  %3156 = vmatprep.subr.mxu0 %v6020_v32 }
 0xd42   :  { %3227 = vmatprep.subr.mxu1 %v6023_v62  ;;  %3157 = vmatpush1.msra.mxu0 %v6026_v47 }
 0xd43   :  { %3228 = vmatpush1.msra.mxu1 %v6029_v63  ;;  %3158 = vmatprep.subr.mxu0 %v6032_v61 }
 0xd44   :  { %3229 = vmatprep.subr.mxu1 %v6035_v50  ;;  %3159 = vmatpush1.msra.mxu0 %v6038_v36 }
 0xd45   :  { %3230 = vmatpush1.msra.mxu1 %v6041_v59  ;;  %3160 = vmatprep.subr.mxu0 %v6044_v53 }
 0xd46   :  { %3231 = vmatprep.subr.mxu1 %v6047_v14  ;;  %3161 = vmatpush1.msra.mxu0 %v7111_v16 }
 0xd47   :  { %3232 = vmatpush1.msra.mxu1 %v7112_v19  ;;  %3162 = vmatprep.subr.mxu0 %v7113_v56 }
 0xd48   :  { %3233 = vmatprep.subr.mxu1 %v7114_v13  ;;  %3163 = vmatpush1.msra.mxu0 %v7115_v55 }
 0xd49   :  { %3234 = vmatpush1.msra.mxu1 %v6065_v35  ;;  %3164 = vmatprep.subr.mxu0 %v6068_v15 }
 0xd4a   :  { %3235 = vmatprep.subr.mxu1 %v6071_v45  ;;  %3165 = vmatpush1.msra.mxu0 %v6074_v41 }
 0xd4b   :  { %3236 = vmatpush1.msra.mxu1 %v6077_v33  ;;  %3166 = vmatprep.subr.mxu0 %v6080_v25 }
 0xd4c   :  { %3237 = vmatprep.subr.mxu1 %v6166_v22  ;;  %3167 = vmatpush1.msra.mxu0 %v6169_v3 }
 0xd4d   :  { %3238 = vmatpush1.msra.mxu1 %v6172_v48  ;;  %3168 = vmatprep.subr.mxu0 %v6175_v51 }
 0xd4e   :  { %3239 = vmatprep.subr.mxu1 %v6178_v0  ;;  %3169 = vmatpush1.msra.mxu0 %v6181_v57 }
 0xd4f   :  { %3240 = vmatpush1.msra.mxu1 %v6184_v58  ;;  %3170 = vmatprep.subr.mxu0 %v6187_v12 }
 0xd50   :  { %3241 = vmatprep.subr.mxu1 %v6190_v5  ;;  %3171 = vmatpush1.msra.mxu0 %v7142_v52 }
 0xd51   :  { %3242 = vmatpush1.msra.mxu1 %v7143_v21  ;;  %3172 = vmatprep.subr.mxu0 %v7144_v27 }
 0xd52   :  { %3243 = vmatprep.subr.mxu1 %v7145_v7  ;;  %3173 = vmatpush1.msra.mxu0 %v7146_v30  ;;  %v7171_v7 = vld [vmem:[#allocation75_spill] sm:$0xff] }
 0xd53   :  { %3244 = vmatpush1.msra.mxu1 %v7147_v24  ;;  %3174 = vmatprep.subr.mxu0 %v7148_v20 }
 0xd54   :  { %3245 = vmatprep.subr.mxu1 %v7149_v23  ;;  %3175 = vmatpush1.msra.mxu0 %v7150_v8 }
 0xd55   :  { %3246 = vmatpush1.msra.mxu1 %v7151_v28  ;;  %3176 = vmatprep.subr.mxu0 %v7152_v10  ;;  %v7162_v28 = vld [vmem:[#allocation66_spill] sm:$0xff]  ;;  %v7163_v10 = vmov 0.0  }
 0xd56   :  { %3247 = vmatprep.subr.mxu1 %v7153_v4  ;;  %3177 = vmatpush1.msra.mxu0 %v7154_v9  ;;  %v7164_v4 = vld [vmem:[#allocation29_spill] sm:$0xff] }
 0xd57   :  { %3248 = vmatpush1.msra.mxu1 %v7155_v26  ;;  %3178 = vmatprep.subr.mxu0 %v7156_v17  ;;  %v7165_v26 = vld [vmem:[#allocation58_spill] sm:$0xff]  ;;  %v7166_v17 = vld [vmem:[#allocation33_spill] sm:$0xff] }
 0xd58   :  { %3249 = vmatprep.subr.mxu1 %v7157_v29  ;;  %3179 = vmatpush1.msra.mxu0 %v7158_v18  ;;  %v7167_v29 = vld [vmem:[#allocation48_spill] sm:$0xff]  ;;  %v7168_v18 = vld [vmem:[#allocation74_spill] sm:$0xff] }
 0xd59   :  { %3250 = vmatpush1.msra.mxu1 %v7159_v46  ;;  %3180 = vmatprep.subr.mxu0 %v7160_v34  ;;  %v1933_v9 = vadd.f32 %v7168_v18, %v7167_v29  ;;  %v7169_v34 = vld [vmem:[#allocation76_spill] sm:$0xff]  ;;  %v2046_v18 = vadd.f32 %v7171_v7, %v5823_v40 }
 0xd5a   :  { %3251 = vmatprep.subr.mxu1 %v7161_v39  ;;  %3181 = vmatpush1.msra.mxu0 %v7162_v28  ;;  %v1935_v8 = vadd.f32 %v7169_v34, %v5808_v42 }
 0xd5b   :  { %3214 = vmatprep.mubr.f32.mxu0 %v7163_v10  ;;  %3252 = vmatpush1.msra.mxu1 %v7164_v4 }
 0xd5c   :  { %3285 = vmatprep.mubr.f32.mxu1 %v7163_v10  ;;  %3320 = vmatprep.subr.mxu0 %v7165_v26  ;;  %v7170_v26 = vld [vmem:[#allocation77_spill] sm:$0xff] }
 0xd5d   :  { %3391 = vmatprep.subr.mxu1 %v7166_v17  ;;  %v2048_v30 = vadd.f32 %v7170_v26, %v7067_v54 }
 0xdfb   :  { %v3046_v46 = vpop.f32.mrf.mxu0  ;;  %v3117_v24 = vpop.f32.mrf.mxu1 }
 0xdfc   :  { %v3122_v39 = vadd.f32 %v3046_v46, %v1933_v9  ;;  %v3124_v29 = vadd.f32 %v3117_v24, %v2046_v18 }
 0xdfd   :  { %v3048_v23 = vpop.f32.mrf.mxu0  ;;  %v3119_v10 = vpop.f32.mrf.mxu1 }
 0xdfe   :  { %v3692_v28 = vmul.f32 -1.442695, %v3122_v39  ;;  %v3123_v20 = vadd.f32 %v3048_v23, %v1935_v8  ;;  %v3125_v17 = vadd.f32 %v3119_v10, %v2048_v30 }
 0xe00   :  { %3931 = vpow2.f32 %v3692_v28  ;;  %v3693_v4 = vmul.f32 -1.442695, %v3123_v20  ;;  %v3694_v27 = vmul.f32 -1.442695, %v3125_v17 }
 0xe02   :  { %3933 = vpow2.f32 %v3693_v4 }
 0xe03   :  { %3935 = vtanh.f32 %v3124_v29 }
 0xe04   :  { %3937 = vpow2.f32 %v3694_v27  ;;  %v6354_v27 = vld [vmem:[#allocation15] ss:$0 sm:$0xff] }
 0xe0d   :  { %v3932_v21 = vpop.eup %3931 }
 0xe0e   :  { %v3129_v34 = vadd.f32 1.0, %v3932_v21 }
 0xe0f   :  { %v3934_v9 = vpop.eup %3933 }
 0xe10   :  { %3939 = vrcp.f32 %v3129_v34  ;;  %v3135_v23 = vadd.f32 1.0, %v3934_v9  ;;  %v3936_v20 = vpop.eup %3935 }
 0xe11   :  { %v3938_v8 = vpop.eup %3937 }
 0xe12   :  { %3941 = vrcp.f32 %v3135_v23  ;;  %v3142_v39 = vadd.f32 1.0, %v3938_v8 }
 0xe14   :  { %3943 = vrcp.f32 %v3142_v39 }
 0xe1d   :  { %v3940_v28 = vpop.eup %3939 }
 0xe1e   :  { %v3146_v4 = vmul.f32 %v3940_v28, %v3936_v20 }
 0xe1f   :  { %v3942_v46 = vpop.eup %3941 }
 0xe20   :  { %v3145_v30 = vmul.f32 %v3942_v46, %v6272_v11 }
 0xe21   :  { %v3944_v21 = vpop.eup %3943 }
 0xe22   :  { %v6351_v10 = vadd.f32 %v3146_v4, %v3145_v30 }
 0xe24   :  { %3945 = vtanh.f32 %v6351_v10 }
 0xe31   :  { %v3946_v7 = vpop.eup %3945 }
 0xe32   :  { %v3149_v24 = vmul.f32 %v3946_v7, %v3944_v21 }
 0xe34   :  { %3215 = vmatmul.mubr.f32.vlgmr.msra.gmra.mxu0 %v3149_v24  ;;  %3286 = vmatmul.mubr.f32.vlgmr.msra.gmra.mxu1 %v3149_v24  ;;  %v3506_v29 = vmul.f32 %v6354_v27, %v3149_v24 }
 0xe35   :  { %3321 = vmatpush1.msra.mxu0 %v5990_v49  ;;  %3392 = vmatpush1.msra.mxu1 %v5993_v6  ;;  %v7172_v49 = vld [vmem:[#allocation35_spill] sm:$0xff]  ;;  %v7173_v6 = vld [vmem:[#allocation36_spill] sm:$0xff] }
 0xe36   :  { %3519 = vadd.xlane.f32.xlu0 %v3506_v29  ;;  %3322 = vmatprep.subr.mxu0 %v5996_v2  ;;  %v7174_v2 = vld [vmem:[#allocation37_spill] sm:$0xff] }
 0xe37   :  { %3393 = vmatprep.subr.mxu1 %v5999_v44  ;;  %3323 = vmatpush1.msra.mxu0 %v6002_v60  ;;  %v7175_v44 = vld [vmem:[#allocation38_spill] sm:$0xff]  ;;  %v7176_v60 = vld [vmem:[#allocation40_spill] sm:$0xff] }
 0xe38   :  { %3394 = vmatpush1.msra.mxu1 %v6005_v43  ;;  %3324 = vmatprep.subr.mxu0 %v6008_v37  ;;  %v7177_v43 = vld [vmem:[#allocation41_spill] sm:$0xff]  ;;  %v7178_v37 = vld [vmem:[#allocation42_spill] sm:$0xff] }
 0xe39   :  { %3395 = vmatprep.subr.mxu1 %v6011_v1  ;;  %3325 = vmatpush1.msra.mxu0 %v6014_v31  ;;  %v7179_v1 = vld [vmem:[#allocation43_spill] sm:$0xff]  ;;  %v7180_v31 = vld [vmem:[#allocation44_spill] sm:$0xff] }
 0xe3a   :  { %3396 = vmatpush1.msra.mxu1 %v6017_v38  ;;  %3326 = vmatprep.subr.mxu0 %v6020_v32  ;;  %v7181_v38 = vld [vmem:[#allocation45_spill] sm:$0xff]  ;;  %v7182_v32 = vld [vmem:[#allocation46_spill] sm:$0xff] }
 0xe3b   :  { %3397 = vmatprep.subr.mxu1 %v6023_v62  ;;  %3327 = vmatpush1.msra.mxu0 %v6026_v47  ;;  %v7183_v62 = vld [vmem:[#allocation47_spill] sm:$0xff]  ;;  %v7184_v47 = vld [vmem:[#allocation49_spill] sm:$0xff] }
 0xe3c   :  { %3398 = vmatpush1.msra.mxu1 %v6029_v63  ;;  %3328 = vmatprep.subr.mxu0 %v6032_v61  ;;  %v7185_v63 = vld [vmem:[#allocation50_spill] sm:$0xff]  ;;  %v7186_v61 = vld [vmem:[#allocation52_spill] sm:$0xff] }
 0xe3d   :  { %3399 = vmatprep.subr.mxu1 %v6035_v50  ;;  %3329 = vmatpush1.msra.mxu0 %v6038_v36  ;;  %v7187_v50 = vld [vmem:[#allocation53_spill] sm:$0xff]  ;;  %v7188_v36 = vld [vmem:[#allocation54_spill] sm:$0xff] }
 0xe3e   :  { %3400 = vmatpush1.msra.mxu1 %v6041_v59  ;;  %3330 = vmatprep.subr.mxu0 %v6044_v53  ;;  %v7189_v59 = vld [vmem:[#allocation51_spill] sm:$0xff] }
 0xe3f   :  { %3401 = vmatprep.subr.mxu1 %v6047_v14  ;;  %3331 = vmatpush1.msra.mxu0 %v7111_v16  ;;  %v7190_v53 = vld [vmem:[#allocation55_spill] sm:$0xff]  ;;  %v7191_v14 = vld [vmem:[#allocation66_spill] sm:$0xff] }
 0xe40   :  { %3402 = vmatpush1.msra.mxu1 %v7112_v19  ;;  %3332 = vmatprep.subr.mxu0 %v7113_v56  ;;  %v7196_v19 = vld [vmem:[#allocation80_spill] sm:$0xff] }
 0xe41   :  { %3403 = vmatprep.subr.mxu1 %v7114_v13  ;;  %3333 = vmatpush1.msra.mxu0 %v7115_v55  ;;  %v1941_v56 = vadd.f32 %v7196_v19, %v5808_v42 }
 0xe42   :  { %3404 = vmatpush1.msra.mxu1 %v6065_v35  ;;  %3334 = vmatprep.subr.mxu0 %v6068_v15  ;;  %v7192_v15 = vmov 0.0  }
 0xe43   :  { %3405 = vmatprep.subr.mxu1 %v6071_v45  ;;  %3335 = vmatpush1.msra.mxu0 %v6074_v41  ;;  %v7193_v45 = vld [vmem:[#allocation29_spill] sm:$0xff]  ;;  %v4377_v41 = vmov 0  }
 0xe44   :  { %3406 = vmatpush1.msra.mxu1 %v6077_v33  ;;  %3336 = vmatprep.subr.mxu0 %v6080_v25  ;;  %v7194_v33 = vld [vmem:[#allocation48_spill] sm:$0xff]  ;;  %v7195_v25 = vld [vmem:[#allocation78_spill] sm:$0xff] }
 0xe45   :  { %3407 = vmatprep.subr.mxu1 %v6166_v22  ;;  %3337 = vmatpush1.msra.mxu0 %v6169_v3  ;;  %v1939_v35 = vadd.f32 %v7195_v25, %v7194_v33 }
 0xe46   :  { %3408 = vmatpush1.msra.mxu1 %v6172_v48  ;;  %3338 = vmatprep.subr.mxu0 %v6175_v51 }
 0xe47   :  { %3409 = vmatprep.subr.mxu1 %v6178_v0  ;;  %3339 = vmatpush1.msra.mxu0 %v6181_v57  ;;  %v7197_v57 = vld [vmem:[#allocation81_spill] sm:$0xff] }
 0xe48   :  { %3410 = vmatpush1.msra.mxu1 %v6184_v58  ;;  %3340 = vmatprep.subr.mxu0 %v6187_v12  ;;  %v2054_v58 = vadd.f32 %v7197_v57, %v7067_v54 }
 0xe49   :  { %3411 = vmatprep.subr.mxu1 %v6190_v5  ;;  %3341 = vmatpush1.msra.mxu0 %v7142_v52  ;;  %v7198_v5 = vld [vmem:[#allocation79_spill] sm:$0xff] }
 0xe4a   :  { %3412 = vmatpush1.msra.mxu1 %v7172_v49  ;;  %3342 = vmatprep.subr.mxu0 %v7173_v6  ;;  %v2052_v11 = vadd.f32 %v7198_v5, %v5823_v40  ;;  %v3702_v49 = vld [vmem:[#allocation2] ss:$0 sm:$0xff]  ;;  %v7199_v6 = vld [vmem:[#allocation82_spill] sm:$0xff] }
 0xe4b   :  { %3413 = vmatprep.subr.mxu1 %v7174_v2  ;;  %3343 = vmatpush1.msra.mxu0 %v7175_v44  ;;  %v1945_v2 = vadd.f32 %v7199_v6, %v7194_v33 }
 0xe4c   :  { %3414 = vmatpush1.msra.mxu1 %v7176_v60  ;;  %3344 = vmatprep.subr.mxu0 %v7177_v43  ;;  %v7200_v60 = vld [vmem:[#allocation83_spill] sm:$0xff] }
 0xe4d   :  { %3415 = vmatprep.subr.mxu1 %v7178_v37  ;;  %3345 = vmatpush1.msra.mxu0 %v7179_v1 }
 0xe4e   :  { %3416 = vmatpush1.msra.mxu1 %v7180_v31  ;;  %3346 = vmatprep.subr.mxu0 %v7181_v38 }
 0xe4f   :  { %3417 = vmatprep.subr.mxu1 %v7182_v32  ;;  %3347 = vmatpush1.msra.mxu0 %v7183_v62 }
 0xe50   :  { %3418 = vmatpush1.msra.mxu1 %v7184_v47  ;;  %3348 = vmatprep.subr.mxu0 %v7185_v63  ;;  %v7201_v47 = vld [vmem:[#allocation84_spill] sm:$0xff] }
 0xe51   :  { %3419 = vmatprep.subr.mxu1 %v7186_v61  ;;  %3349 = vmatpush1.msra.mxu0 %v7187_v50  ;;  %v2060_v63 = vadd.f32 %v7201_v47, %v7067_v54  ;;  %v7202_v50 = vld [vmem:[#allocation56_spill] sm:$0xff] }
 0xe52   :  { %3420 = vmatpush1.msra.mxu1 %v7188_v36  ;;  %3350 = vmatprep.subr.mxu0 %v7189_v59  ;;  %v2058_v36 = vadd.f32 %v7202_v50, %v5823_v40 }
 0xe53   :  { %3421 = vmatprep.subr.mxu1 %v7190_v53  ;;  %3351 = vmatpush1.msra.mxu0 %v7191_v14 }
 0xe54   :  { %3384 = vmatprep.mubr.f32.mxu0 %v7192_v15  ;;  %3422 = vmatpush1.msra.mxu1 %v7193_v45 }
 0xe55   :  { %3455 = vmatprep.mubr.f32.mxu1 %v7192_v15  ;;  %3721 = vset.pattern.permute.xlu1 %v4377_v41 }
 0xe56   :  { %3722 = vset.pattern.permute.xlu0 %v4377_v41 }
 0xef4   :  { %v3216_v16 = vpop.f32.mrf.mxu0  ;;  %v3287_v48 = vpop.f32.mrf.mxu1 }
 0xef5   :  { %v3292_v13 = vadd.f32 %v3216_v16, %v1939_v35  ;;  %v3294_v52 = vadd.f32 %v3287_v48, %v2052_v11 }
 0xef6   :  { %v3218_v55 = vpop.f32.mrf.mxu0  ;;  %v3289_v0 = vpop.f32.mrf.mxu1 }
 0xef7   :  { %v3695_v22 = vmul.f32 -1.442695, %v3292_v13  ;;  %v3293_v3 = vadd.f32 %v3218_v55, %v1941_v56  ;;  %v3295_v12 = vadd.f32 %v3289_v0, %v2054_v58 }
 0xef9   :  { %3947 = vpow2.f32 %v3695_v22  ;;  %v3696_v51 = vmul.f32 -1.442695, %v3293_v3  ;;  %v3697_v26 = vmul.f32 -1.442695, %v3295_v12 }
 0xefb   :  { %3949 = vpow2.f32 %v3696_v51 }
 0xefc   :  { %3951 = vtanh.f32 %v3294_v52 }
 0xefd   :  { %3953 = vpow2.f32 %v3697_v26 }
 0xf06   :  { %v3948_v17 = vpop.eup %3947 }
 0xf07   :  { %v3299_v18 = vadd.f32 1.0, %v3948_v17 }
 0xf08   :  { %v3950_v34 = vpop.eup %3949 }
 0xf09   :  { %3955 = vrcp.f32 %v3299_v18  ;;  %v3305_v9 = vadd.f32 1.0, %v3950_v34  ;;  %v3952_v23 = vpop.eup %3951 }
 0xf0a   :  { %v3954_v20 = vpop.eup %3953 }
 0xf0b   :  { %3957 = vrcp.f32 %v3305_v9  ;;  %v3312_v46 = vadd.f32 1.0, %v3954_v20 }
 0xf0d   :  { %3959 = vrcp.f32 %v3312_v46 }
 0xf16   :  { %v3956_v8 = vpop.eup %3955 }
 0xf17   :  { %v3316_v28 = vmul.f32 %v3956_v8, %v3952_v23 }
 0xf18   :  { %v3958_v4 = vpop.eup %3957 }
 0xf19   :  { %v3315_v39 = vmul.f32 %v3958_v4, %v6351_v10  ;;  %v1947_v10 = vadd.f32 %v7200_v60, %v5808_v42 }
 0xf1a   :  { %v3960_v21 = vpop.eup %3959 }
 0xf1b   :  { %v3317_v30 = vadd.f32 %v3316_v28, %v3315_v39 }
 0xf1d   :  { %3961 = vtanh.f32 %v3317_v30 }
 0xf2a   :  { %v3962_v7 = vpop.eup %3961 }
 0xf2b   :  { %v3319_v24 = vmul.f32 %v3962_v7, %v3960_v21 }
 0xf2d   :  { %3385 = vmatmul.mubr.f32.vlgmr.msra.gmra.mxu0 %v3319_v24  ;;  %3456 = vmatmul.mubr.f32.vlgmr.msra.gmra.mxu1 %v3319_v24  ;;  %v3507_v29 = vmul.f32 %v6354_v27, %v3319_v24 }
 0xf2f   :  { %3521 = vadd.xlane.f32.xlu1 %v3507_v29 }
 0xf40   :  { %3532 = vperm.xlu1 %3721, %v3702_v49  }
 0xfed   :  { %v3386_v44 = vpop.f32.mrf.mxu0  ;;  %v3457_v38 = vpop.f32.mrf.mxu1 }
 0xfee   :  { %v3462_v43 = vadd.f32 %v3386_v44, %v1945_v2  ;;  %v3464_v59 = vadd.f32 %v3457_v38, %v2058_v36 }
 0xfef   :  { %v3388_v37 = vpop.f32.mrf.mxu0  ;;  %v3459_v62 = vpop.f32.mrf.mxu1 }
 0xff0   :  { %v3698_v1 = vmul.f32 -1.442695, %v3462_v43  ;;  %v3463_v31 = vadd.f32 %v3388_v37, %v1947_v10  ;;  %v3465_v61 = vadd.f32 %v3459_v62, %v2060_v63 }
 0xff2   :  { %3963 = vpow2.f32 %v3698_v1  ;;  %v3699_v32 = vmul.f32 -1.442695, %v3463_v31  ;;  %v3700_v53 = vmul.f32 -1.442695, %v3465_v61 }
 0xff4   :  { %3965 = vpow2.f32 %v3699_v32 }
 0xff5   :  { %3967 = vtanh.f32 %v3464_v59 }
 0xff6   :  { %3969 = vpow2.f32 %v3700_v53 }
 0xfff   :  { %v3964_v14 = vpop.eup %3963 }
0x1000   :  { %v3469_v42 = vadd.f32 1.0, %v3964_v14 }
0x1001   :  { %v3966_v15 = vpop.eup %3965 }
0x1002   :  { %3971 = vrcp.f32 %v3469_v42  ;;  %v3475_v45 = vadd.f32 1.0, %v3966_v15  ;;  %v3968_v41 = vpop.eup %3967 }
0x1003   :  { %v3970_v33 = vpop.eup %3969 }
0x1004   :  { %3973 = vrcp.f32 %v3475_v45  ;;  %v3482_v54 = vadd.f32 1.0, %v3970_v33 }
0x1006   :  { %3975 = vrcp.f32 %v3482_v54 }
0x100f   :  { %v3972_v25 = vpop.eup %3971 }
0x1010   :  { %v3486_v35 = vmul.f32 %v3972_v25, %v3968_v41 }
0x1011   :  { %v3974_v16 = vpop.eup %3973 }
0x1012   :  { %v3485_v19 = vmul.f32 %v3974_v16, %v3317_v30 }
0x1013   :  { %v3976_v40 = vpop.eup %3975 }
0x1014   :  { %v3487_v56 = vadd.f32 %v3486_v35, %v3485_v19 }
0x1016   :  { %3977 = vtanh.f32 %v3487_v56  ;;  %3493 = vst [vmem:[#allocation21 + $0x8] sm:$0xff] %v3487_v56 }
0x1023   :  { %v3978_v13 = vpop.eup %3977 }
0x1024   :  { %v3489_v55 = vmul.f32 %v3978_v13, %v3976_v40 }
0x1026   :  { %v3508_v22 = vmul.f32 %v6354_v27, %v3489_v55  ;;  %3491 = vst [vmem:[#allocation19 + $0x8] sm:$0xff] %v3489_v55 }
0x1028   :  { %3523 = vadd.xlane.f32.xlu0 %v3508_v22 }
0x1029   :  { %4300 = shalt.err (!%p4297_p7)
}
0x102a   :  { %3623 = dma.vmem_to_hbm [thread:$0]  %s3618_s16, 256, %s6469_s12, [#allocation20], %s4374_s4, %s4374_s4, %s4375_s1  }
0x102b   :  { %s4379_s7 = smov [#allocation21]  }
0x102c   :  { %s3629_s19 = sshll.u32 %s4379_s7, 4  ;;  %s3630_s19 = int_to_ptr.vmem [resolvable:$true] %s3629_s19 }
0x102d   :  { %s4309_s20 = scalar_lea.vmem %s3630_s19, 256  ;;  %p4314_p9 = scmp.lt.s32.totalorder %s3630_s19, %s3630_s19 }
0x102e   :  { %p4310_p8 = scmp.ne.s32.totalorder %s3630_s19, %s4309_s20  ;;  %p4315_p10 = scmp.lt.s32.totalorder %s4309_s20, %s4309_s20 }
0x1030   :  { %p4316_p11 = por %p4315_p10, %p4314_p9 }
0x1032   :  { %p4317_p12 = pnand %p4316_p11, %p4310_p8 }
0x1034   :  { %4320 = shalt.err (!%p4317_p12)
}
0x1035   :  { %3635 = dma.vmem_to_hbm [thread:$0]  %s3630_s19, 256, %s6470_s13, [#allocation20], %s4374_s4, %s4374_s4, %s4375_s1   ;;  %v3512_v27 = vpop.xlane.xlu1 %3511  ;;  %v7203_v51 = vlaneseq  ;;  %v3510_v58 = vpop.xlane.xlu0 %3509  ;;  %v7204_v12 = vld [vmem:[#allocation39_spill] sm:$0xff]  ;;  %vm3585_vm0 = vcmask 1041409   ;;  %vm3587_vm1 = vcmask 1042434   ;;  %vm3589_vm2 = vcmask 1043459  }
0x1036   :  { %vm3591_vm3 = vcmask 1044484   ;;  %vm3593_vm4 = vcmask 1045509   ;;  %vm3595_vm5 = vcmask 1046534   ;;  %s4380_s12 = smov [#allocation18]   ;;  %vm3597_vm6 = vcmask 1047559  }
0x1037   :  { %v3552_v0 = vand.u32 127, %v7203_v51  ;;  %s3608_s13 = sshll.u32 %s4380_s12, 4  ;;  %vm3600_vm7 = vcmask 64512   ;;  %s3609_s13 = int_to_ptr.vmem [resolvable:$true] %s3608_s13 }
0x1038   :  { %s4329_s23 = scalar_lea.vmem %s3609_s13, 128  ;;  %p4334_p0 = scmp.lt.s32.totalorder %s3609_s13, %s3609_s13 }
0x1039   :  { %v3518_v3 = vpop.xlane.xlu1 %3517  ;;  %v3555_v5 = vsub.s32 %v3552_v0, %v7204_v12  ;;  %v3514_v26 = vpop.xlane.xlu0 %3513  ;;  %p4330_p13 = scmp.ne.s32.totalorder %s3609_s13, %s4329_s23  ;;  %p4335_p1 = scmp.lt.s32.totalorder %s4329_s23, %s4329_s23 }
0x103b   :  { %p4336_p2 = por %p4335_p1, %p4334_p0 }
0x103d   :  { %v3522_v48 = vpop.xlane.xlu1 %3521  ;;  %v3516_v9 = vpop.xlane.xlu0 %3515  ;;  %p4337_p3 = pnand %p4336_p2, %p4330_p13 }
0x1041   :  { %v3533_v57 = vpop.permute.xlu1 %3532  ;;  %v3520_v39 = vpop.xlane.xlu0 %3519 }
0x1042   :  { %v3535_v11 = vadd.f32 %v3533_v57, %v3510_v58  ;;  %v3536_v52 = vadd.f32 %v3533_v57, %v3512_v27  ;;  %v3537_v17 = vadd.f32 %v3533_v57, %v3514_v26  ;;  %v3538_v20 = vadd.f32 %v3533_v57, %v3516_v9 }
0x1043   :  { %v3539_v28 = vadd.f32 %v3533_v57, %v3518_v3  ;;  %v3540_v30 = vadd.f32 %v3533_v57, %v3520_v39  ;;  %v3541_v24 = vadd.f32 %v3533_v57, %v3522_v48 }
0x1044   :  { %v3556_v18 = vrot.slane %v3535_v11, %v3555_v5  ;;  %v3560_v34 = vrot.slane %v3536_v52, %v3555_v5  ;;  %v3564_v23 = vrot.slane %v3537_v17, %v3555_v5  ;;  %v3568_v46 = vrot.slane %v3538_v20, %v3555_v5 }
0x1045   :  { %v3572_v7 = vrot.slane %v3539_v28, %v3555_v5  ;;  %v3576_v49 = vrot.slane %v3540_v30, %v3555_v5  ;;  %v3580_v60 = vrot.slane %v3541_v24, %v3555_v5 }
0x1046   :  { %v3586_v8 = vsel %vm3585_vm0, %v3560_v34, %v3556_v18 }
0x1047   :  { %v3588_v4 = vsel %vm3587_vm1, %v3564_v23, %v3586_v8 }
0x1048   :  { %v3590_v21 = vsel %vm3589_vm2, %v3568_v46, %v3588_v4 }
0x1049   :  { %v3592_v29 = vsel %vm3591_vm3, %v3572_v7, %v3590_v21 }
0x104a   :  { %v3594_v44 = vsel %vm3593_vm4, %v3576_v49, %v3592_v29 }
0x104b   :  { %v3596_v43 = vsel %vm3595_vm5, %v3580_v60, %v3594_v44 }
0x10b1   :  { %v3524_v6 = vpop.xlane.xlu0 %3523 }
0x10b2   :  { %v3542_v2 = vadd.f32 %v3533_v57, %v3524_v6 }
0x10b4   :  { %v3584_v10 = vrot.slane %v3542_v2, %v3555_v5 }
0x10b6   :  { %v3598_v37 = vsel %vm3597_vm6, %v3584_v10, %v3596_v43 }
0x10b7   :  { %3601 = vst.msk [vmem:[#allocation18] sm:$0xff] %vm3600_vm7, %v3598_v37 }
0x10b8   :  { %4340 = shalt.err (!%p4337_p3)
}
0x10b9   :  { %3611 = dma.vmem_to_hbm [thread:$0]  %s3609_s13, 128, %s6468_s11, [#allocation5]  }
0x10ba   :  { %4359 = dma.done.wait [#allocation5], 128  }
0x10bb   :  { %4360 = vsyncadd [#allocation5], 4294967168 }
0x10bc   :  { %4361 = dma.done.wait [#allocation20], 512  }
0x10bd   :  { %4362 = vsyncadd [#allocation20], 4294966784 }
0x10be   :  { %3645 = vsyncpa [#allocation4], 1 }
0x10bf   :  { %3646 = vsyncpa [#allocation7], 1 }
0x10c0   :  { %3647 = vsyncpa [#allocation10], 1 }
0x10c1   :  { %3648 = vsyncpa [#allocation13], 1 }
0x10c2   :  { %3649 = vsyncpa [#allocation16], 1 }
0x10c3   :  { %3650 = vsyncpa [#allocation5], 1 }
0x10c4   :  { %3651 = vsyncpa [#allocation20], 1 }

</bundles_post_ra>
